<compile_context>
chip_gen: v6e
topology: v6e:2x2x1
jax: 0.10.0
libtpu: 0.0.40
codegen_flags: <defaults>
</compile_context>

<pallas_src>
import numpy as np

import jax
import jax.numpy as jnp
from jax.experimental import pallas as pl
from jax.experimental.pallas import tpu as pltpu


B = 8  # samples packed per conv-stack grid step (224 sublanes / up to 224 lanes)


# ----------------------------------------------------------------------------
# constant 0/1 matrices (numpy, baked in as compile-time constants)
# ----------------------------------------------------------------------------
def _colshift(W):
    """F[kw][wi, wo] = 1 iff wi == wo + kw - 1 (zero-filled SAME column shift)."""
    F = np.zeros((3, W, W), np.float32)
    for kw in range(3):
        for wo in range(W):
            wi = wo + kw - 1
            if 0 <= wi < W:
                F[kw, wi, wo] = 1.0
    return F


def _rowshift_bd(H, nb):
    """Block-diag (over nb samples) zero-filled row shift for kh in {0, 2}."""
    E = np.zeros((3, H, H), np.float32)
    for kh in range(3):
        for ho in range(H):
            hi = ho + kh - 1
            if 0 <= hi < H:
                E[kh, ho, hi] = 1.0
    RS = np.zeros((2, nb * H, nb * H), np.float32)
    for idx, kh in enumerate((0, 2)):
        for b in range(nb):
            RS[idx, b * H:(b + 1) * H, b * H:(b + 1) * H] = E[kh]
    return RS


def _colpool(C, W):
    """CS[s][c*W + 2j+s, c*(W//2) + j] = 1 : column-pair selector (per channel)."""
    Wo = W // 2
    CS = np.zeros((2, C * W, C * Wo), np.float32)
    for s in range(2):
        for c in range(C):
            for j in range(Wo):
                CS[s, c * W + 2 * j + s, c * Wo + j] = 1.0
    return CS


def _rowpool(nb, H):
    """RP[r][b*(H//2) + i, b*H + 2i+r] = 1 : row-pair selector (per sample)."""
    Ho = H // 2
    RP = np.zeros((2, nb * Ho, nb * H), np.float32)
    for r in range(2):
        for b in range(nb):
            for i in range(Ho):
                RP[r, b * Ho + i, b * H + 2 * i + r] = 1.0
    return RP


# ----------------------------------------------------------------------------
# Kernel 1: fused conv1+relu+pool + conv2+relu+pool for B samples per step.
# Activation layout: rows = (sample, height), cols = (channel, width).
# ----------------------------------------------------------------------------
def _conv_stack_kernel(x_ref, g1_ref, rs1_ref, b1_ref, cs1_ref, rp1_ref,
                       g2_ref, rs2_ref, b2_ref, cs2_ref, rp2_ref, o_ref):
    f32 = jnp.float32
    bf16 = jnp.bfloat16

    def dot(a, b):
        return jnp.dot(a, b, preferred_element_type=f32)

    x = x_ref[...]                                            # (B*28, 28) bf16

    # ---- conv1 (1->6, 3x3 SAME): 2 row-shift + 3 kh-grouped weight matmuls
    xs0 = dot(rs1_ref[0], x).astype(bf16)                     # rows for kh=0 (exact)
    xs2 = dot(rs1_ref[1], x).astype(bf16)                     # rows for kh=2 (exact)
    y1 = dot(xs0, g1_ref[0]) + dot(x, g1_ref[1]) + dot(xs2, g1_ref[2])
    y1 = jnp.maximum(y1 + b1_ref[...], 0.0).astype(bf16)      # (B*28, 6*28)

    # ---- 2x2/2 max pool: column pairs then row pairs (0/1 selection matmuls)
    zc = jnp.maximum(dot(y1, cs1_ref[0]), dot(y1, cs1_ref[1])).astype(bf16)   # (B*28, 6*14)
    p1 = jnp.maximum(dot(rp1_ref[0], zc), dot(rp1_ref[1], zc)).astype(bf16)   # (B*14, 6*14)

    # ---- conv2 (6->16, 3x3 SAME)
    ps0 = dot(rs2_ref[0], p1).astype(bf16)
    ps2 = dot(rs2_ref[1], p1).astype(bf16)
    y2 = dot(ps0, g2_ref[0]) + dot(p1, g2_ref[1]) + dot(ps2, g2_ref[2])
    y2 = jnp.maximum(y2 + b2_ref[...], 0.0).astype(bf16)      # (B*14, 16*14)

    # ---- 2x2/2 max pool -> (B*7, 16*7); row-major flatten order is (b, h, c, w)
    zc2 = jnp.maximum(dot(y2, cs2_ref[0]), dot(y2, cs2_ref[1])).astype(bf16)  # (B*14, 16*7)
    p2 = jnp.maximum(dot(rp2_ref[0], zc2), dot(rp2_ref[1], zc2))              # (B*7, 112) f32
    o_ref[...] = p2


# ----------------------------------------------------------------------------
# Kernel 2: fused fc1 + ReLU + fc2 + softmax (exact division), f32.
# ----------------------------------------------------------------------------
def _mlp_head_kernel(f_ref, w1_ref, b1_ref, w2_ref, b2_ref, o_ref):
    f32 = jnp.float32
    h = jnp.dot(f_ref[...], w1_ref[...], preferred_element_type=f32)
    h = jnp.maximum(h + b1_ref[...], 0.0)
    logits = jnp.dot(h, w2_ref[...], preferred_element_type=f32) + b2_ref[...]
    m = jnp.max(logits, axis=-1, keepdims=True)
    e = jnp.exp(logits - m)
    o_ref[...] = e / jnp.sum(e, axis=-1, keepdims=True)


# ----------------------------------------------------------------------------
# forward pass
# ----------------------------------------------------------------------------
@jax.jit
def lenet_forward(x_nchw, params):
    N = x_nchw.shape[0]
    # batch padding / FC-head block size (Npad is always a multiple of B and BM)
    if N <= 256:
        Npad = ((N + B - 1) // B) * B
        BM = Npad
    else:
        Npad = ((N + 255) // 256) * 256
        BM = 256

    bf16 = jnp.bfloat16

    # ---- activation prep: (N,1,28,28) -> (Npad*28, 28), rows = (sample, h) ----
    x = x_nchw.astype(jnp.float32).reshape(N, 28, 28)
    if Npad > N:
        x = jnp.concatenate([x, jnp.zeros((Npad - N, 28, 28), jnp.float32)], 0)
    xs = x.reshape(Npad * 28, 28).astype(bf16)

    # ---- weight-only preprocessing (fused by XLA, no activations involved) ----
    w1 = params["w_conv1"].astype(jnp.float32)      # (6, 1, 3, 3)  torch OIHW
    w2 = params["w_conv2"].astype(jnp.float32)      # (16, 6, 3, 3)
    F28 = jnp.asarray(_colshift(28))
    F14 = jnp.asarray(_colshift(14))

    # G[kh] folds the per-tap weights and the zero-filled column shift:
    #   G1[kh][wi, co*28+wo] = sum_kw w1[co,0,kh,kw] * F28[kw, wi, wo]
    g1 = jnp.einsum('chk,kab->hacb', w1[:, 0], F28).reshape(3, 28, 6 * 28).astype(bf16)
    g2 = jnp.einsum('oihk,kab->hiaob', w2, F14).reshape(3, 6 * 14, 16 * 14).astype(bf16)

    rs1 = jnp.asarray(_rowshift_bd(28, B), bf16)    # (2, 224, 224)
    rs2 = jnp.asarray(_rowshift_bd(14, B), bf16)    # (2, 112, 112)
    cs1 = jnp.asarray(_colpool(6, 28), bf16)        # (2, 168, 84)
    cs2 = jnp.asarray(_colpool(16, 14), bf16)       # (2, 224, 112)
    rp1 = jnp.asarray(_rowpool(B, 28), bf16)        # (2, 112, 224)
    rp2 = jnp.asarray(_rowpool(B, 14), bf16)        # (2, 56, 112)

    b1row = jnp.repeat(params["b_conv1"].astype(jnp.float32), 28).reshape(1, 6 * 28)
    b2row = jnp.repeat(params["b_conv2"].astype(jnp.float32), 14).reshape(1, 16 * 14)

    # fc1 weight rows permuted to the kernel's (h, c, w) flatten order and the
    # hidden dim zero-padded 64 -> 128 for a full-lane first matmul.
    w1fc = params["w_fc1"].astype(jnp.float32)      # (784, 64), rows = (c, h, w)
    w1p = w1fc.reshape(16, 7, 7, 64).transpose(1, 0, 2, 3).reshape(784, 64)
    w1p = jnp.pad(w1p, ((0, 0), (0, 64)))                     # (784, 128)
    b1p = jnp.pad(params["b_fc1"].astype(jnp.float32), (0, 64)).reshape(1, 128)
    w2p = jnp.pad(params["w_fc2"].astype(jnp.float32), ((0, 64), (0, 0)))  # (128, 10)
    b2f = params["b_fc2"].astype(jnp.float32).reshape(1, 10)

    # ---- kernel 1: full conv stack, B samples per grid step ------------------
    feat_cw = pl.pallas_call(
        _conv_stack_kernel,
        grid=(Npad // B,),
        in_specs=[
            pl.BlockSpec((B * 28, 28), lambda g: (g, 0)),            # x
            pl.BlockSpec((3, 28, 168), lambda g: (0, 0, 0)),         # g1
            pl.BlockSpec((2, B * 28, B * 28), lambda g: (0, 0, 0)),  # rs1
            pl.BlockSpec((1, 168), lambda g: (0, 0)),                # bias1 row
            pl.BlockSpec((2, 168, 84), lambda g: (0, 0, 0)),         # cs1
            pl.BlockSpec((2, B * 14, B * 28), lambda g: (0, 0, 0)),  # rp1
            pl.BlockSpec((3, 84, 224), lambda g: (0, 0, 0)),         # g2
            pl.BlockSpec((2, B * 14, B * 14), lambda g: (0, 0, 0)),  # rs2
            pl.BlockSpec((1, 224), lambda g: (0, 0)),                # bias2 row
            pl.BlockSpec((2, 224, 112), lambda g: (0, 0, 0)),        # cs2
            pl.BlockSpec((2, B * 7, B * 14), lambda g: (0, 0, 0)),   # rp2
        ],
        out_specs=pl.BlockSpec((B * 7, 112), lambda g: (g, 0)),
        out_shape=jax.ShapeDtypeStruct((Npad * 7, 112), jnp.float32),
        compiler_params=pltpu.CompilerParams(
            dimension_semantics=("parallel",)),
    )(xs, g1, rs1, b1row, cs1, rp1, g2, rs2, b2row, cs2, rp2)

    # free reshape: row-major (Npad*7, 112) == (Npad, 784) in (h, c, w) order,
    # which w1p's row permutation already accounts for (no transpose/relayout).
    feat = feat_cw.reshape(Npad, 784)

    # ---- kernel 2: fc1 + ReLU + fc2 + softmax --------------------------------
    probs = pl.pallas_call(
        _mlp_head_kernel,
        grid=(Npad // BM,),
        in_specs=[
            pl.BlockSpec((BM, 784), lambda i: (i, 0)),
            pl.BlockSpec((784, 128), lambda i: (0, 0)),
            pl.BlockSpec((1, 128), lambda i: (0, 0)),
            pl.BlockSpec((128, 10), lambda i: (0, 0)),
            pl.BlockSpec((1, 10), lambda i: (0, 0)),
        ],
        out_specs=pl.BlockSpec((BM, 10), lambda i: (i, 0)),
        out_shape=jax.ShapeDtypeStruct((Npad, 10), jnp.float32),
        compiler_params=pltpu.CompilerParams(
            dimension_semantics=("parallel",)),
    )(feat, w1p, b1p, w2p, b2f)

    return probs[:N]


# ----------------------------------------------------------------------------
# pure-JAX/XLA reference of the same forward pass (for correctness check)
# ----------------------------------------------------------------------------
def lenet_reference(x_nchw, params):
    hi = jax.lax.Precision.HIGHEST
    dn = ('NCHW', 'OIHW', 'NCHW')
    y = jax.lax.conv_general_dilated(
        x_nchw.astype(jnp.float32), params["w_conv1"], (1, 1), [(1, 1), (1, 1)],
        dimension_numbers=dn, precision=hi)
    y = jax.nn.relu(y + params["b_conv1"][None, :, None, None])
    y = jax.lax.reduce_window(y, -jnp.inf, jax.lax.max,
                              (1, 1, 2, 2), (1, 1, 2, 2), 'VALID')
    y = jax.lax.conv_general_dilated(
        y, params["w_conv2"], (1, 1), [(1, 1), (1, 1)],
        dimension_numbers=dn, precision=hi)
    y = jax.nn.relu(y + params["b_conv2"][None, :, None, None])
    y = jax.lax.reduce_window(y, -jnp.inf, jax.lax.max,
                              (1, 1, 2, 2), (1, 1, 2, 2), 'VALID')
    f = y.reshape(y.shape[0], -1)                      # NCHW flatten
    h = jax.nn.relu(jnp.dot(f, params["w_fc1"], precision=hi) + params["b_fc1"])
    logits = jnp.dot(h, params["w_fc2"], precision=hi) + params["b_fc2"]
    return jax.nn.softmax(logits, axis=-1)


# ----------------------------------------------------------------------------
# params (torch layouts; fc weights stored pre-transposed: torch weight.T)
# ----------------------------------------------------------------------------
def init_params(key):
    ks = jax.random.split(key, 8)

    def nrm(k, shape, scale):
        return jax.random.normal(k, shape, jnp.float32) * scale

    return {
        "w_conv1": nrm(ks[0], (6, 1, 3, 3), 0.30),
        "b_conv1": nrm(ks[1], (6,), 0.10),
        "w_conv2": nrm(ks[2], (16, 6, 3, 3), 0.10),
        "b_conv2": nrm(ks[3], (16,), 0.10),
        "w_fc1": nrm(ks[4], (16 * 7 * 7, 64), 0.05),
        "b_fc1": nrm(ks[5], (64,), 0.05),
        "w_fc2": nrm(ks[6], (64, 10), 0.10),
        "b_fc2": nrm(ks[7], (10,), 0.10),
    }


if __name__ == "__main__":
    key = jax.random.PRNGKey(0)
    k_x, k_p = jax.random.split(key)

    # LeNet's fc1 (in_features = 16*7*7) pins the input to (N, 1, 28, 28).
    x = jax.random.normal(k_x, (2, 1, 28, 28), jnp.float32)
    params = init_params(k_p)

    out = jax.block_until_ready(lenet_forward(x, params))

    assert out.shape == (2, 10)
    # exact-division softmax -> rows sum to 1 to f32 precision
    assert bool(jnp.all(jnp.abs(jnp.sum(out, axis=-1) - 1.0) < 1e-5))
    # cross-check against the pure-XLA f32 reference.  The conv stack runs with
    # bf16 MXU operands (f32 accumulation), so allow a bf16-level tolerance on
    # the output probabilities (typical max-abs error is well below 1e-2).
    ref = lenet_reference(x, params)
    err = float(jnp.max(jnp.abs(out - ref)))
    assert err < 2e-2, err
    print("KERNEL_OK")
</pallas_src>

<mosaic_0001>
module attributes {stable_mosaic.version = 11 : i64} {
  func.func @_mlp_head_kernel(%arg0: i32, %arg1: memref<8x784xf32, #tpu.memory_space<vmem>>, %arg2: memref<784x128xf32, #tpu.memory_space<vmem>>, %arg3: memref<1x128xf32, #tpu.memory_space<vmem>>, %arg4: memref<128x10xf32, #tpu.memory_space<vmem>>, %arg5: memref<1x10xf32, #tpu.memory_space<vmem>>, %arg6: memref<8x10xf32, #tpu.memory_space<vmem>>) attributes {dimension_semantics = [#tpu.dimension_semantics<parallel>], iteration_bounds = array<i64: 1>, scalar_prefetch = 0 : i64, scratch_operands = 0 : i64, tpu.core_type = #tpu.core_type<tc>, window_params = [{transform_indices = @transform_0, window_bounds = array<i64: 8, 784>}, {pipeline_mode = #tpu.pipeline_mode<synchronous>, transform_indices = @transform_1, window_bounds = array<i64: 784, 128>}, {pipeline_mode = #tpu.pipeline_mode<synchronous>, transform_indices = @transform_2, window_bounds = array<i64: 1, 128>}, {pipeline_mode = #tpu.pipeline_mode<synchronous>, transform_indices = @transform_3, window_bounds = array<i64: 128, 10>}, {pipeline_mode = #tpu.pipeline_mode<synchronous>, transform_indices = @transform_4, window_bounds = array<i64: 1, 10>}, {transform_indices = @transform_5, window_bounds = array<i64: 8, 10>}]} {
    %c0 = arith.constant 0 : index
    %c0_0 = arith.constant 0 : index
    %0 = vector.load %arg1[%c0, %c0_0] : memref<8x784xf32, #tpu.memory_space<vmem>>, vector<8x784xf32>
    %c0_1 = arith.constant 0 : index
    %c0_2 = arith.constant 0 : index
    %1 = vector.load %arg2[%c0_1, %c0_2] : memref<784x128xf32, #tpu.memory_space<vmem>>, vector<784x128xf32>
    %cst = arith.constant dense<0.000000e+00> : vector<8x128xf32>
    %2 = tpu.matmul %0, %1, %cst {dimension_numbers = #tpu.dot_dimension_numbers<[1], [0], [0], [1], [0, 0, 1, 1], [], []>} : vector<8x784xf32>, vector<784x128xf32>, vector<8x128xf32> -> vector<8x128xf32>
    %c0_3 = arith.constant 0 : index
    %c0_4 = arith.constant 0 : index
    %3 = vector.load %arg3[%c0_3, %c0_4] : memref<1x128xf32, #tpu.memory_space<vmem>>, vector<1x128xf32>
    %4 = vector.broadcast %3 : vector<1x128xf32> to vector<8x128xf32>
    %5 = arith.addf %2, %4 : vector<8x128xf32>
    %cst_5 = arith.constant 0.000000e+00 : f32
    %6 = vector.broadcast %cst_5 : f32 to vector<8x128xf32>
    %7 = arith.maximumf %5, %6 : vector<8x128xf32>
    %c0_6 = arith.constant 0 : index
    %c0_7 = arith.constant 0 : index
    %8 = vector.load %arg4[%c0_6, %c0_7] : memref<128x10xf32, #tpu.memory_space<vmem>>, vector<128x10xf32>
    %cst_8 = arith.constant dense<0.000000e+00> : vector<8x10xf32>
    %9 = tpu.matmul %7, %8, %cst_8 {dimension_numbers = #tpu.dot_dimension_numbers<[1], [0], [0], [1], [0, 0, 1, 1], [], []>} : vector<8x128xf32>, vector<128x10xf32>, vector<8x10xf32> -> vector<8x10xf32>
    %c0_9 = arith.constant 0 : index
    %c0_10 = arith.constant 0 : index
    %10 = vector.load %arg5[%c0_9, %c0_10] : memref<1x10xf32, #tpu.memory_space<vmem>>, vector<1x10xf32>
    %11 = vector.broadcast %10 : vector<1x10xf32> to vector<8x10xf32>
    %12 = arith.addf %9, %11 : vector<8x10xf32>
    %cst_11 = arith.constant dense<0xFF800000> : vector<8xf32>
    %13 = vector.multi_reduction <maximumf>, %12, %cst_11 [1] : vector<8x10xf32> to vector<8xf32>
    %14 = vector.shape_cast %13 : vector<8xf32> to vector<8x1xf32>
    %15 = vector.broadcast %14 : vector<8x1xf32> to vector<8x10xf32>
    %16 = arith.subf %12, %15 : vector<8x10xf32>
    %17 = math.exp %16 : vector<8x10xf32>
    %cst_12 = arith.constant dense<0.000000e+00> : vector<8xf32>
    %18 = vector.multi_reduction <add>, %17, %cst_12 [1] : vector<8x10xf32> to vector<8xf32>
    %19 = vector.shape_cast %18 : vector<8xf32> to vector<8x1xf32>
    %20 = vector.broadcast %19 : vector<8x1xf32> to vector<8x10xf32>
    %21 = arith.divf %17, %20 : vector<8x10xf32>
    %c0_13 = arith.constant 0 : index
    %c0_14 = arith.constant 0 : index
    %22 = vector.load %arg6[%c0_13, %c0_14] : memref<8x10xf32, #tpu.memory_space<vmem>>, vector<8x10xf32>
    tpu.vector_store %arg6[%c0_13, %c0_14], %21 {strides = array<i32>} : memref<8x10xf32, #tpu.memory_space<vmem>>, vector<8x10xf32>,
    return
  }
  func.func @transform_0(%arg0: i32) -> (i32, i32) {
    %c0_i32 = arith.constant 0 : i32
    %c0_i32_0 = arith.constant 0 : i32
    return %arg0, %c0_i32 : i32, i32
  }
  func.func @transform_1(%arg0: i32) -> (i32, i32) {
    %c0_i32 = arith.constant 0 : i32
    %c0_i32_0 = arith.constant 0 : i32
    %c0_i32_1 = arith.constant 0 : i32
    return %c0_i32, %c0_i32_0 : i32, i32
  }
  func.func @transform_2(%arg0: i32) -> (i32, i32) {
    %c0_i32 = arith.constant 0 : i32
    %c0_i32_0 = arith.constant 0 : i32
    %c0_i32_1 = arith.constant 0 : i32
    return %c0_i32, %c0_i32_0 : i32, i32
  }
  func.func @transform_3(%arg0: i32) -> (i32, i32) {
    %c0_i32 = arith.constant 0 : i32
    %c0_i32_0 = arith.constant 0 : i32
    %c0_i32_1 = arith.constant 0 : i32
    return %c0_i32, %c0_i32_0 : i32, i32
  }
  func.func @transform_4(%arg0: i32) -> (i32, i32) {
    %c0_i32 = arith.constant 0 : i32
    %c0_i32_0 = arith.constant 0 : i32
    %c0_i32_1 = arith.constant 0 : i32
    return %c0_i32, %c0_i32_0 : i32, i32
  }
  func.func @transform_5(%arg0: i32) -> (i32, i32) {
    %c0_i32 = arith.constant 0 : i32
    %c0_i32_0 = arith.constant 0 : i32
    return %arg0, %c0_i32 : i32, i32
  }
}

module attributes {stable_mosaic.version = 11 : i64} {
  func.func @_conv_stack_kernel(%arg0: i32, %arg1: memref<224x28xbf16, #tpu.memory_space<vmem>>, %arg2: memref<3x28x168xbf16, #tpu.memory_space<vmem>>, %arg3: memref<2x224x224xbf16, #tpu.memory_space<vmem>>, %arg4: memref<1x168xf32, #tpu.memory_space<vmem>>, %arg5: memref<2x168x84xbf16, #tpu.memory_space<vmem>>, %arg6: memref<2x112x224xbf16, #tpu.memory_space<vmem>>, %arg7: memref<3x84x224xbf16, #tpu.memory_space<vmem>>, %arg8: memref<2x112x112xbf16, #tpu.memory_space<vmem>>, %arg9: memref<1x224xf32, #tpu.memory_space<vmem>>, %arg10: memref<2x224x112xbf16, #tpu.memory_space<vmem>>, %arg11: memref<2x56x112xbf16, #tpu.memory_space<vmem>>, %arg12: memref<56x112xf32, #tpu.memory_space<vmem>>) attributes {dimension_semantics = [#tpu.dimension_semantics<parallel>], iteration_bounds = array<i64: 1>, scalar_prefetch = 0 : i64, scratch_operands = 0 : i64, tpu.core_type = #tpu.core_type<tc>, window_params = [{transform_indices = @transform_0, window_bounds = array<i64: 224, 28>}, {pipeline_mode = #tpu.pipeline_mode<synchronous>, transform_indices = @transform_1, window_bounds = array<i64: 3, 28, 168>}, {pipeline_mode = #tpu.pipeline_mode<synchronous>, transform_indices = @transform_2, window_bounds = array<i64: 2, 224, 224>}, {pipeline_mode = #tpu.pipeline_mode<synchronous>, transform_indices = @transform_3, window_bounds = array<i64: 1, 168>}, {pipeline_mode = #tpu.pipeline_mode<synchronous>, transform_indices = @transform_4, window_bounds = array<i64: 2, 168, 84>}, {pipeline_mode = #tpu.pipeline_mode<synchronous>, transform_indices = @transform_5, window_bounds = array<i64: 2, 112, 224>}, {pipeline_mode = #tpu.pipeline_mode<synchronous>, transform_indices = @transform_6, window_bounds = array<i64: 3, 84, 224>}, {pipeline_mode = #tpu.pipeline_mode<synchronous>, transform_indices = @transform_7, window_bounds = array<i64: 2, 112, 112>}, {pipeline_mode = #tpu.pipeline_mode<synchronous>, transform_indices = @transform_8, window_bounds = array<i64: 1, 224>}, {pipeline_mode = #tpu.pipeline_mode<synchronous>, transform_indices = @transform_9, window_bounds = array<i64: 2, 224, 112>}, {pipeline_mode = #tpu.pipeline_mode<synchronous>, transform_indices = @transform_10, window_bounds = array<i64: 2, 56, 112>}, {transform_indices = @transform_11, window_bounds = array<i64: 56, 112>}]} {
    %c0 = arith.constant 0 : index
    %c0_0 = arith.constant 0 : index
    %0 = vector.load %arg1[%c0, %c0_0] : memref<224x28xbf16, #tpu.memory_space<vmem>>, vector<224x28xbf16>
    %c0_1 = arith.constant 0 : index
    %c0_2 = arith.constant 0 : index
    %c0_3 = arith.constant 0 : index
    %1 = vector.load %arg3[%c0_1, %c0_2, %c0_3] : memref<2x224x224xbf16, #tpu.memory_space<vmem>>, vector<1x224x224xbf16>
    %2 = vector.shape_cast %1 : vector<1x224x224xbf16> to vector<224x224xbf16>
    %cst = arith.constant dense<0.000000e+00> : vector<224x28xf32>
    %3 = tpu.matmul %2, %0, %cst {dimension_numbers = #tpu.dot_dimension_numbers<[1], [0], [0], [1], [0, 0, 1, 1], [], []>} : vector<224x224xbf16>, vector<224x28xbf16>, vector<224x28xf32> -> vector<224x28xf32>
    %4 = arith.truncf %3 : vector<224x28xf32> to vector<224x28xbf16>
    %c1 = arith.constant 1 : index
    %c0_4 = arith.constant 0 : index
    %c0_5 = arith.constant 0 : index
    %5 = vector.load %arg3[%c1, %c0_4, %c0_5] : memref<2x224x224xbf16, #tpu.memory_space<vmem>>, vector<1x224x224xbf16>
    %6 = vector.shape_cast %5 : vector<1x224x224xbf16> to vector<224x224xbf16>
    %cst_6 = arith.constant dense<0.000000e+00> : vector<224x28xf32>
    %7 = tpu.matmul %6, %0, %cst_6 {dimension_numbers = #tpu.dot_dimension_numbers<[1], [0], [0], [1], [0, 0, 1, 1], [], []>} : vector<224x224xbf16>, vector<224x28xbf16>, vector<224x28xf32> -> vector<224x28xf32>
    %8 = arith.truncf %7 : vector<224x28xf32> to vector<224x28xbf16>
    %c0_7 = arith.constant 0 : index
    %c0_8 = arith.constant 0 : index
    %c0_9 = arith.constant 0 : index
    %9 = vector.load %arg2[%c0_7, %c0_8, %c0_9] : memref<3x28x168xbf16, #tpu.memory_space<vmem>>, vector<1x28x168xbf16>
    %10 = vector.shape_cast %9 : vector<1x28x168xbf16> to vector<28x168xbf16>
    %cst_10 = arith.constant dense<0.000000e+00> : vector<224x168xf32>
    %11 = tpu.matmul %4, %10, %cst_10 {dimension_numbers = #tpu.dot_dimension_numbers<[1], [0], [0], [1], [0, 0, 1, 1], [], []>} : vector<224x28xbf16>, vector<28x168xbf16>, vector<224x168xf32> -> vector<224x168xf32>
    %c1_11 = arith.constant 1 : index
    %c0_12 = arith.constant 0 : index
    %c0_13 = arith.constant 0 : index
    %12 = vector.load %arg2[%c1_11, %c0_12, %c0_13] : memref<3x28x168xbf16, #tpu.memory_space<vmem>>, vector<1x28x168xbf16>
    %13 = vector.shape_cast %12 : vector<1x28x168xbf16> to vector<28x168xbf16>
    %cst_14 = arith.constant dense<0.000000e+00> : vector<224x168xf32>
    %14 = tpu.matmul %0, %13, %cst_14 {dimension_numbers = #tpu.dot_dimension_numbers<[1], [0], [0], [1], [0, 0, 1, 1], [], []>} : vector<224x28xbf16>, vector<28x168xbf16>, vector<224x168xf32> -> vector<224x168xf32>
    %15 = arith.addf %11, %14 : vector<224x168xf32>
    %c2 = arith.constant 2 : index
    %c0_15 = arith.constant 0 : index
    %c0_16 = arith.constant 0 : index
    %16 = vector.load %arg2[%c2, %c0_15, %c0_16] : memref<3x28x168xbf16, #tpu.memory_space<vmem>>, vector<1x28x168xbf16>
    %17 = vector.shape_cast %16 : vector<1x28x168xbf16> to vector<28x168xbf16>
    %cst_17 = arith.constant dense<0.000000e+00> : vector<224x168xf32>
    %18 = tpu.matmul %8, %17, %cst_17 {dimension_numbers = #tpu.dot_dimension_numbers<[1], [0], [0], [1], [0, 0, 1, 1], [], []>} : vector<224x28xbf16>, vector<28x168xbf16>, vector<224x168xf32> -> vector<224x168xf32>
    %19 = arith.addf %15, %18 : vector<224x168xf32>
    %c0_18 = arith.constant 0 : index
    %c0_19 = arith.constant 0 : index
    %20 = vector.load %arg4[%c0_18, %c0_19] : memref<1x168xf32, #tpu.memory_space<vmem>>, vector<1x168xf32>
    %21 = vector.broadcast %20 : vector<1x168xf32> to vector<224x168xf32>
    %22 = arith.addf %19, %21 : vector<224x168xf32>
    %cst_20 = arith.constant 0.000000e+00 : f32
    %23 = vector.broadcast %cst_20 : f32 to vector<224x168xf32>
    %24 = arith.maximumf %22, %23 : vector<224x168xf32>
    %25 = arith.truncf %24 : vector<224x168xf32> to vector<224x168xbf16>
    %c0_21 = arith.constant 0 : index
    %c0_22 = arith.constant 0 : index
    %c0_23 = arith.constant 0 : index
    %26 = vector.load %arg5[%c0_21, %c0_22, %c0_23] : memref<2x168x84xbf16, #tpu.memory_space<vmem>>, vector<1x168x84xbf16>
    %27 = vector.shape_cast %26 : vector<1x168x84xbf16> to vector<168x84xbf16>
    %cst_24 = arith.constant dense<0.000000e+00> : vector<224x84xf32>
    %28 = tpu.matmul %25, %27, %cst_24 {dimension_numbers = #tpu.dot_dimension_numbers<[1], [0], [0], [1], [0, 0, 1, 1], [], []>} : vector<224x168xbf16>, vector<168x84xbf16>, vector<224x84xf32> -> vector<224x84xf32>
    %c1_25 = arith.constant 1 : index
    %c0_26 = arith.constant 0 : index
    %c0_27 = arith.constant 0 : index
    %29 = vector.load %arg5[%c1_25, %c0_26, %c0_27] : memref<2x168x84xbf16, #tpu.memory_space<vmem>>, vector<1x168x84xbf16>
    %30 = vector.shape_cast %29 : vector<1x168x84xbf16> to vector<168x84xbf16>
    %cst_28 = arith.constant dense<0.000000e+00> : vector<224x84xf32>
    %31 = tpu.matmul %25, %30, %cst_28 {dimension_numbers = #tpu.dot_dimension_numbers<[1], [0], [0], [1], [0, 0, 1, 1], [], []>} : vector<224x168xbf16>, vector<168x84xbf16>, vector<224x84xf32> -> vector<224x84xf32>
    %32 = arith.maximumf %28, %31 : vector<224x84xf32>
    %33 = arith.truncf %32 : vector<224x84xf32> to vector<224x84xbf16>
    %c0_29 = arith.constant 0 : index
    %c0_30 = arith.constant 0 : index
    %c0_31 = arith.constant 0 : index
    %34 = vector.load %arg6[%c0_29, %c0_30, %c0_31] : memref<2x112x224xbf16, #tpu.memory_space<vmem>>, vector<1x112x224xbf16>
    %35 = vector.shape_cast %34 : vector<1x112x224xbf16> to vector<112x224xbf16>
    %cst_32 = arith.constant dense<0.000000e+00> : vector<112x84xf32>
    %36 = tpu.matmul %35, %33, %cst_32 {dimension_numbers = #tpu.dot_dimension_numbers<[1], [0], [0], [1], [0, 0, 1, 1], [], []>} : vector<112x224xbf16>, vector<224x84xbf16>, vector<112x84xf32> -> vector<112x84xf32>
    %c1_33 = arith.constant 1 : index
    %c0_34 = arith.constant 0 : index
    %c0_35 = arith.constant 0 : index
    %37 = vector.load %arg6[%c1_33, %c0_34, %c0_35] : memref<2x112x224xbf16, #tpu.memory_space<vmem>>, vector<1x112x224xbf16>
    %38 = vector.shape_cast %37 : vector<1x112x224xbf16> to vector<112x224xbf16>
    %cst_36 = arith.constant dense<0.000000e+00> : vector<112x84xf32>
    %39 = tpu.matmul %38, %33, %cst_36 {dimension_numbers = #tpu.dot_dimension_numbers<[1], [0], [0], [1], [0, 0, 1, 1], [], []>} : vector<112x224xbf16>, vector<224x84xbf16>, vector<112x84xf32> -> vector<112x84xf32>
    %40 = arith.maximumf %36, %39 : vector<112x84xf32>
    %41 = arith.truncf %40 : vector<112x84xf32> to vector<112x84xbf16>
    %c0_37 = arith.constant 0 : index
    %c0_38 = arith.constant 0 : index
    %c0_39 = arith.constant 0 : index
    %42 = vector.load %arg8[%c0_37, %c0_38, %c0_39] : memref<2x112x112xbf16, #tpu.memory_space<vmem>>, vector<1x112x112xbf16>
    %43 = vector.shape_cast %42 : vector<1x112x112xbf16> to vector<112x112xbf16>
    %cst_40 = arith.constant dense<0.000000e+00> : vector<112x84xf32>
    %44 = tpu.matmul %43, %41, %cst_40 {dimension_numbers = #tpu.dot_dimension_numbers<[1], [0], [0], [1], [0, 0, 1, 1], [], []>} : vector<112x112xbf16>, vector<112x84xbf16>, vector<112x84xf32> -> vector<112x84xf32>
    %45 = arith.truncf %44 : vector<112x84xf32> to vector<112x84xbf16>
    %c1_41 = arith.constant 1 : index
    %c0_42 = arith.constant 0 : index
    %c0_43 = arith.constant 0 : index
    %46 = vector.load %arg8[%c1_41, %c0_42, %c0_43] : memref<2x112x112xbf16, #tpu.memory_space<vmem>>, vector<1x112x112xbf16>
    %47 = vector.shape_cast %46 : vector<1x112x112xbf16> to vector<112x112xbf16>
    %cst_44 = arith.constant dense<0.000000e+00> : vector<112x84xf32>
    %48 = tpu.matmul %47, %41, %cst_44 {dimension_numbers = #tpu.dot_dimension_numbers<[1], [0], [0], [1], [0, 0, 1, 1], [], []>} : vector<112x112xbf16>, vector<112x84xbf16>, vector<112x84xf32> -> vector<112x84xf32>
    %49 = arith.truncf %48 : vector<112x84xf32> to vector<112x84xbf16>
    %c0_45 = arith.constant 0 : index
    %c0_46 = arith.constant 0 : index
    %c0_47 = arith.constant 0 : index
    %50 = vector.load %arg7[%c0_45, %c0_46, %c0_47] : memref<3x84x224xbf16, #tpu.memory_space<vmem>>, vector<1x84x224xbf16>
    %51 = vector.shape_cast %50 : vector<1x84x224xbf16> to vector<84x224xbf16>
    %cst_48 = arith.constant dense<0.000000e+00> : vector<112x224xf32>
    %52 = tpu.matmul %45, %51, %cst_48 {dimension_numbers = #tpu.dot_dimension_numbers<[1], [0], [0], [1], [0, 0, 1, 1], [], []>} : vector<112x84xbf16>, vector<84x224xbf16>, vector<112x224xf32> -> vector<112x224xf32>
    %c1_49 = arith.constant 1 : index
    %c0_50 = arith.constant 0 : index
    %c0_51 = arith.constant 0 : index
    %53 = vector.load %arg7[%c1_49, %c0_50, %c0_51] : memref<3x84x224xbf16, #tpu.memory_space<vmem>>, vector<1x84x224xbf16>
    %54 = vector.shape_cast %53 : vector<1x84x224xbf16> to vector<84x224xbf16>
    %cst_52 = arith.constant dense<0.000000e+00> : vector<112x224xf32>
    %55 = tpu.matmul %41, %54, %cst_52 {dimension_numbers = #tpu.dot_dimension_numbers<[1], [0], [0], [1], [0, 0, 1, 1], [], []>} : vector<112x84xbf16>, vector<84x224xbf16>, vector<112x224xf32> -> vector<112x224xf32>
    %56 = arith.addf %52, %55 : vector<112x224xf32>
    %c2_53 = arith.constant 2 : index
    %c0_54 = arith.constant 0 : index
    %c0_55 = arith.constant 0 : index
    %57 = vector.load %arg7[%c2_53, %c0_54, %c0_55] : memref<3x84x224xbf16, #tpu.memory_space<vmem>>, vector<1x84x224xbf16>
    %58 = vector.shape_cast %57 : vector<1x84x224xbf16> to vector<84x224xbf16>
    %cst_56 = arith.constant dense<0.000000e+00> : vector<112x224xf32>
    %59 = tpu.matmul %49, %58, %cst_56 {dimension_numbers = #tpu.dot_dimension_numbers<[1], [0], [0], [1], [0, 0, 1, 1], [], []>} : vector<112x84xbf16>, vector<84x224xbf16>, vector<112x224xf32> -> vector<112x224xf32>
    %60 = arith.addf %56, %59 : vector<112x224xf32>
    %c0_57 = arith.constant 0 : index
    %c0_58 = arith.constant 0 : index
    %61 = vector.load %arg9[%c0_57, %c0_58] : memref<1x224xf32, #tpu.memory_space<vmem>>, vector<1x224xf32>
    %62 = vector.broadcast %61 : vector<1x224xf32> to vector<112x224xf32>
    %63 = arith.addf %60, %62 : vector<112x224xf32>
    %cst_59 = arith.constant 0.000000e+00 : f32
    %64 = vector.broadcast %cst_59 : f32 to vector<112x224xf32>
    %65 = arith.maximumf %63, %64 : vector<112x224xf32>
    %66 = arith.truncf %65 : vector<112x224xf32> to vector<112x224xbf16>
    %c0_60 = arith.constant 0 : index
    %c0_61 = arith.constant 0 : index
    %c0_62 = arith.constant 0 : index
    %67 = vector.load %arg10[%c0_60, %c0_61, %c0_62] : memref<2x224x112xbf16, #tpu.memory_space<vmem>>, vector<1x224x112xbf16>
    %68 = vector.shape_cast %67 : vector<1x224x112xbf16> to vector<224x112xbf16>
    %cst_63 = arith.constant dense<0.000000e+00> : vector<112x112xf32>
    %69 = tpu.matmul %66, %68, %cst_63 {dimension_numbers = #tpu.dot_dimension_numbers<[1], [0], [0], [1], [0, 0, 1, 1], [], []>} : vector<112x224xbf16>, vector<224x112xbf16>, vector<112x112xf32> -> vector<112x112xf32>
    %c1_64 = arith.constant 1 : index
    %c0_65 = arith.constant 0 : index
    %c0_66 = arith.constant 0 : index
    %70 = vector.load %arg10[%c1_64, %c0_65, %c0_66] : memref<2x224x112xbf16, #tpu.memory_space<vmem>>, vector<1x224x112xbf16>
    %71 = vector.shape_cast %70 : vector<1x224x112xbf16> to vector<224x112xbf16>
    %cst_67 = arith.constant dense<0.000000e+00> : vector<112x112xf32>
    %72 = tpu.matmul %66, %71, %cst_67 {dimension_numbers = #tpu.dot_dimension_numbers<[1], [0], [0], [1], [0, 0, 1, 1], [], []>} : vector<112x224xbf16>, vector<224x112xbf16>, vector<112x112xf32> -> vector<112x112xf32>
    %73 = arith.maximumf %69, %72 : vector<112x112xf32>
    %74 = arith.truncf %73 : vector<112x112xf32> to vector<112x112xbf16>
    %c0_68 = arith.constant 0 : index
    %c0_69 = arith.constant 0 : index
    %c0_70 = arith.constant 0 : index
    %75 = vector.load %arg11[%c0_68, %c0_69, %c0_70] : memref<2x56x112xbf16, #tpu.memory_space<vmem>>, vector<1x56x112xbf16>
    %76 = vector.shape_cast %75 : vector<1x56x112xbf16> to vector<56x112xbf16>
    %cst_71 = arith.constant dense<0.000000e+00> : vector<56x112xf32>
    %77 = tpu.matmul %76, %74, %cst_71 {dimension_numbers = #tpu.dot_dimension_numbers<[1], [0], [0], [1], [0, 0, 1, 1], [], []>} : vector<56x112xbf16>, vector<112x112xbf16>, vector<56x112xf32> -> vector<56x112xf32>
    %c1_72 = arith.constant 1 : index
    %c0_73 = arith.constant 0 : index
    %c0_74 = arith.constant 0 : index
    %78 = vector.load %arg11[%c1_72, %c0_73, %c0_74] : memref<2x56x112xbf16, #tpu.memory_space<vmem>>, vector<1x56x112xbf16>
    %79 = vector.shape_cast %78 : vector<1x56x112xbf16> to vector<56x112xbf16>
    %cst_75 = arith.constant dense<0.000000e+00> : vector<56x112xf32>
    %80 = tpu.matmul %79, %74, %cst_75 {dimension_numbers = #tpu.dot_dimension_numbers<[1], [0], [0], [1], [0, 0, 1, 1], [], []>} : vector<56x112xbf16>, vector<112x112xbf16>, vector<56x112xf32> -> vector<56x112xf32>
    %81 = arith.maximumf %77, %80 : vector<56x112xf32>
    %c0_76 = arith.constant 0 : index
    %c0_77 = arith.constant 0 : index
    %82 = vector.load %arg12[%c0_76, %c0_77] : memref<56x112xf32, #tpu.memory_space<vmem>>, vector<56x112xf32>
    tpu.vector_store %arg12[%c0_76, %c0_77], %81 {strides = array<i32>} : memref<56x112xf32, #tpu.memory_space<vmem>>, vector<56x112xf32>,
    return
  }
  func.func @transform_0(%arg0: i32) -> (i32, i32) {
    %c0_i32 = arith.constant 0 : i32
    %c0_i32_0 = arith.constant 0 : i32
    return %arg0, %c0_i32 : i32, i32
  }
  func.func @transform_1(%arg0: i32) -> (i32, i32, i32) {
    %c0_i32 = arith.constant 0 : i32
    %c0_i32_0 = arith.constant 0 : i32
    %c0_i32_1 = arith.constant 0 : i32
    %c0_i32_2 = arith.constant 0 : i32
    return %c0_i32, %c0_i32_0, %c0_i32_1 : i32, i32, i32
  }
  func.func @transform_2(%arg0: i32) -> (i32, i32, i32) {
    %c0_i32 = arith.constant 0 : i32
    %c0_i32_0 = arith.constant 0 : i32
    %c0_i32_1 = arith.constant 0 : i32
    %c0_i32_2 = arith.constant 0 : i32
    return %c0_i32, %c0_i32_0, %c0_i32_1 : i32, i32, i32
  }
  func.func @transform_3(%arg0: i32) -> (i32, i32) {
    %c0_i32 = arith.constant 0 : i32
    %c0_i32_0 = arith.constant 0 : i32
    %c0_i32_1 = arith.constant 0 : i32
    return %c0_i32, %c0_i32_0 : i32, i32
  }
  func.func @transform_4(%arg0: i32) -> (i32, i32, i32) {
    %c0_i32 = arith.constant 0 : i32
    %c0_i32_0 = arith.constant 0 : i32
    %c0_i32_1 = arith.constant 0 : i32
    %c0_i32_2 = arith.constant 0 : i32
    return %c0_i32, %c0_i32_0, %c0_i32_1 : i32, i32, i32
  }
  func.func @transform_5(%arg0: i32) -> (i32, i32, i32) {
    %c0_i32 = arith.constant 0 : i32
    %c0_i32_0 = arith.constant 0 : i32
    %c0_i32_1 = arith.constant 0 : i32
    %c0_i32_2 = arith.constant 0 : i32
    return %c0_i32, %c0_i32_0, %c0_i32_1 : i32, i32, i32
  }
  func.func @transform_6(%arg0: i32) -> (i32, i32, i32) {
    %c0_i32 = arith.constant 0 : i32
    %c0_i32_0 = arith.constant 0 : i32
    %c0_i32_1 = arith.constant 0 : i32
    %c0_i32_2 = arith.constant 0 : i32
    return %c0_i32, %c0_i32_0, %c0_i32_1 : i32, i32, i32
  }
  func.func @transform_7(%arg0: i32) -> (i32, i32, i32) {
    %c0_i32 = arith.constant 0 : i32
    %c0_i32_0 = arith.constant 0 : i32
    %c0_i32_1 = arith.constant 0 : i32
    %c0_i32_2 = arith.constant 0 : i32
    return %c0_i32, %c0_i32_0, %c0_i32_1 : i32, i32, i32
  }
  func.func @transform_8(%arg0: i32) -> (i32, i32) {
    %c0_i32 = arith.constant 0 : i32
    %c0_i32_0 = arith.constant 0 : i32
    %c0_i32_1 = arith.constant 0 : i32
    return %c0_i32, %c0_i32_0 : i32, i32
  }
  func.func @transform_9(%arg0: i32) -> (i32, i32, i32) {
    %c0_i32 = arith.constant 0 : i32
    %c0_i32_0 = arith.constant 0 : i32
    %c0_i32_1 = arith.constant 0 : i32
    %c0_i32_2 = arith.constant 0 : i32
    return %c0_i32, %c0_i32_0, %c0_i32_1 : i32, i32, i32
  }
  func.func @transform_10(%arg0: i32) -> (i32, i32, i32) {
    %c0_i32 = arith.constant 0 : i32
    %c0_i32_0 = arith.constant 0 : i32
    %c0_i32_1 = arith.constant 0 : i32
    %c0_i32_2 = arith.constant 0 : i32
    return %c0_i32, %c0_i32_0, %c0_i32_1 : i32, i32, i32
  }
  func.func @transform_11(%arg0: i32) -> (i32, i32) {
    %c0_i32 = arith.constant 0 : i32
    %c0_i32_0 = arith.constant 0 : i32
    return %arg0, %c0_i32 : i32, i32
  }
}

</mosaic_0001>

<bundles_post_ra>
// kernel: lenet_forward.3
= control target key start
LH: loop header
LB: loop body
LE: loop exit
PB: predicated region body
PF: predicated region fallthrough
CT: control target
= control target key end

     0   :  { %vm132_vm0 = vcmask 130048   ;;  %vm704_vm1 = vmmov 0   ;;  %vm510_vm2 = vcmask 80896   ;;  %s1130_s1 = inlined_call_operand.vmem [shape: f32[784,128], index: 1, kind: input, shape index: {}]   ;;  %s1131_s0 = inlined_call_operand.vmem [shape: f32[8,784], index: 0, kind: input, shape index: {}]   ;;  %s1132_s3 = inlined_call_operand.vmem [shape: f32[128,10], index: 3, kind: input, shape index: {}]   ;;  %s1133_s2 = inlined_call_operand.vmem [shape: f32[1,128], index: 2, kind: input, shape index: {}]   ;;  %s1134_s4 = inlined_call_operand.vmem [shape: f32[1,10], index: 4, kind: input, shape index: {}]   ;;  %s1135_s5 = inlined_call_operand.vmem [shape: f32[8,10], index: 5, kind: output, shape index: {}]  }
   0x1   :  { %v58_v0 = vld [vmem:[%s1130_s1 + $0xf8] sm:$0xff]  ;;  %v57_v2 = vld [vmem:[%s1130_s1 + $0xf0] sm:$0xff]  ;;  %v56_v6 = vld [vmem:[%s1130_s1 + $0xe8] sm:$0xff] }
   0x2   :  { %v42_v1 = vld [vmem:[%s1130_s1 + $0x78] sm:$0xff]  ;;  %530 = vmatprep.subr.mxu0 %v58_v0  ;;  %v41_v4 = vld [vmem:[%s1130_s1 + $0x70] sm:$0xff]  ;;  %v40_v8 = vld [vmem:[%s1130_s1 + $0x68] sm:$0xff] }
   0x3   :  { %v90_v3 = vld [vmem:[%s1130_s1 + $0x1f8] sm:$0xff]  ;;  %531 = vmatpush3.msra.mxu0 %v42_v1  ;;  %v89_v7 = vld [vmem:[%s1130_s1 + $0x1f0] sm:$0xff]  ;;  %v88_v10 = vld [vmem:[%s1130_s1 + $0x1e8] sm:$0xff] }
   0x4   :  { %v74_v5 = vld [vmem:[%s1130_s1 + $0x178] sm:$0xff]  ;;  %565 = vmatprep.subr.mxu1 %v90_v3  ;;  %532 = vmatprep.subr.mxu0 %v57_v2  ;;  %v73_v9 = vld [vmem:[%s1130_s1 + $0x170] sm:$0xff]  ;;  %v55_v11 = vld [vmem:[%s1130_s1 + $0xe0] sm:$0xff] }
   0x5   :  { %566 = vmatpush3.msra.mxu1 %v74_v5  ;;  %533 = vmatpush3.msra.mxu0 %v41_v4  ;;  %v72_v12 = vld [vmem:[%s1130_s1 + $0x168] sm:$0xff]  ;;  %v39_v13 = vld [vmem:[%s1130_s1 + $0x60] sm:$0xff]  ;;  %v54_v15 = vld [vmem:[%s1130_s1 + $0xd8] sm:$0xff] }
   0x6   :  { %567 = vmatprep.subr.mxu1 %v89_v7  ;;  %534 = vmatprep.subr.mxu0 %v56_v6  ;;  %v87_v14 = vld [vmem:[%s1130_s1 + $0x1e0] sm:$0xff]  ;;  %v38_v17 = vld [vmem:[%s1130_s1 + $0x58] sm:$0xff]  ;;  %v53_v19 = vld [vmem:[%s1130_s1 + $0xd0] sm:$0xff] }
   0x7   :  { %568 = vmatpush3.msra.mxu1 %v73_v9  ;;  %535 = vmatpush3.msra.mxu0 %v40_v8  ;;  %v71_v16 = vld [vmem:[%s1130_s1 + $0x160] sm:$0xff]  ;;  %v86_v18 = vld [vmem:[%s1130_s1 + $0x1d8] sm:$0xff]  ;;  %v37_v21 = vld [vmem:[%s1130_s1 + $0x50] sm:$0xff] }
   0x8   :  { %569 = vmatprep.subr.mxu1 %v88_v10  ;;  %536 = vmatprep.subr.mxu0 %v55_v11  ;;  %v70_v20 = vld [vmem:[%s1130_s1 + $0x158] sm:$0xff]  ;;  %v85_v22 = vld [vmem:[%s1130_s1 + $0x1d0] sm:$0xff]  ;;  %v52_v23 = vld [vmem:[%s1130_s1 + $0xc8] sm:$0xff] }
   0x9   :  { %570 = vmatpush3.msra.mxu1 %v72_v12  ;;  %537 = vmatpush3.msra.mxu0 %v39_v13  ;;  %v69_v24 = vld [vmem:[%s1130_s1 + $0x150] sm:$0xff]  ;;  %v36_v25 = vld [vmem:[%s1130_s1 + $0x48] sm:$0xff]  ;;  %v51_v27 = vld [vmem:[%s1130_s1 + $0xc0] sm:$0xff] }
   0xa   :  { %571 = vmatprep.subr.mxu1 %v87_v14  ;;  %538 = vmatprep.subr.mxu0 %v54_v15  ;;  %v84_v26 = vld [vmem:[%s1130_s1 + $0x1c8] sm:$0xff]  ;;  %v35_v29 = vld [vmem:[%s1130_s1 + $0x40] sm:$0xff]  ;;  %v50_v31 = vld [vmem:[%s1130_s1 + $0xb8] sm:$0xff]  ;;  %v703_v14 = vmov 0.0  }
   0xb   :  { %572 = vmatpush3.msra.mxu1 %v71_v16  ;;  %539 = vmatpush3.msra.mxu0 %v38_v17  ;;  %v68_v28 = vld [vmem:[%s1130_s1 + $0x148] sm:$0xff]  ;;  %v83_v30 = vld [vmem:[%s1130_s1 + $0x1c0] sm:$0xff]  ;;  %v34_v33 = vld [vmem:[%s1130_s1 + $0x38] sm:$0xff] }
   0xc   :  { %573 = vmatprep.subr.mxu1 %v86_v18  ;;  %540 = vmatprep.subr.mxu0 %v53_v19  ;;  %v67_v32 = vld [vmem:[%s1130_s1 + $0x140] sm:$0xff]  ;;  %v82_v34 = vld [vmem:[%s1130_s1 + $0x1b8] sm:$0xff]  ;;  %v49_v35 = vld [vmem:[%s1130_s1 + $0xb0] sm:$0xff] }
   0xd   :  { %574 = vmatpush3.msra.mxu1 %v70_v20  ;;  %541 = vmatpush3.msra.mxu0 %v37_v21  ;;  %v66_v36 = vld [vmem:[%s1130_s1 + $0x138] sm:$0xff]  ;;  %v33_v37 = vld [vmem:[%s1130_s1 + $0x30] sm:$0xff]  ;;  %v48_v39 = vld [vmem:[%s1130_s1 + $0xa8] sm:$0xff] }
   0xe   :  { %575 = vmatprep.subr.mxu1 %v85_v22  ;;  %542 = vmatprep.subr.mxu0 %v52_v23  ;;  %v81_v38 = vld [vmem:[%s1130_s1 + $0x1b0] sm:$0xff]  ;;  %v32_v41 = vld [vmem:[%s1130_s1 + $0x28] sm:$0xff]  ;;  %v47_v43 = vld [vmem:[%s1130_s1 + $0xa0] sm:$0xff] }
   0xf   :  { %576 = vmatpush3.msra.mxu1 %v69_v24  ;;  %543 = vmatpush3.msra.mxu0 %v36_v25  ;;  %v65_v40 = vld [vmem:[%s1130_s1 + $0x130] sm:$0xff]  ;;  %v80_v42 = vld [vmem:[%s1130_s1 + $0x1a8] sm:$0xff]  ;;  %v31_v45 = vld [vmem:[%s1130_s1 + $0x20] sm:$0xff] }
  0x10   :  { %577 = vmatprep.subr.mxu1 %v84_v26  ;;  %544 = vmatprep.subr.mxu0 %v51_v27  ;;  %v64_v44 = vld [vmem:[%s1130_s1 + $0x128] sm:$0xff]  ;;  %v79_v46 = vld [vmem:[%s1130_s1 + $0x1a0] sm:$0xff]  ;;  %v46_v47 = vld [vmem:[%s1130_s1 + $0x98] sm:$0xff] }
  0x11   :  { %578 = vmatpush3.msra.mxu1 %v68_v28  ;;  %545 = vmatpush3.msra.mxu0 %v35_v29  ;;  %v63_v48 = vld [vmem:[%s1130_s1 + $0x120] sm:$0xff]  ;;  %v30_v49 = vld [vmem:[%s1130_s1 + $0x18] sm:$0xff]  ;;  %v45_v51 = vld [vmem:[%s1130_s1 + $0x90] sm:$0xff] }
  0x12   :  { %579 = vmatprep.subr.mxu1 %v83_v30  ;;  %546 = vmatprep.subr.mxu0 %v50_v31  ;;  %v78_v50 = vld [vmem:[%s1130_s1 + $0x198] sm:$0xff]  ;;  %v29_v53 = vld [vmem:[%s1130_s1 + $0x10] sm:$0xff]  ;;  %v44_v55 = vld [vmem:[%s1130_s1 + $0x88] sm:$0xff] }
  0x13   :  { %580 = vmatpush3.msra.mxu1 %v67_v32  ;;  %547 = vmatpush3.msra.mxu0 %v34_v33  ;;  %v62_v52 = vld [vmem:[%s1130_s1 + $0x118] sm:$0xff]  ;;  %v77_v54 = vld [vmem:[%s1130_s1 + $0x190] sm:$0xff]  ;;  %v28_v57 = vld [vmem:[%s1130_s1 + $0x8] sm:$0xff] }
  0x14   :  { %581 = vmatprep.subr.mxu1 %v82_v34  ;;  %548 = vmatprep.subr.mxu0 %v49_v35  ;;  %v61_v56 = vld [vmem:[%s1130_s1 + $0x110] sm:$0xff]  ;;  %v76_v58 = vld [vmem:[%s1130_s1 + $0x188] sm:$0xff]  ;;  %v43_v59 = vld [vmem:[%s1130_s1 + $0x80] sm:$0xff] }
  0x15   :  { %582 = vmatpush3.msra.mxu1 %v66_v36  ;;  %549 = vmatpush3.msra.mxu0 %v33_v37  ;;  %v21_v60 = vld [vmem:[%s1131_s0 + $0x8] sm:$0xff]  ;;  %v27_v61 = vld [vmem:[%s1130_s1] sm:$0xff]  ;;  %v122_v1 = vld [vmem:[%s1130_s1 + $0x2f8] sm:$0xff] }
  0x16   :  { %583 = vmatprep.subr.mxu1 %v81_v38  ;;  %550 = vmatprep.subr.mxu0 %v48_v39  ;;  %v60_v62 = vld [vmem:[%s1130_s1 + $0x108] sm:$0xff]  ;;  %v20_v63 = vld [vmem:[%s1131_s0] sm:$0xff]  ;;  %v23_v3 = vld [vmem:[%s1131_s0 + $0x18] sm:$0xff] }
  0x17   :  { %584 = vmatpush3.msra.mxu1 %v65_v40  ;;  %551 = vmatpush3.msra.mxu0 %v32_v41  ;;  %v75_v0 = vld [vmem:[%s1130_s1 + $0x180] sm:$0xff]  ;;  %v106_v4 = vld [vmem:[%s1130_s1 + $0x278] sm:$0xff]  ;;  %v22_v5 = vld [vmem:[%s1131_s0 + $0x10] sm:$0xff] }
  0x18   :  { %585 = vmatprep.subr.mxu1 %v80_v42  ;;  %552 = vmatprep.subr.mxu0 %v47_v43  ;;  %v59_v2 = vld [vmem:[%s1130_s1 + $0x100] sm:$0xff]  ;;  %v121_v6 = vld [vmem:[%s1130_s1 + $0x2f0] sm:$0xff]  ;;  %v25_v8 = vld [vmem:[%s1131_s0 + $0x28] sm:$0xff] }
  0x19   :  { %586 = vmatpush3.msra.mxu1 %v64_v44  ;;  %553 = vmatpush3.msra.mxu0 %v31_v45  ;;  %v105_v7 = vld [vmem:[%s1130_s1 + $0x270] sm:$0xff]  ;;  %v120_v9 = vld [vmem:[%s1130_s1 + $0x2e8] sm:$0xff]  ;;  %v119_v12 = vld [vmem:[%s1130_s1 + $0x2e0] sm:$0xff] }
  0x1a   :  { %587 = vmatprep.subr.mxu1 %v79_v46  ;;  %554 = vmatprep.subr.mxu0 %v46_v47  ;;  %v104_v10 = vld [vmem:[%s1130_s1 + $0x268] sm:$0xff]  ;;  %v103_v13 = vld [vmem:[%s1130_s1 + $0x260] sm:$0xff]  ;;  %v118_v16 = vld [vmem:[%s1130_s1 + $0x2d8] sm:$0xff] }
  0x1b   :  { %588 = vmatpush3.msra.mxu1 %v63_v48  ;;  %555 = vmatpush3.msra.mxu0 %v30_v49  ;;  %v124_v11 = vld [vmem:[%s1130_s1 + $0x308] sm:$0xff]  ;;  %v123_v15 = vld [vmem:[%s1130_s1 + $0x300] sm:$0xff]  ;;  %v102_v17 = vld [vmem:[%s1130_s1 + $0x258] sm:$0xff] }
  0x1c   :  { %589 = vmatprep.subr.mxu1 %v78_v50  ;;  %556 = vmatprep.subr.mxu0 %v45_v51  ;;  %v26_v18 = vld [vmem:[%s1131_s0 + $0x30] sm:$0xff]  ;;  %v116_v21 = vld [vmem:[%s1130_s1 + $0x2c8] sm:$0xff]  ;;  %v115_v23 = vld [vmem:[%s1130_s1 + $0x2c0] sm:$0xff] }
  0x1d   :  { %590 = vmatpush3.msra.mxu1 %v62_v52  ;;  %557 = vmatpush3.msra.mxu0 %v29_v53  ;;  %v117_v19 = vld [vmem:[%s1130_s1 + $0x2d0] sm:$0xff]  ;;  %v100_v22 = vld [vmem:[%s1130_s1 + $0x248] sm:$0xff]  ;;  %v99_v24 = vld [vmem:[%s1130_s1 + $0x240] sm:$0xff] }
  0x1e   :  { %591 = vmatprep.subr.mxu1 %v77_v54  ;;  %558 = vmatprep.subr.mxu0 %v44_v55  ;;  %v101_v20 = vld [vmem:[%s1130_s1 + $0x250] sm:$0xff]  ;;  %v114_v25 = vld [vmem:[%s1130_s1 + $0x2b8] sm:$0xff]  ;;  %v112_v29 = vld [vmem:[%s1130_s1 + $0x2a8] sm:$0xff] }
  0x1f   :  { %592 = vmatpush3.msra.mxu1 %v61_v56  ;;  %559 = vmatpush3.msra.mxu0 %v28_v57  ;;  %v98_v26 = vld [vmem:[%s1130_s1 + $0x238] sm:$0xff]  ;;  %v113_v27 = vld [vmem:[%s1130_s1 + $0x2b0] sm:$0xff]  ;;  %v96_v30 = vld [vmem:[%s1130_s1 + $0x228] sm:$0xff] }
  0x20   :  { %593 = vmatprep.subr.mxu1 %v76_v58  ;;  %560 = vmatprep.subr.mxu0 %v43_v59  ;;  %v97_v28 = vld [vmem:[%s1130_s1 + $0x230] sm:$0xff]  ;;  %v111_v31 = vld [vmem:[%s1130_s1 + $0x2a0] sm:$0xff]  ;;  %v110_v33 = vld [vmem:[%s1130_s1 + $0x298] sm:$0xff] }
  0x21   :  { %200 = vmatprep.mubr.f32.mxu0 %v21_v60  ;;  %561 = vmatpush3.msra.mxu0 %v27_v61  ;;  %v95_v32 = vld [vmem:[%s1130_s1 + $0x220] sm:$0xff]  ;;  %v94_v34 = vld [vmem:[%s1130_s1 + $0x218] sm:$0xff]  ;;  %v109_v35 = vld [vmem:[%s1130_s1 + $0x290] sm:$0xff] }
  0x22   :  { %594 = vmatpush3.msra.mxu1 %v60_v62  ;;  %201 = vmatmul.mubr.f32.vlgmr.msra.gmra.mxu0 %v20_v63  ;;  %v93_v36 = vld [vmem:[%s1130_s1 + $0x210] sm:$0xff]  ;;  %v108_v37 = vld [vmem:[%s1130_s1 + $0x288] sm:$0xff]  ;;  %v107_v39 = vld [vmem:[%s1130_s1 + $0x280] sm:$0xff] }
  0x23   :  { %595 = vmatprep.subr.mxu1 %v75_v0  ;;  %600 = vmatprep.subr.mxu0 %v122_v1  ;;  %v92_v38 = vld [vmem:[%s1130_s1 + $0x208] sm:$0xff]  ;;  %v91_v40 = vld [vmem:[%s1130_s1 + $0x200] sm:$0xff]  ;;  %v432_v42 = vld [vmem:[%s1132_s3 + $0x78] sm:$0xff] }
  0x24   :  { %596 = vmatpush3.msra.mxu1 %v59_v2  ;;  %270 = vmatprep.mubr.f32.mxu1 %v23_v3  ;;  %v24_v41 = vld [vmem:[%s1131_s0 + $0x20] sm:$0xff]  ;;  %v431_v43 = vld [vmem:[%s1132_s3 + $0x70] sm:$0xff]  ;;  %v430_v44 = vld [vmem:[%s1132_s3 + $0x68] sm:$0xff] }
  0x25   :  { %601 = vmatpush3.msra.mxu0 %v106_v4  ;;  %271 = vmatmul.mubr.f32.vlgmr.msra.gmra.mxu1 %v22_v5  ;;  %v429_v45 = vld [vmem:[%s1132_s3 + $0x60] sm:$0xff]  ;;  %v428_v46 = vld [vmem:[%s1132_s3 + $0x58] sm:$0xff]  ;;  %v427_v47 = vld [vmem:[%s1132_s3 + $0x50] sm:$0xff] }
  0x26   :  { %602 = vmatprep.subr.mxu0 %v121_v6  ;;  %340 = vmatprep.mubr.f32.mxu0 %v25_v8  ;;  %v426_v48 = vld [vmem:[%s1132_s3 + $0x48] sm:$0xff]  ;;  %v425_v49 = vld [vmem:[%s1132_s3 + $0x40] sm:$0xff]  ;;  %v424_v50 = vld [vmem:[%s1132_s3 + $0x38] sm:$0xff] }
  0x27   :  { %603 = vmatpush3.msra.mxu0 %v105_v7  ;;  %655 = vmatprep.subr.mxu1 %v703_v14  ;;  %v423_v51 = vld [vmem:[%s1132_s3 + $0x30] sm:$0xff]  ;;  %v422_v52 = vld [vmem:[%s1132_s3 + $0x28] sm:$0xff]  ;;  %v421_v53 = vld [vmem:[%s1132_s3 + $0x20] sm:$0xff] }
  0x28   :  { %604 = vmatprep.subr.mxu0 %v120_v9  ;;  %656 = vmatpush3.msra.mxu1 %v124_v11  ;;  %v420_v54 = vld [vmem:[%s1132_s3 + $0x18] sm:$0xff]  ;;  %v419_v55 = vld [vmem:[%s1132_s3 + $0x10] sm:$0xff]  ;;  %v418_v56 = vld [vmem:[%s1132_s3 + $0x8] sm:$0xff] }
  0x29   :  { %605 = vmatpush3.msra.mxu0 %v104_v10  ;;  %657 = vmatprep.subr.mxu1 %v703_v14  ;;  %v417_v57 = vld [vmem:[%s1132_s3] sm:$0xff] }
  0x2a   :  { %606 = vmatprep.subr.mxu0 %v119_v12  ;;  %658 = vmatpush3.msra.mxu1 %v123_v15  ;;  %v527_v1 = vld [vmem:[%s1133_s2] ss:$0 sm:$0xff] }
  0x2b   :  { %607 = vmatpush3.msra.mxu0 %v103_v13  ;;  %659 = vmatprep.mubr.msk.f32.mxu1 %vm704_vm1, %v703_v14  ;;  %v529_v11 = vld [vmem:[%s1134_s4] ss:$0 sm:$0xff] }
  0x2c   :  { %608 = vmatprep.subr.mxu0 %v118_v16  ;;  %660 = vmatmul.mubr.msk.f32.vlgmr.msra.gmra.mxu1 %vm132_vm0, %v26_v18 }
  0x2d   :  { %609 = vmatpush3.msra.mxu0 %v102_v17  ;;  %662 = vmatprep.subr.mxu1 %v703_v14 }
  0x2e   :  { %610 = vmatprep.subr.mxu0 %v117_v19  ;;  %694 = vmatprep.mubr.msk.f32.mxu1 %vm704_vm1, %v703_v14 }
  0x2f   :  { %611 = vmatpush3.msra.mxu0 %v101_v20  ;;  %663 = vmatpush3.msra.mxu1 %v432_v42 }
  0x30   :  { %612 = vmatprep.subr.mxu0 %v116_v21  ;;  %664 = vmatprep.subr.mxu1 %v703_v14 }
  0x31   :  { %613 = vmatpush3.msra.mxu0 %v100_v22  ;;  %665 = vmatpush3.msra.mxu1 %v431_v43 }
  0x32   :  { %614 = vmatprep.subr.mxu0 %v115_v23  ;;  %666 = vmatprep.subr.mxu1 %v703_v14 }
  0x33   :  { %615 = vmatpush3.msra.mxu0 %v99_v24  ;;  %667 = vmatpush3.msra.mxu1 %v430_v44 }
  0x34   :  { %616 = vmatprep.subr.mxu0 %v114_v25  ;;  %668 = vmatprep.subr.mxu1 %v703_v14 }
  0x35   :  { %617 = vmatpush3.msra.mxu0 %v98_v26  ;;  %669 = vmatpush3.msra.mxu1 %v429_v45 }
  0x36   :  { %618 = vmatprep.subr.mxu0 %v113_v27  ;;  %670 = vmatprep.subr.mxu1 %v703_v14 }
  0x37   :  { %619 = vmatpush3.msra.mxu0 %v97_v28  ;;  %671 = vmatpush3.msra.mxu1 %v428_v46 }
  0x38   :  { %620 = vmatprep.subr.mxu0 %v112_v29  ;;  %672 = vmatprep.subr.mxu1 %v703_v14 }
  0x39   :  { %621 = vmatpush3.msra.mxu0 %v96_v30  ;;  %673 = vmatpush3.msra.mxu1 %v427_v47 }
  0x3a   :  { %622 = vmatprep.subr.mxu0 %v111_v31  ;;  %674 = vmatprep.subr.mxu1 %v703_v14 }
  0x3b   :  { %623 = vmatpush3.msra.mxu0 %v95_v32  ;;  %675 = vmatpush3.msra.mxu1 %v426_v48 }
  0x3c   :  { %624 = vmatprep.subr.mxu0 %v110_v33  ;;  %676 = vmatprep.subr.mxu1 %v703_v14 }
  0x3d   :  { %625 = vmatpush3.msra.mxu0 %v94_v34  ;;  %677 = vmatpush3.msra.mxu1 %v425_v49 }
  0x3e   :  { %626 = vmatprep.subr.mxu0 %v109_v35  ;;  %678 = vmatprep.subr.mxu1 %v703_v14 }
  0x3f   :  { %627 = vmatpush3.msra.mxu0 %v93_v36  ;;  %679 = vmatpush3.msra.mxu1 %v424_v50 }
  0x40   :  { %628 = vmatprep.subr.mxu0 %v108_v37  ;;  %680 = vmatprep.subr.mxu1 %v703_v14 }
  0x41   :  { %629 = vmatpush3.msra.mxu0 %v92_v38  ;;  %681 = vmatpush3.msra.mxu1 %v423_v51 }
  0x42   :  { %630 = vmatprep.subr.mxu0 %v107_v39  ;;  %682 = vmatprep.subr.mxu1 %v703_v14 }
  0x43   :  { %631 = vmatpush3.msra.mxu0 %v91_v40  ;;  %683 = vmatpush3.msra.mxu1 %v422_v52 }
  0x44   :  { %341 = vmatmul.mubr.f32.vlgmr.msra.gmra.mxu0 %v24_v41  ;;  %684 = vmatprep.subr.mxu1 %v703_v14 }
  0x45   :  { %685 = vmatpush3.msra.mxu1 %v421_v53 }
  0x46   :  { %686 = vmatprep.subr.mxu1 %v703_v14 }
  0x47   :  { %687 = vmatpush3.msra.mxu1 %v420_v54 }
  0x48   :  { %688 = vmatprep.subr.mxu1 %v703_v14 }
  0x49   :  { %689 = vmatpush3.msra.mxu1 %v419_v55 }
  0x4a   :  { %690 = vmatprep.subr.mxu1 %v703_v14 }
  0x4b   :  { %691 = vmatpush3.msra.mxu1 %v418_v56 }
  0x4c   :  { %692 = vmatprep.subr.mxu1 %v703_v14 }
  0x4d   :  { %693 = vmatpush3.msra.mxu1 %v417_v57 }
  0xe2   :  { %v562_v62 = vpop.f32.mrf.mxu0 }
  0xe4   :  { %v563_v63 = vpop.f32.mrf.mxu0 }
  0xe5   :  { %v597_v58 = vpop.f32.mrf.mxu1  ;;  %v564_v0 = vadd.f32 %v563_v63, %v562_v62 }
  0xe7   :  { %v598_v59 = vpop.f32.mrf.mxu1  ;;  %v203_v2 = vadd.f32 %v564_v0, %v527_v1 }
  0xe8   :  { %v599_v3 = vadd.f32 %v598_v59, %v597_v58 }
  0xea   :  { %v273_v6 = vadd.f32 %v599_v3, %v203_v2 }
  0xec   :  { %v412_v60 = vpop.f32.mrf.mxu1 }
  0xee   :  { %v661_v61 = vpop.f32.mrf.mxu1 }
 0x104   :  { %v632_v4 = vpop.f32.mrf.mxu0 }
 0x106   :  { %v633_v5 = vpop.f32.mrf.mxu0 }
 0x107   :  { %v634_v7 = vadd.f32 %v633_v5, %v632_v4 }
 0x109   :  { %v343_v8 = vadd.f32 %v634_v7, %v273_v6 }
 0x10b   :  { %v413_v9 = vadd.f32 %v412_v60, %v343_v8 }
 0x10d   :  { %v416_v10 = vmax.f32 %v413_v9, 0.0 }
 0x10f   :  { %695 = vmatmul.mubr.f32.vlgmr.msra.gmra.mxu1 %v416_v10 }
 0x1cf   :  { %v506_v12 = vpop.f32.mrf.mxu1 }
 0x1d0   :  { %v507_v13 = vadd.f32 %v529_v11, %v506_v12 }
 0x1d1   :  { %v696_v14 = vpop.f32.mrf.mxu1 }
 0x1d2   :  { %v511_v15 = vsel %vm510_vm2, %v507_v13, -inf }
 0x1d3   :  { %512 = vmax.xlane.f32.xlu0 %v511_v15 }
 0x25c   :  { %v513_v16 = vpop.xlane.xlu0 %512 }
 0x25d   :  { %v514_v17 = vsub.f32 %v507_v13, %v513_v16 }
 0x25f   :  { %v515_v18 = vmul.f32 1.442695, %v514_v17 }
 0x261   :  { %699 = vpow2.f32 %v515_v18 }
 0x26e   :  { %v700_v19 = vpop.eup %699 }
 0x26f   :  { %v517_v20 = vsel %vm510_vm2, %v700_v19, 0.0 }
 0x270   :  { %518 = vadd.xlane.f32.xlu0 %v517_v20 }
 0x2f9   :  { %v519_v21 = vpop.xlane.xlu0 %518 }
 0x2fa   :  { %701 = vrcp.f32 %v519_v21 }
 0x307   :  { %v702_v22 = vpop.eup %701 }
 0x308   :  { %v521_v23 = vmul.f32 %v702_v22, %v700_v19 }
 0x30a   :  { %522 = vst.msk [vmem:[%s1135_s5] sm:$0xff] %vm510_vm2, %v521_v23 }

// kernel: lenet_forward.2
= control target key start
LH: loop header
LB: loop body
LE: loop exit
PB: predicated region body
PF: predicated region fallthrough
CT: control target
= control target key end

     0   :  { %v7314_v0 = vmov 0   ;;  %vm305_vm0 = vcmask 785408   ;;  %vm933_vm1 = vcmask 1045504   ;;  %vm890_vm2 = vcmask 228352   ;;  %s7302_s0 = inlined_call_operand.vmem [shape: bf16[224,28], index: 0, kind: input, shape index: {}]   ;;  %s7303_s2 = inlined_call_operand.vmem [shape: bf16[2,224,224], index: 2, kind: input, shape index: {}]   ;;  %s7304_s1 = inlined_call_operand.vmem [shape: bf16[3,28,168], index: 1, kind: input, shape index: {}]   ;;  %s7305_s4 = inlined_call_operand.vmem [shape: bf16[2,168,84], index: 4, kind: input, shape index: {}]   ;;  %s7306_s3 = inlined_call_operand.vmem [shape: f32[1,168], index: 3, kind: input, shape index: {}]   ;;  %s7307_s5 = inlined_call_operand.vmem [shape: bf16[2,112,224], index: 5, kind: input, shape index: {}]   ;;  %s7308_s7 = inlined_call_operand.vmem [shape: bf16[2,112,112], index: 7, kind: input, shape index: {}]   ;;  %s7309_s6 = inlined_call_operand.vmem [shape: bf16[3,84,224], index: 6, kind: input, shape index: {}]   ;;  %s7310_s9 = inlined_call_operand.vmem [shape: bf16[2,224,112], index: 9, kind: input, shape index: {}]   ;;  %s7311_s8 = inlined_call_operand.vmem [shape: f32[1,224], index: 8, kind: input, shape index: {}]   ;;  %s7312_s10 = inlined_call_operand.vmem [shape: bf16[2,56,112], index: 10, kind: input, shape index: {}]   ;;  %s7313_s11 = inlined_call_operand.vmem [shape: f32[56,112], index: 11, kind: output, shape index: {}]  }
   0x1   :  { %348 = vmatprep.subr.bf16.mxu0 %v7314_v0  ;;  %v5517_v1 = vld [vmem:[%s7302_s0 + $0x38] sm:$0xff]   ;;  %704 = vmatprep.subr.bf16.mxu1 %v7314_v0  ;;  %v5524_v2 = vld [vmem:[%s7302_s0 + $0x30] sm:$0xff]   ;;  %v5533_v3 = vld [vmem:[%s7302_s0 + $0x28] sm:$0xff]   ;;  %vm1931_vm3 = vcmask 1043456   ;;  %vm1888_vm4 = vcmask 326656   ;;  %vm5452_vm5 = vmmov 0  }
   0x2   :  { %349 = vmatpush1.bf16.msra.mxu0 %v5517_v1  ;;  %705 = vmatpush1.bf16.msra.mxu1 %v5517_v1  ;;  %v5542_v4 = vld [vmem:[%s7302_s0 + $0x20] sm:$0xff]   ;;  %v5551_v5 = vld [vmem:[%s7302_s0 + $0x18] sm:$0xff]   ;;  %v5564_v7 = vld [vmem:[%s7302_s0 + $0x10] sm:$0xff]   ;;  %vm3185_vm6 = vcmask 1041408   ;;  %vm2800_vm7 = vcmask 916480   ;;  %vm3163_vm8 = vcmask 687104  }
   0x3   :  { %350 = vmatprep.subr.bf16.mxu0 %v7314_v0  ;;  %706 = vmatprep.subr.bf16.mxu1 %v7314_v0  ;;  %v5185_v6 = vld [vmem:[%s7303_s2 + $0x4] ss:$8 sps:$4 sm:$0xff]   ;;  %v5613_v13 = vld [vmem:[%s7302_s0 + $0x58] sm:$0xff]   ;;  %v5622_v14 = vld [vmem:[%s7302_s0 + $0x50] sm:$0xff]  }
   0x4   :  { %4495 = vmatprep.mubr.msk.bf16.mxu0 %vm305_vm0, %v5185_v6  ;;  %v5194_v8 = vld [vmem:[%s7303_s2 + $0xe4] ss:$8 sps:$4 sm:$0xff]   ;;  %v5183_v17 = vld [vmem:[%s7303_s2] ss:$8 sps:$4 sm:$0xff]   ;;  %v5186_v19 = vld [vmem:[%s7303_s2 + $0x14] ss:$8 sps:$4 sm:$0xff]  }
   0x5   :  { %4565 = vmatprep.mubr.msk.bf16.mxu1 %vm305_vm0, %v5194_v8  ;;  %v5577_v9 = vld [vmem:[%s7302_s0 + $0x8] sm:$0xff]   ;;  %v5586_v10 = vld [vmem:[%s7302_s0] sm:$0xff]   ;;  %v5243_v18 = vld [vmem:[%s7304_s1 + $0x34] ss:$8 sps:$4 sm:$0x3f]  }
   0x6   :  { %351 = vmatpush1.bf16.msra.mxu0 %v5524_v2  ;;  %707 = vmatpush1.bf16.msra.mxu1 %v5524_v2  ;;  %v5595_v11 = vld [vmem:[%s7302_s0 + $0x68] sm:$0xff]   ;;  %v5604_v12 = vld [vmem:[%s7302_s0 + $0x60] sm:$0xff]   ;;  %v5245_v20 = vld [vmem:[%s7304_s1 + $0x30] ss:$8 sps:$4 sm:$0x3f]  }
   0x7   :  { %352 = vmatprep.subr.bf16.mxu0 %v7314_v0  ;;  %708 = vmatprep.subr.bf16.mxu1 %v7314_v0  ;;  %v5631_v15 = vld [vmem:[%s7302_s0 + $0x48] sm:$0xff]   ;;  %v5640_v16 = vld [vmem:[%s7302_s0 + $0x40] sm:$0xff]   ;;  %v5198_v22 = vld [vmem:[%s7303_s2 + $0xf4] ss:$8 sps:$4 sm:$0xff]   ;;  %v935_v23 = vsel %vm933_vm1, %v5245_v20, 0 }
   0x8   :  { %v5192_v21 = vld [vmem:[%s7303_s2 + $0xe0] ss:$8 sps:$4 sm:$0xff]   ;;  %v5266_v24 = vld [vmem:[%s7304_s1 + $0x24] ss:$8 sps:$4 sm:$0xff]   ;;  %v5188_v26 = vld [vmem:[%s7303_s2 + $0x10] ss:$8 sps:$4 sm:$0xff]  }
   0x9   :  { %v5264_v25 = vld [vmem:[%s7304_s1 + $0x20] ss:$8 sps:$4 sm:$0xff]   ;;  %v5200_v27 = vld [vmem:[%s7303_s2 + $0xf0] ss:$8 sps:$4 sm:$0xff]   ;;  %v5189_v28 = vld [vmem:[%s7303_s2 + $0x24] ss:$8 sps:$4 sm:$0xff]  }
   0xa   :  { %353 = vmatpush1.bf16.msra.mxu0 %v5533_v3  ;;  %709 = vmatpush1.bf16.msra.mxu1 %v5533_v3  ;;  %v5204_v29 = vld [vmem:[%s7303_s2 + $0x104] ss:$8 sps:$4 sm:$0xff]   ;;  %v5191_v30 = vld [vmem:[%s7303_s2 + $0x20] ss:$8 sps:$4 sm:$0xff]   ;;  %v5195_v32 = vld [vmem:[%s7303_s2 + $0x34] ss:$8 sps:$4 sm:$0xff]  }
   0xb   :  { %354 = vmatprep.subr.bf16.mxu0 %v7314_v0  ;;  %710 = vmatprep.subr.bf16.mxu1 %v7314_v0  ;;  %v5206_v31 = vld [vmem:[%s7303_s2 + $0x100] ss:$8 sps:$4 sm:$0xff]   ;;  %v5210_v33 = vld [vmem:[%s7303_s2 + $0x114] ss:$8 sps:$4 sm:$0xff]   ;;  %v5197_v34 = vld [vmem:[%s7303_s2 + $0x30] ss:$8 sps:$4 sm:$0xff]  }
   0xc   :  { %v5212_v35 = vld [vmem:[%s7303_s2 + $0x110] ss:$8 sps:$4 sm:$0xff]   ;;  %v5201_v36 = vld [vmem:[%s7303_s2 + $0x44] ss:$8 sps:$4 sm:$0xff]   ;;  %v5203_v38 = vld [vmem:[%s7303_s2 + $0x40] ss:$8 sps:$4 sm:$0xff]  }
   0xd   :  { %v5216_v37 = vld [vmem:[%s7303_s2 + $0x124] ss:$8 sps:$4 sm:$0xff]   ;;  %v5218_v39 = vld [vmem:[%s7303_s2 + $0x120] ss:$8 sps:$4 sm:$0xff]   ;;  %v5207_v40 = vld [vmem:[%s7303_s2 + $0x54] ss:$8 sps:$4 sm:$0xff]  }
   0xe   :  { %355 = vmatpush1.bf16.msra.mxu0 %v5542_v4  ;;  %711 = vmatpush1.bf16.msra.mxu1 %v5542_v4  ;;  %v5222_v41 = vld [vmem:[%s7303_s2 + $0x134] ss:$8 sps:$4 sm:$0xff]   ;;  %v5209_v42 = vld [vmem:[%s7303_s2 + $0x50] ss:$8 sps:$4 sm:$0xff]   ;;  %v5213_v44 = vld [vmem:[%s7303_s2 + $0x64] ss:$8 sps:$4 sm:$0xff]  }
   0xf   :  { %356 = vmatprep.subr.bf16.mxu0 %v7314_v0  ;;  %712 = vmatprep.subr.bf16.mxu1 %v7314_v0  ;;  %v5224_v43 = vld [vmem:[%s7303_s2 + $0x130] ss:$8 sps:$4 sm:$0xff]   ;;  %v5228_v45 = vld [vmem:[%s7303_s2 + $0x144] ss:$8 sps:$4 sm:$0xff]   ;;  %v5215_v46 = vld [vmem:[%s7303_s2 + $0x60] ss:$8 sps:$4 sm:$0xff]  }
  0x10   :  { %v5230_v47 = vld [vmem:[%s7303_s2 + $0x140] ss:$8 sps:$4 sm:$0xff]   ;;  %v5219_v48 = vld [vmem:[%s7303_s2 + $0x74] ss:$8 sps:$4 sm:$0xff]   ;;  %v5221_v50 = vld [vmem:[%s7303_s2 + $0x70] ss:$8 sps:$4 sm:$0xff]  }
  0x11   :  { %v5234_v49 = vld [vmem:[%s7303_s2 + $0x154] ss:$8 sps:$4 sm:$0xff]   ;;  %v5236_v51 = vld [vmem:[%s7303_s2 + $0x150] ss:$8 sps:$4 sm:$0xff]   ;;  %v5225_v52 = vld [vmem:[%s7303_s2 + $0x84] ss:$8 sps:$4 sm:$0xff]  }
  0x12   :  { %357 = vmatpush1.bf16.msra.mxu0 %v5551_v5  ;;  %713 = vmatpush1.bf16.msra.mxu1 %v5551_v5  ;;  %v5240_v53 = vld [vmem:[%s7303_s2 + $0x164] ss:$8 sps:$4 sm:$0xff]   ;;  %v5273_v54 = vld [vmem:[%s7304_s1 + $0x14] ss:$8 sps:$4 sm:$0x3f]  }
  0x13   :  { %358 = vmatprep.subr.bf16.mxu0 %v7314_v0  ;;  %714 = vmatprep.subr.bf16.mxu1 %v7314_v0  ;;  %v5227_v55 = vld [vmem:[%s7303_s2 + $0x80] ss:$8 sps:$4 sm:$0xff]   ;;  %v5231_v56 = vld [vmem:[%s7303_s2 + $0x94] ss:$8 sps:$4 sm:$0xff]   ;;  %v5278_v61 = vld [vmem:[%s7304_s1 + $0x4] ss:$8 sps:$4 sm:$0xff]  }
  0x14   :  { %v5242_v57 = vld [vmem:[%s7303_s2 + $0x160] ss:$8 sps:$4 sm:$0xff]   ;;  %v5249_v58 = vld [vmem:[%s7303_s2 + $0x174] ss:$8 sps:$4 sm:$0xff]   ;;  %v5233_v63 = vld [vmem:[%s7303_s2 + $0x90] ss:$8 sps:$4 sm:$0xff]  }
  0x15   :  { %v5275_v59 = vld [vmem:[%s7304_s1 + $0x10] ss:$8 sps:$4 sm:$0x3f]   ;;  %v5276_v62 = vld [vmem:[%s7304_s1] ss:$8 sps:$4 sm:$0xff]  }
  0x16   :  { %359 = vmatpush1.bf16.msra.mxu0 %v5564_v7  ;;  %715 = vmatpush1.bf16.msra.mxu1 %v5564_v7  ;;  %v1174_v60 = vsel %vm933_vm1, %v5275_v59, 0  ;;  %v5237_v6 = vld [vmem:[%s7303_s2 + $0xa4] ss:$8 sps:$4 sm:$0xff]   ;;  %v5251_v8 = vld [vmem:[%s7303_s2 + $0x170] ss:$8 sps:$4 sm:$0xff]  }
  0x17   :  { %360 = vmatprep.subr.bf16.mxu0 %v7314_v0  ;;  %716 = vmatprep.subr.bf16.mxu1 %v7314_v0  ;;  %v5257_v20 = vld [vmem:[%s7303_s2 + $0x180] ss:$8 sps:$4 sm:$0xff]  }
  0x1a   :  { %361 = vmatpush1.bf16.msra.mxu0 %v5577_v9  ;;  %717 = vmatpush1.bf16.msra.mxu1 %v5577_v9 }
  0x1b   :  { %362 = vmatprep.subr.bf16.mxu0 %v7314_v0  ;;  %718 = vmatprep.subr.bf16.mxu1 %v7314_v0 }
  0x1e   :  { %363 = vmatpush1.bf16.msra.mxu0 %v5586_v10  ;;  %719 = vmatpush1.bf16.msra.mxu1 %v5586_v10 }
  0x1f   :  { %368 = vmatprep.subr.bf16.mxu0 %v7314_v0  ;;  %724 = vmatprep.subr.bf16.mxu1 %v7314_v0 }
  0x22   :  { %369 = vmatpush2.bf16.msra.mxu0 %v5595_v11  ;;  %725 = vmatpush2.bf16.msra.mxu1 %v5595_v11 }
  0x23   :  { %370 = vmatprep.subr.bf16.mxu0 %v7314_v0  ;;  %726 = vmatprep.subr.bf16.mxu1 %v7314_v0 }
  0x26   :  { %371 = vmatpush2.bf16.msra.mxu0 %v5604_v12  ;;  %727 = vmatpush2.bf16.msra.mxu1 %v5604_v12 }
  0x27   :  { %372 = vmatprep.subr.bf16.mxu0 %v7314_v0  ;;  %728 = vmatprep.subr.bf16.mxu1 %v7314_v0 }
  0x2a   :  { %373 = vmatpush2.bf16.msra.mxu0 %v5613_v13  ;;  %729 = vmatpush2.bf16.msra.mxu1 %v5613_v13 }
  0x2b   :  { %374 = vmatprep.subr.bf16.mxu0 %v7314_v0  ;;  %730 = vmatprep.subr.bf16.mxu1 %v7314_v0 }
  0x2e   :  { %375 = vmatpush2.bf16.msra.mxu0 %v5622_v14  ;;  %731 = vmatpush2.bf16.msra.mxu1 %v5622_v14 }
  0x2f   :  { %376 = vmatprep.subr.bf16.mxu0 %v7314_v0  ;;  %732 = vmatprep.subr.bf16.mxu1 %v7314_v0 }
  0x32   :  { %377 = vmatpush2.bf16.msra.mxu0 %v5631_v15  ;;  %733 = vmatpush2.bf16.msra.mxu1 %v5631_v15 }
  0x33   :  { %378 = vmatprep.subr.bf16.mxu0 %v7314_v0  ;;  %734 = vmatprep.subr.bf16.mxu1 %v7314_v0 }
  0x36   :  { %379 = vmatpush2.bf16.msra.mxu0 %v5640_v16  ;;  %735 = vmatpush2.bf16.msra.mxu1 %v5640_v16 }
  0x37   :  { %4587 = vmatprep.subr.msk.bf16.mxu0 %vm933_vm1, %v5243_v18  ;;  %4606 = vmatprep.subr.msk.bf16.mxu1 %vm933_vm1, %v5273_v54  ;;  %v5279_v18 = vld [vmem:[%s7304_s1 + $0x54] ss:$8 sps:$4 sm:$0x3f]  }
  0x39   :  { %381 = vmatmul.mubr.bf16.vlgmr.msra.gmra.mxu0 %v5183_v17  ;;  %737 = vmatmul.mubr.bf16.vlgmr.msra.gmra.mxu1 %v5192_v21  ;;  %v5255_v17 = vld [vmem:[%s7303_s2 + $0x184] ss:$8 sps:$4 sm:$0xff]   ;;  %v5246_v21 = vld [vmem:[%s7303_s2 + $0xb4] ss:$8 sps:$4 sm:$0xff]  }
  0x3a   :  { %4496 = vmatprep.mubr.msk.bf16.mxu0 %vm305_vm0, %v5186_v19  ;;  %4566 = vmatprep.mubr.msk.bf16.mxu1 %vm305_vm0, %v5198_v22  ;;  %v5239_v19 = vld [vmem:[%s7303_s2 + $0xa0] ss:$8 sps:$4 sm:$0xff]   ;;  %v5261_v22 = vld [vmem:[%s7303_s2 + $0x194] ss:$8 sps:$4 sm:$0xff]  }
  0x3b   :  { %953 = vmatpush1.bf16.msra.mxu0 %v935_v23  ;;  %1192 = vmatpush1.bf16.msra.mxu1 %v1174_v60  ;;  %v5248_v23 = vld [vmem:[%s7303_s2 + $0xb0] ss:$8 sps:$4 sm:$0xff]  }
  0x3c   :  { %954 = vmatprep.subr.bf16.mxu0 %v5266_v24  ;;  %1193 = vmatprep.subr.bf16.mxu1 %v5278_v61  ;;  %v5263_v24 = vld [vmem:[%s7303_s2 + $0x190] ss:$8 sps:$4 sm:$0xff]  }
  0x3f   :  { %955 = vmatpush1.bf16.msra.mxu0 %v5264_v25  ;;  %1194 = vmatpush1.bf16.msra.mxu1 %v5276_v62  ;;  %v5252_v25 = vld [vmem:[%s7303_s2 + $0xc4] ss:$8 sps:$4 sm:$0xff]  }
  0x40   :  { %4629 = vmatprep.subr.msk.bf16.mxu0 %vm933_vm1, %v5279_v18  ;;  %1935 = vmatprep.subr.bf16.mxu1 %v7314_v0 }
  0x41   :  { %389 = vmatmul.mubr.bf16.gmra.mxu0 %v5188_v26  ;;  %745 = vmatmul.mubr.bf16.gmra.mxu1 %v5200_v27  ;;  %v5267_v26 = vld [vmem:[%s7303_s2 + $0x1a4] ss:$8 sps:$4 sm:$0xff]   ;;  %v5254_v27 = vld [vmem:[%s7303_s2 + $0xc0] ss:$8 sps:$4 sm:$0xff]  }
  0x42   :  { %4497 = vmatprep.mubr.msk.bf16.mxu0 %vm305_vm0, %v5189_v28  ;;  %4567 = vmatprep.mubr.msk.bf16.mxu1 %vm305_vm0, %v5204_v29  ;;  %v5269_v28 = vld [vmem:[%s7303_s2 + $0x1a0] ss:$8 sps:$4 sm:$0xff]   ;;  %v5258_v29 = vld [vmem:[%s7303_s2 + $0xd4] ss:$8 sps:$4 sm:$0xff]  }
  0x49   :  { %397 = vmatmul.mubr.bf16.gmra.mxu0 %v5191_v30  ;;  %753 = vmatmul.mubr.bf16.gmra.mxu1 %v5206_v31  ;;  %v5270_v30 = vld [vmem:[%s7303_s2 + $0x1b4] ss:$8 sps:$4 sm:$0xff]   ;;  %v5260_v31 = vld [vmem:[%s7303_s2 + $0xd0] ss:$8 sps:$4 sm:$0xff]  }
  0x4a   :  { %4498 = vmatprep.mubr.msk.bf16.mxu0 %vm305_vm0, %v5195_v32  ;;  %4568 = vmatprep.mubr.msk.bf16.mxu1 %vm305_vm0, %v5210_v33  ;;  %v5272_v32 = vld [vmem:[%s7303_s2 + $0x1b0] ss:$8 sps:$4 sm:$0xff]  }
  0x4b   :  { %v5281_v33 = vld [vmem:[%s7304_s1 + $0x50] ss:$8 sps:$4 sm:$0x3f]  }
  0x51   :  { %405 = vmatmul.mubr.bf16.gmra.mxu0 %v5197_v34  ;;  %761 = vmatmul.mubr.bf16.gmra.mxu1 %v5212_v35  ;;  %v1418_v34 = vsel %vm933_vm1, %v5281_v33, 0  ;;  %v5284_v35 = vld [vmem:[%s7304_s1 + $0x44] ss:$8 sps:$4 sm:$0xff]  }
  0x52   :  { %4499 = vmatprep.mubr.msk.bf16.mxu0 %vm305_vm0, %v5201_v36  ;;  %4569 = vmatprep.mubr.msk.bf16.mxu1 %vm305_vm0, %v5216_v37  ;;  %v5282_v36 = vld [vmem:[%s7304_s1 + $0x40] ss:$8 sps:$4 sm:$0xff]  }
  0x59   :  { %413 = vmatmul.mubr.bf16.gmra.mxu0 %v5203_v38  ;;  %769 = vmatmul.mubr.bf16.gmra.mxu1 %v5218_v39 }
  0x5a   :  { %4500 = vmatprep.mubr.msk.bf16.mxu0 %vm305_vm0, %v5207_v40  ;;  %4570 = vmatprep.mubr.msk.bf16.mxu1 %vm305_vm0, %v5222_v41 }
  0x61   :  { %421 = vmatmul.mubr.bf16.gmra.mxu0 %v5209_v42  ;;  %777 = vmatmul.mubr.bf16.gmra.mxu1 %v5224_v43 }
  0x62   :  { %4501 = vmatprep.mubr.msk.bf16.mxu0 %vm305_vm0, %v5213_v44  ;;  %4571 = vmatprep.mubr.msk.bf16.mxu1 %vm305_vm0, %v5228_v45 }
  0x69   :  { %429 = vmatmul.mubr.bf16.gmra.mxu0 %v5215_v46  ;;  %785 = vmatmul.mubr.bf16.gmra.mxu1 %v5230_v47 }
  0x6a   :  { %4502 = vmatprep.mubr.msk.bf16.mxu0 %vm305_vm0, %v5219_v48  ;;  %4572 = vmatprep.mubr.msk.bf16.mxu1 %vm305_vm0, %v5234_v49 }
  0x71   :  { %437 = vmatmul.mubr.bf16.gmra.mxu0 %v5221_v50  ;;  %793 = vmatmul.mubr.bf16.gmra.mxu1 %v5236_v51 }
  0x72   :  { %4503 = vmatprep.mubr.msk.bf16.mxu0 %vm305_vm0, %v5225_v52  ;;  %4573 = vmatprep.mubr.msk.bf16.mxu1 %vm305_vm0, %v5240_v53 }
  0x79   :  { %445 = vmatmul.mubr.bf16.gmra.mxu0 %v5227_v55  ;;  %801 = vmatmul.mubr.bf16.gmra.mxu1 %v5242_v57 }
  0x7a   :  { %4504 = vmatprep.mubr.msk.bf16.mxu0 %vm305_vm0, %v5231_v56  ;;  %4574 = vmatprep.mubr.msk.bf16.mxu1 %vm305_vm0, %v5249_v58 }
  0x81   :  { %453 = vmatmul.mubr.bf16.gmra.mxu0 %v5233_v63  ;;  %809 = vmatmul.mubr.bf16.gmra.mxu1 %v5251_v8 }
  0x82   :  { %4505 = vmatprep.mubr.msk.bf16.mxu0 %vm305_vm0, %v5237_v6  ;;  %4575 = vmatprep.mubr.msk.bf16.mxu1 %vm305_vm0, %v5255_v17 }
  0x89   :  { %461 = vmatmul.mubr.bf16.gmra.mxu0 %v5239_v19  ;;  %817 = vmatmul.mubr.bf16.gmra.mxu1 %v5257_v20 }
  0x8a   :  { %4506 = vmatprep.mubr.msk.bf16.mxu0 %vm305_vm0, %v5246_v21  ;;  %4576 = vmatprep.mubr.msk.bf16.mxu1 %vm305_vm0, %v5261_v22 }
  0x91   :  { %469 = vmatmul.mubr.bf16.gmra.mxu0 %v5248_v23  ;;  %825 = vmatmul.mubr.bf16.gmra.mxu1 %v5263_v24 }
  0x92   :  { %4507 = vmatprep.mubr.msk.bf16.mxu0 %vm305_vm0, %v5252_v25  ;;  %4577 = vmatprep.mubr.msk.bf16.mxu1 %vm305_vm0, %v5267_v26 }
  0x99   :  { %477 = vmatmul.mubr.bf16.gmra.mxu0 %v5254_v27  ;;  %833 = vmatmul.mubr.bf16.gmra.mxu1 %v5269_v28 }
  0x9a   :  { %4508 = vmatprep.mubr.msk.bf16.mxu0 %vm305_vm0, %v5258_v29  ;;  %4578 = vmatprep.mubr.msk.bf16.mxu1 %vm305_vm0, %v5270_v30 }
  0xa1   :  { %485 = vmatmul.mubr.bf16.gmra.mxu0 %v5260_v31  ;;  %841 = vmatmul.mubr.bf16.gmra.mxu1 %v5272_v32 }
  0xa2   :  { %972 = vmatprep.mubr.bf16.mxu0 %v7314_v0  ;;  %1211 = vmatprep.mubr.bf16.mxu1 %v7314_v0 }
  0xa9   :  { %4588 = vmatmul.mubr.msk.bf16.vlgmr.msra.gmra.mxu0 %vm890_vm2, %v5586_v10 }
  0xaa   :  { %982 = vmatprep.mubr.bf16.mxu0 %v7314_v0  ;;  %1436 = vmatpush1.bf16.msra.mxu0 %v1418_v34 }
  0xab   :  { %1437 = vmatprep.subr.bf16.mxu0 %v5284_v35 }
  0xae   :  { %1438 = vmatpush1.bf16.msra.mxu0 %v5282_v36 }
  0xaf   :  { %2168 = vmatprep.subr.bf16.mxu0 %v7314_v0 }
  0xb1   :  { %4589 = vmatmul.mubr.msk.bf16.gmra.mxu0 %vm890_vm2, %v5577_v9 }
  0xb2   :  { %992 = vmatprep.mubr.bf16.mxu0 %v7314_v0 }
  0xb9   :  { %4590 = vmatmul.mubr.msk.bf16.gmra.mxu0 %vm890_vm2, %v5564_v7 }
  0xba   :  { %1002 = vmatprep.mubr.bf16.mxu0 %v7314_v0 }
  0xc1   :  { %4591 = vmatmul.mubr.msk.bf16.gmra.mxu0 %vm890_vm2, %v5551_v5 }
  0xc2   :  { %1012 = vmatprep.mubr.bf16.mxu0 %v7314_v0 }
  0xc9   :  { %4592 = vmatmul.mubr.msk.bf16.gmra.mxu0 %vm890_vm2, %v5542_v4 }
  0xca   :  { %1022 = vmatprep.mubr.bf16.mxu0 %v7314_v0 }
  0xd1   :  { %4593 = vmatmul.mubr.msk.bf16.gmra.mxu0 %vm890_vm2, %v5533_v3 }
  0xd2   :  { %1032 = vmatprep.mubr.bf16.mxu0 %v7314_v0 }
  0xd9   :  { %4594 = vmatmul.mubr.msk.bf16.gmra.mxu0 %vm890_vm2, %v5524_v2 }
  0xda   :  { %1042 = vmatprep.mubr.bf16.mxu0 %v7314_v0 }
  0xe1   :  { %4595 = vmatmul.mubr.msk.bf16.gmra.mxu0 %vm890_vm2, %v5517_v1 }
  0xe2   :  { %1052 = vmatprep.mubr.bf16.mxu0 %v7314_v0 }
  0xe9   :  { %4596 = vmatmul.mubr.msk.bf16.gmra.mxu0 %vm890_vm2, %v5640_v16 }
  0xea   :  { %1062 = vmatprep.mubr.bf16.mxu0 %v7314_v0 }
  0xf1   :  { %4597 = vmatmul.mubr.msk.bf16.gmra.mxu0 %vm890_vm2, %v5631_v15 }
  0xf2   :  { %1072 = vmatprep.mubr.bf16.mxu0 %v7314_v0 }
  0xf9   :  { %v382_v3 = vpop.f32.mrf.mxu0  ;;  %4598 = vmatmul.mubr.msk.bf16.gmra.mxu0 %vm890_vm2, %v5622_v14  ;;  %v738_v2 = vpop.f32.mrf.mxu1 }
  0xfa   :  { %1082 = vmatprep.mubr.bf16.mxu0 %v7314_v0 }
  0xfb   :  { %v384_v1 = vpop.f32.mrf.mxu0  ;;  %v740_v4 = vpop.f32.mrf.mxu1 }
  0xfd   :  { %v385_v5 = vpop.f32.mrf.mxu0  ;;  %v741_v7 = vpop.f32.mrf.mxu1 }
  0xfe   :  { %v493_v9 = vpack.c.bf16 %v385_v5, %v382_v3  ;;  %v849_v58 = vpack.c.bf16 %v741_v7, %v738_v2 }
  0xff   :  { %v387_v10 = vpop.f32.mrf.mxu0  ;;  %v743_v16 = vpop.f32.mrf.mxu1 }
 0x100   :  { %4607 = vmatmul.mubr.msk.bf16.vlgmr.msra.gmra.mxu1 %vm890_vm2, %v493_v9 }
 0x101   :  { %v390_v37 = vpop.f32.mrf.mxu0  ;;  %4599 = vmatmul.mubr.msk.bf16.gmra.mxu0 %vm890_vm2, %v5613_v13  ;;  %1221 = vmatprep.mubr.bf16.mxu1 %v7314_v0  ;;  %v746_v15 = vpop.f32.mrf.mxu1 }
 0x102   :  { %1092 = vmatprep.mubr.bf16.mxu0 %v7314_v0 }
 0x103   :  { %v392_v14 = vpop.f32.mrf.mxu0  ;;  %v748_v38 = vpop.f32.mrf.mxu1 }
 0x105   :  { %v393_v39 = vpop.f32.mrf.mxu0  ;;  %v749_v40 = vpop.f32.mrf.mxu1 }
 0x106   :  { %v494_v41 = vpack.c.bf16 %v393_v39, %v390_v37  ;;  %v850_v18 = vpack.c.bf16 %v749_v40, %v746_v15 }
 0x107   :  { %v395_v42 = vpop.f32.mrf.mxu0  ;;  %v751_v43 = vpop.f32.mrf.mxu1 }
 0x108   :  { %4608 = vmatmul.mubr.msk.bf16.gmra.mxu1 %vm890_vm2, %v494_v41 }
 0x109   :  { %v398_v44 = vpop.f32.mrf.mxu0  ;;  %4600 = vmatmul.mubr.msk.bf16.gmra.mxu0 %vm890_vm2, %v5604_v12  ;;  %1231 = vmatprep.mubr.bf16.mxu1 %v7314_v0  ;;  %v754_v13 = vpop.f32.mrf.mxu1 }
 0x10a   :  { %1102 = vmatprep.mubr.bf16.mxu0 %v7314_v0 }
 0x10b   :  { %v400_v45 = vpop.f32.mrf.mxu0  ;;  %v756_v46 = vpop.f32.mrf.mxu1 }
 0x10c   :  { %v5286_v46 = vld [vmem:[%s7305_s4 + $0x8c] sm:$0xff]  }
 0x10d   :  { %v401_v47 = vpop.f32.mrf.mxu0  ;;  %v757_v48 = vpop.f32.mrf.mxu1 }
 0x10e   :  { %v495_v49 = vpack.c.bf16 %v401_v47, %v398_v44  ;;  %v851_v28 = vpack.c.bf16 %v757_v48, %v754_v13  ;;  %v5285_v44 = vld [vmem:[%s7305_s4 + $0x38] sm:$0xff]  }
 0x10f   :  { %v403_v50 = vpop.f32.mrf.mxu0  ;;  %v759_v51 = vpop.f32.mrf.mxu1  ;;  %1936 = vmatpush1.bf16.msra.mxu1 %v5285_v44 }
 0x110   :  { %4609 = vmatmul.mubr.msk.bf16.gmra.mxu1 %vm890_vm2, %v495_v49  ;;  %1937 = vmatprep.subr.bf16.mxu1 %v7314_v0  ;;  %v5287_v51 = vld [vmem:[%s7305_s4 + $0x30] sm:$0xff]  }
 0x111   :  { %v406_v52 = vpop.f32.mrf.mxu0  ;;  %4601 = vmatmul.mubr.msk.bf16.gmra.mxu0 %vm890_vm2, %v5595_v11  ;;  %1241 = vmatprep.mubr.bf16.mxu1 %v7314_v0  ;;  %v762_v12 = vpop.f32.mrf.mxu1 }
 0x112   :  { %1455 = vmatprep.mubr.bf16.mxu0 %v7314_v0 }
 0x113   :  { %v408_v53 = vpop.f32.mrf.mxu0  ;;  %v764_v54 = vpop.f32.mrf.mxu1  ;;  %1938 = vmatpush1.bf16.msra.mxu1 %v5287_v51 }
 0x114   :  { %1939 = vmatprep.subr.bf16.mxu1 %v7314_v0 }
 0x115   :  { %v409_v55 = vpop.f32.mrf.mxu0  ;;  %v765_v56 = vpop.f32.mrf.mxu1 }
 0x116   :  { %v496_v57 = vpack.c.bf16 %v409_v55, %v406_v52  ;;  %v852_v2 = vpack.c.bf16 %v765_v56, %v762_v12  ;;  %v5288_v52 = vld [vmem:[%s7305_s4 + $0x84] sm:$0xff]  }
 0x117   :  { %v411_v59 = vpop.f32.mrf.mxu0  ;;  %v767_v60 = vpop.f32.mrf.mxu1  ;;  %v5289_v56 = vld [vmem:[%s7305_s4 + $0x28] sm:$0xff]  }
 0x118   :  { %4610 = vmatmul.mubr.msk.bf16.gmra.mxu1 %vm890_vm2, %v496_v57  ;;  %v5290_v57 = vld [vmem:[%s7305_s4 + $0x7c] sm:$0xff]  }
 0x119   :  { %v414_v61 = vpop.f32.mrf.mxu0  ;;  %4630 = vmatmul.mubr.msk.bf16.vlgmr.msra.gmra.mxu0 %vm890_vm2, %v849_v58  ;;  %1251 = vmatprep.mubr.bf16.mxu1 %v7314_v0  ;;  %v770_v11 = vpop.f32.mrf.mxu1 }
 0x11a   :  { %1465 = vmatprep.mubr.bf16.mxu0 %v7314_v0  ;;  %2169 = vmatpush1.bf16.msra.mxu0 %v5286_v46  ;;  %v5303_v46 = vld [vmem:[%s7305_s4 + $0x48] sm:$0xff]  }
 0x11b   :  { %v416_v62 = vpop.f32.mrf.mxu0  ;;  %v772_v63 = vpop.f32.mrf.mxu1  ;;  %2170 = vmatprep.subr.bf16.mxu0 %v7314_v0  ;;  %1940 = vmatpush1.bf16.msra.mxu1 %v5289_v56 }
 0x11c   :  { %1941 = vmatprep.subr.bf16.mxu1 %v7314_v0  ;;  %v5291_v63 = vld [vmem:[%s7305_s4 + $0x20] sm:$0xff]  }
 0x11d   :  { %v417_v6 = vpop.f32.mrf.mxu0  ;;  %v773_v8 = vpop.f32.mrf.mxu1 }
 0x11e   :  { %v497_v17 = vpack.c.bf16 %v417_v6, %v414_v61  ;;  %v853_v14 = vpack.c.bf16 %v773_v8, %v770_v11  ;;  %2171 = vmatpush1.bf16.msra.mxu0 %v5288_v52  ;;  %v5292_v6 = vld [vmem:[%s7305_s4 + $0x74] sm:$0xff]   ;;  %v5305_v52 = vld [vmem:[%s7305_s4 + $0x40] sm:$0xff]  }
 0x11f   :  { %v419_v19 = vpop.f32.mrf.mxu0  ;;  %v775_v20 = vpop.f32.mrf.mxu1  ;;  %2172 = vmatprep.subr.bf16.mxu0 %v7314_v0  ;;  %1942 = vmatpush1.bf16.msra.mxu1 %v5291_v63 }
 0x120   :  { %4611 = vmatmul.mubr.msk.bf16.gmra.mxu1 %vm890_vm2, %v497_v17  ;;  %1943 = vmatprep.subr.bf16.mxu1 %v7314_v0  ;;  %v5293_v20 = vld [vmem:[%s7305_s4 + $0x18] sm:$0xff]  }
 0x121   :  { %v422_v21 = vpop.f32.mrf.mxu0  ;;  %4631 = vmatmul.mubr.msk.bf16.gmra.mxu0 %vm890_vm2, %v850_v18  ;;  %1261 = vmatprep.mubr.bf16.mxu1 %v7314_v0  ;;  %v5936_v22 = vpop.f32.mrf.mxu1 }
 0x122   :  { %1475 = vmatprep.mubr.bf16.mxu0 %v7314_v0  ;;  %2173 = vmatpush1.bf16.msra.mxu0 %v5290_v57 }
 0x123   :  { %v424_v23 = vpop.f32.mrf.mxu0  ;;  %v780_v24 = vpop.f32.mrf.mxu1  ;;  %2174 = vmatprep.subr.bf16.mxu0 %v7314_v0  ;;  %1944 = vmatpush1.bf16.msra.mxu1 %v5293_v20 }
 0x124   :  { %1945 = vmatprep.subr.bf16.mxu1 %v7314_v0 }
 0x125   :  { %v425_v25 = vpop.f32.mrf.mxu0  ;;  %v781_v26 = vpop.f32.mrf.mxu1 }
 0x126   :  { %v498_v27 = vpack.c.bf16 %v425_v25, %v422_v21  ;;  %v854_v48 = vpack.c.bf16 %v781_v26, %v5936_v22  ;;  %2175 = vmatpush1.bf16.msra.mxu0 %v5292_v6  ;;  %v5294_v21 = vld [vmem:[%s7305_s4 + $0x6c] sm:$0xff]  }
 0x127   :  { %v427_v29 = vpop.f32.mrf.mxu0  ;;  %v783_v30 = vpop.f32.mrf.mxu1  ;;  %2176 = vmatprep.subr.bf16.mxu0 %v7314_v0 }
 0x128   :  { %4612 = vmatmul.mubr.msk.bf16.gmra.mxu1 %vm890_vm2, %v498_v27  ;;  %v5296_v29 = vld [vmem:[%s7305_s4 + $0x64] sm:$0xff]  }
 0x129   :  { %v430_v31 = vpop.f32.mrf.mxu0  ;;  %4632 = vmatmul.mubr.msk.bf16.gmra.mxu0 %vm890_vm2, %v851_v28  ;;  %1271 = vmatprep.mubr.bf16.mxu1 %v7314_v0  ;;  %v5942_v32 = vpop.f32.mrf.mxu1  ;;  %v5295_v28 = vld [vmem:[%s7305_s4 + $0x10] sm:$0xff]  }
 0x12a   :  { %1485 = vmatprep.mubr.bf16.mxu0 %v7314_v0  ;;  %2177 = vmatpush1.bf16.msra.mxu0 %v5294_v21 }
 0x12b   :  { %v432_v33 = vpop.f32.mrf.mxu0  ;;  %v788_v34 = vpop.f32.mrf.mxu1  ;;  %2178 = vmatprep.subr.bf16.mxu0 %v7314_v0  ;;  %1946 = vmatpush1.bf16.msra.mxu1 %v5295_v28 }
 0x12c   :  { %1947 = vmatprep.subr.bf16.mxu1 %v7314_v0  ;;  %v5297_v34 = vld [vmem:[%s7305_s4 + $0x8] sm:$0xff]  }
 0x12d   :  { %v433_v35 = vpop.f32.mrf.mxu0  ;;  %v5945_v36 = vpop.f32.mrf.mxu1 }
 0x12e   :  { %v499_v3 = vpack.c.bf16 %v433_v35, %v430_v31  ;;  %v855_v61 = vpack.c.bf16 %v5945_v36, %v5942_v32  ;;  %2179 = vmatpush1.bf16.msra.mxu0 %v5296_v29  ;;  %v5298_v35 = vld [vmem:[%s7305_s4 + $0x5c] sm:$0xff]  }
 0x12f   :  { %v435_v1 = vpop.f32.mrf.mxu0  ;;  %v791_v4 = vpop.f32.mrf.mxu1  ;;  %2180 = vmatprep.subr.bf16.mxu0 %v7314_v0  ;;  %1948 = vmatpush1.bf16.msra.mxu1 %v5297_v34 }
 0x130   :  { %4613 = vmatmul.mubr.msk.bf16.gmra.mxu1 %vm890_vm2, %v499_v3  ;;  %1949 = vmatprep.subr.bf16.mxu1 %v7314_v0 }
 0x131   :  { %v438_v5 = vpop.f32.mrf.mxu0  ;;  %4633 = vmatmul.mubr.msk.bf16.gmra.mxu0 %vm890_vm2, %v852_v2  ;;  %1281 = vmatprep.mubr.bf16.mxu1 %v7314_v0  ;;  %v5950_v7 = vpop.f32.mrf.mxu1 }
 0x132   :  { %1495 = vmatprep.mubr.bf16.mxu0 %v7314_v0  ;;  %2181 = vmatpush1.bf16.msra.mxu0 %v5298_v35 }
 0x133   :  { %v440_v9 = vpop.f32.mrf.mxu0  ;;  %v796_v10 = vpop.f32.mrf.mxu1  ;;  %2182 = vmatprep.subr.bf16.mxu0 %v7314_v0 }
 0x134   :  { %v5300_v9 = vld [vmem:[%s7305_s4 + $0x54] sm:$0xff]  }
 0x135   :  { %v441_v16 = vpop.f32.mrf.mxu0  ;;  %v5953_v37 = vpop.f32.mrf.mxu1 }
 0x136   :  { %v500_v15 = vpack.c.bf16 %v441_v16, %v438_v5  ;;  %v856_v25 = vpack.c.bf16 %v5953_v37, %v5950_v7  ;;  %v5299_v7 = vld [vmem:[%s7305_s4] sm:$0xff]   ;;  %2183 = vmatpush1.bf16.msra.mxu0 %v5300_v9 }
 0x137   :  { %v443_v38 = vpop.f32.mrf.mxu0  ;;  %v799_v39 = vpop.f32.mrf.mxu1  ;;  %1950 = vmatpush1.bf16.msra.mxu1 %v5299_v7  ;;  %2194 = vmatprep.subr.bf16.mxu0 %v7314_v0 }
 0x138   :  { %4614 = vmatmul.mubr.msk.bf16.gmra.mxu1 %vm890_vm2, %v500_v15  ;;  %1961 = vmatprep.subr.bf16.mxu1 %v7314_v0  ;;  %v5302_v38 = vld [vmem:[%s7305_s4 + $0xa4] ss:$0 sps:$4 sm:$0xff]  }
 0x139   :  { %v446_v40 = vpop.f32.mrf.mxu0  ;;  %4634 = vmatmul.mubr.msk.bf16.gmra.mxu0 %vm890_vm2, %v853_v14  ;;  %1291 = vmatprep.mubr.bf16.mxu1 %v7314_v0  ;;  %v5958_v41 = vpop.f32.mrf.mxu1  ;;  %v5301_v14 = vld [vmem:[%s7305_s4 + $0x50] ss:$0 sps:$4 sm:$0xff]  }
 0x13a   :  { %1505 = vmatprep.mubr.bf16.mxu0 %v7314_v0 }
 0x13b   :  { %v448_v42 = vpop.f32.mrf.mxu0  ;;  %v804_v43 = vpop.f32.mrf.mxu1 }
 0x13c   :  { %v2166_v42 = vsel %vm1931_vm3, %v5302_v38, 0 }
 0x13d   :  { %v449_v13 = vpop.f32.mrf.mxu0  ;;  %v5964_v45 = vpop.f32.mrf.mxu1  ;;  %2195 = vmatpush2.bf16.msra.mxu0 %v2166_v42 }
 0x13e   :  { %v501_v47 = vpack.c.bf16 %v449_v13, %v446_v40  ;;  %v857_v1 = vpack.c.bf16 %v5964_v45, %v5958_v41  ;;  %v1933_v41 = vsel %vm1931_vm3, %v5301_v14, 0  ;;  %2196 = vmatprep.subr.bf16.mxu0 %v7314_v0 }
 0x13f   :  { %v451_v49 = vpop.f32.mrf.mxu0  ;;  %v807_v50 = vpop.f32.mrf.mxu1  ;;  %1962 = vmatpush2.bf16.msra.mxu1 %v1933_v41 }
 0x140   :  { %4615 = vmatmul.mubr.msk.bf16.gmra.mxu1 %vm890_vm2, %v501_v47  ;;  %1963 = vmatprep.subr.bf16.mxu1 %v7314_v0  ;;  %v5304_v47 = vld [vmem:[%s7305_s4 + $0x9c] sm:$0xff]  }
 0x141   :  { %v454_v12 = vpop.f32.mrf.mxu0  ;;  %4635 = vmatmul.mubr.msk.bf16.gmra.mxu0 %vm890_vm2, %v854_v48  ;;  %1301 = vmatprep.mubr.bf16.mxu1 %v7314_v0  ;;  %v5981_v53 = vpop.f32.mrf.mxu1 }
 0x142   :  { %1515 = vmatprep.mubr.bf16.mxu0 %v7314_v0  ;;  %2197 = vmatpush2.bf16.msra.mxu0 %v5304_v47 }
 0x143   :  { %v456_v54 = vpop.f32.mrf.mxu0  ;;  %v812_v55 = vpop.f32.mrf.mxu1  ;;  %1964 = vmatpush2.bf16.msra.mxu1 %v5303_v46  ;;  %2198 = vmatprep.subr.bf16.mxu0 %v7314_v0 }
 0x144   :  { %1965 = vmatprep.subr.bf16.mxu1 %v7314_v0 }
 0x145   :  { %v457_v58 = vpop.f32.mrf.mxu0  ;;  %v5992_v59 = vpop.f32.mrf.mxu1 }
 0x146   :  { %v502_v60 = vpack.c.bf16 %v457_v58, %v454_v12  ;;  %v858_v44 = vpack.c.bf16 %v5992_v59, %v5981_v53  ;;  %v5306_v12 = vld [vmem:[%s7305_s4 + $0x94] sm:$0xff]  }
 0x147   :  { %v459_v11 = vpop.f32.mrf.mxu0  ;;  %v815_v62 = vpop.f32.mrf.mxu1  ;;  %1966 = vmatpush2.bf16.msra.mxu1 %v5305_v52  ;;  %2199 = vmatpush2.bf16.msra.mxu0 %v5306_v12 }
 0x148   :  { %4616 = vmatmul.mubr.msk.bf16.gmra.mxu1 %vm890_vm2, %v502_v60  ;;  %2453 = vmatprep.subr.bf16.mxu1 %v7314_v0 }
 0x149   :  { %v462_v8 = vpop.f32.mrf.mxu0  ;;  %4636 = vmatmul.mubr.msk.bf16.gmra.mxu0 %vm890_vm2, %v855_v61  ;;  %1311 = vmatprep.mubr.bf16.mxu1 %v7314_v0  ;;  %v6007_v17 = vpop.f32.mrf.mxu1 }
 0x14a   :  { %1525 = vmatprep.mubr.bf16.mxu0 %v7314_v0 }
 0x14b   :  { %v464_v18 = vpop.f32.mrf.mxu0  ;;  %v820_v19 = vpop.f32.mrf.mxu1 }
 0x14d   :  { %v465_v22 = vpop.f32.mrf.mxu0  ;;  %v6018_v23 = vpop.f32.mrf.mxu1 }
 0x14e   :  { %v503_v24 = vpack.c.bf16 %v465_v22, %v462_v8  ;;  %v859_v56 = vpack.c.bf16 %v6018_v23, %v6007_v17 }
 0x14f   :  { %v467_v26 = vpop.f32.mrf.mxu0  ;;  %v823_v27 = vpop.f32.mrf.mxu1 }
 0x150   :  { %4617 = vmatmul.mubr.msk.bf16.gmra.mxu1 %vm890_vm2, %v503_v24 }
 0x151   :  { %v470_v30 = vpop.f32.mrf.mxu0  ;;  %4637 = vmatmul.mubr.msk.bf16.gmra.mxu0 %vm890_vm2, %v856_v25  ;;  %1321 = vmatprep.mubr.bf16.mxu1 %v7314_v0  ;;  %v6033_v31 = vpop.f32.mrf.mxu1 }
 0x152   :  { %1535 = vmatprep.mubr.bf16.mxu0 %v7314_v0 }
 0x153   :  { %v472_v32 = vpop.f32.mrf.mxu0  ;;  %v828_v33 = vpop.f32.mrf.mxu1 }
 0x155   :  { %v473_v36 = vpop.f32.mrf.mxu0  ;;  %v6044_v3 = vpop.f32.mrf.mxu1 }
 0x156   :  { %v504_v2 = vpack.c.bf16 %v473_v36, %v470_v30  ;;  %v860_v11 = vpack.c.bf16 %v6044_v3, %v6033_v31 }
 0x157   :  { %v475_v4 = vpop.f32.mrf.mxu0  ;;  %v831_v5 = vpop.f32.mrf.mxu1 }
 0x158   :  { %4618 = vmatmul.mubr.msk.bf16.gmra.mxu1 %vm890_vm2, %v504_v2 }
 0x159   :  { %v478_v10 = vpop.f32.mrf.mxu0  ;;  %4638 = vmatmul.mubr.msk.bf16.gmra.mxu0 %vm890_vm2, %v857_v1  ;;  %1331 = vmatprep.mubr.bf16.mxu1 %v7314_v0  ;;  %v6059_v16 = vpop.f32.mrf.mxu1 }
 0x15a   :  { %1545 = vmatprep.mubr.bf16.mxu0 %v7314_v0 }
 0x15b   :  { %v480_v37 = vpop.f32.mrf.mxu0  ;;  %v836_v15 = vpop.f32.mrf.mxu1 }
 0x15d   :  { %v481_v39 = vpop.f32.mrf.mxu0  ;;  %v837_v40 = vpop.f32.mrf.mxu1 }
 0x15e   :  { %v505_v43 = vpack.c.bf16 %v481_v39, %v478_v10  ;;  %v861_v17 = vpack.c.bf16 %v837_v40, %v6059_v16 }
 0x15f   :  { %v483_v13 = vpop.f32.mrf.mxu0  ;;  %v839_v45 = vpop.f32.mrf.mxu1 }
 0x160   :  { %4619 = vmatmul.mubr.msk.bf16.gmra.mxu1 %vm890_vm2, %v505_v43 }
 0x161   :  { %v486_v48 = vpop.f32.mrf.mxu0  ;;  %4639 = vmatmul.mubr.msk.bf16.gmra.mxu0 %vm890_vm2, %v858_v44  ;;  %1341 = vmatprep.mubr.bf16.mxu1 %v7314_v0  ;;  %v842_v49 = vpop.f32.mrf.mxu1 }
 0x162   :  { %1555 = vmatprep.mubr.bf16.mxu0 %v7314_v0 }
 0x163   :  { %v488_v50 = vpop.f32.mrf.mxu0  ;;  %v844_v51 = vpop.f32.mrf.mxu1 }
 0x165   :  { %v489_v53 = vpop.f32.mrf.mxu0  ;;  %v845_v54 = vpop.f32.mrf.mxu1 }
 0x166   :  { %v506_v55 = vpack.c.bf16 %v489_v53, %v486_v48  ;;  %v862_v22 = vpack.c.bf16 %v845_v54, %v842_v49 }
 0x167   :  { %v491_v57 = vpop.f32.mrf.mxu0  ;;  %v847_v58 = vpop.f32.mrf.mxu1 }
 0x168   :  { %4620 = vmatmul.mubr.msk.bf16.gmra.mxu1 %vm890_vm2, %v506_v55 }
 0x169   :  { %v6096_v59 = vpop.f32.mrf.mxu0  ;;  %4640 = vmatmul.mubr.msk.bf16.gmra.mxu0 %vm890_vm2, %v859_v56 }
 0x16a   :  { %1565 = vmatprep.mubr.bf16.mxu0 %v7314_v0 }
 0x16b   :  { %v6100_v60 = vpop.f32.mrf.mxu0 }
 0x16d   :  { %v6102_v61 = vpop.f32.mrf.mxu0 }
 0x16f   :  { %v6106_v62 = vpop.f32.mrf.mxu0 }
 0x171   :  { %v6108_v63 = vpop.f32.mrf.mxu0  ;;  %4641 = vmatmul.mubr.msk.bf16.gmra.mxu0 %vm890_vm2, %v860_v11 }
 0x172   :  { %1575 = vmatprep.mubr.bf16.mxu0 %v7314_v0 }
 0x173   :  { %v6112_v6 = vpop.f32.mrf.mxu0 }
 0x175   :  { %v6114_v8 = vpop.f32.mrf.mxu0 }
 0x177   :  { %v6117_v18 = vpop.f32.mrf.mxu0 }
 0x179   :  { %v6119_v19 = vpop.f32.mrf.mxu0  ;;  %4642 = vmatmul.mubr.msk.bf16.gmra.mxu0 %vm890_vm2, %v861_v17 }
 0x17a   :  { %1585 = vmatprep.mubr.bf16.mxu0 %v7314_v0 }
 0x17b   :  { %v6123_v20 = vpop.f32.mrf.mxu0 }
 0x17d   :  { %v6125_v21 = vpop.f32.mrf.mxu0 }
 0x17f   :  { %v6127_v23 = vpop.f32.mrf.mxu0 }
 0x181   :  { %v6129_v24 = vpop.f32.mrf.mxu0  ;;  %4643 = vmatmul.mubr.msk.bf16.gmra.mxu0 %vm890_vm2, %v862_v22  ;;  %v1654_v22 = vlaneseq }
 0x183   :  { %v6132_v25 = vpop.f32.mrf.mxu0 }
 0x185   :  { %v6134_v26 = vpop.f32.mrf.mxu0 }
 0x187   :  { %v6136_v27 = vpop.f32.mrf.mxu0 }
 0x189   :  { %v6138_v28 = vpop.f32.mrf.mxu0 }
 0x18b   :  { %v6140_v29 = vpop.f32.mrf.mxu0 }
 0x18d   :  { %v6142_v30 = vpop.f32.mrf.mxu0 }
 0x18f   :  { %v6144_v31 = vpop.f32.mrf.mxu0 }
 0x191   :  { %v6146_v32 = vpop.f32.mrf.mxu0 }
 0x193   :  { %v6148_v33 = vpop.f32.mrf.mxu0 }
 0x195   :  { %v6150_v34 = vpop.f32.mrf.mxu0 }
 0x197   :  { %v6152_v35 = vpop.f32.mrf.mxu0 }
 0x199   :  { %v6154_v36 = vpop.f32.mrf.mxu0 }
 0x19b   :  { %v6156_v3 = vpop.f32.mrf.mxu0 }
 0x19d   :  { %v6158_v2 = vpop.f32.mrf.mxu0 }
 0x19f   :  { %v6160_v1 = vpop.f32.mrf.mxu0 }
 0x1a1   :  { %v6162_v4 = vpop.f32.mrf.mxu0 }
 0x1a3   :  { %v6164_v5 = vpop.f32.mrf.mxu0 }
 0x1a5   :  { %v6166_v7 = vpop.f32.mrf.mxu0 }
 0x1a7   :  { %v6168_v9 = vpop.f32.mrf.mxu0 }
 0x1a9   :  { %v6170_v10 = vpop.f32.mrf.mxu0 }
 0x1aa   :  { %7319 = vst [vmem:[#allocation2_spill] sm:$0xff] %v6170_v10 }
 0x1ab   :  { %v6172_v16 = vpop.f32.mrf.mxu0 }
 0x1ad   :  { %v6174_v37 = vpop.f32.mrf.mxu0 }
 0x1ae   :  { %7320 = vst [vmem:[#allocation3_spill] sm:$0xff] %v6174_v37 }
 0x1af   :  { %v6176_v15 = vpop.f32.mrf.mxu0 }
 0x1b0   :  { %7321 = vst [vmem:[#allocation4_spill] sm:$0xff] %v6176_v15 }
 0x1b1   :  { %v6178_v14 = vpop.f32.mrf.mxu0 }
 0x1b2   :  { %7322 = vst [vmem:[#allocation5_spill] sm:$0xff] %v6178_v14 }
 0x1b3   :  { %v6180_v38 = vpop.f32.mrf.mxu0 }
 0x1b4   :  { %7323 = vst [vmem:[#allocation6_spill] sm:$0xff] %v6180_v38 }
 0x1b5   :  { %v6182_v39 = vpop.f32.mrf.mxu0 }
 0x1b6   :  { %7324 = vst [vmem:[#allocation7_spill] sm:$0xff] %v6182_v39 }
 0x1b7   :  { %v6184_v40 = vpop.f32.mrf.mxu0 }
 0x1b8   :  { %7325 = vst [vmem:[#allocation8_spill] sm:$0xff] %v6184_v40 }
 0x1b9   :  { %v6186_v41 = vpop.f32.mrf.mxu0 }
 0x1ba   :  { %7326 = vst [vmem:[#allocation9_spill] sm:$0xff] %v6186_v41 }
 0x1bb   :  { %v6188_v42 = vpop.f32.mrf.mxu0 }
 0x1bc   :  { %7327 = vst [vmem:[#allocation10_spill] sm:$0xff] %v6188_v42 }
 0x1bd   :  { %v6190_v43 = vpop.f32.mrf.mxu0 }
 0x1be   :  { %7328 = vst [vmem:[#allocation11_spill] sm:$0xff] %v6190_v43 }
 0x1bf   :  { %v6192_v44 = vpop.f32.mrf.mxu0 }
 0x1c0   :  { %7329 = vst [vmem:[#allocation12_spill] sm:$0xff] %v6192_v44  ;;  %v1213_v13 = vpop.f32.mrf.mxu1 }
 0x1c1   :  { %v6194_v45 = vpop.f32.mrf.mxu0 }
 0x1c2   :  { %7330 = vst [vmem:[#allocation13_spill] sm:$0xff] %v6194_v45  ;;  %v1215_v46 = vpop.f32.mrf.mxu1 }
 0x1c3   :  { %v6196_v47 = vpop.f32.mrf.mxu0  ;;  %v1216_v43 = vadd.f32 %v1215_v46, %v6100_v60 }
 0x1c4   :  { %7331 = vst [vmem:[#allocation14_spill] sm:$0xff] %v6196_v47  ;;  %v1217_v48 = vpop.f32.mrf.mxu1 }
 0x1c5   :  { %v6198_v49 = vpop.f32.mrf.mxu0 }
 0x1c6   :  { %7332 = vst [vmem:[#allocation15_spill] sm:$0xff] %v6198_v49  ;;  %v1219_v50 = vpop.f32.mrf.mxu1 }
 0x1c7   :  { %v6200_v51 = vpop.f32.mrf.mxu0  ;;  %v1220_v38 = vadd.f32 %v1219_v50, %v6106_v62 }
 0x1c8   :  { %7333 = vst [vmem:[#allocation16_spill] sm:$0xff] %v6200_v51  ;;  %v1223_v52 = vpop.f32.mrf.mxu1 }
 0x1c9   :  { %v6202_v12 = vpop.f32.mrf.mxu0  ;;  %v1224_v62 = vadd.f32 %v1223_v52, %v6108_v63 }
 0x1ca   :  { %7334 = vst [vmem:[#allocation17_spill] sm:$0xff] %v6202_v12  ;;  %v1225_v53 = vpop.f32.mrf.mxu1 }
 0x1cb   :  { %v6204_v54 = vpop.f32.mrf.mxu0 }
 0x1cc   :  { %7335 = vst [vmem:[#allocation18_spill] sm:$0xff] %v6204_v54  ;;  %v1227_v55 = vpop.f32.mrf.mxu1  ;;  %v6222_v54 = vshrl.u32 %v1654_v22, 7  ;;  %v1214_v22 = vadd.f32 %v1213_v13, %v6096_v59 }
 0x1cd   :  { %v6206_v56 = vpop.f32.mrf.mxu0 }
 0x1ce   :  { %7336 = vst [vmem:[#allocation19_spill] sm:$0xff] %v6206_v56  ;;  %v1229_v57 = vpop.f32.mrf.mxu1  ;;  %7341 = vst [vmem:[#allocation24_spill] sm:$0xff] %v6222_v54  ;;  %v7316_v47 = vsub.s32 1, %v6222_v54  ;;  %v7343_v60 = vsub.s32 0, %v6222_v54 }
 0x1cf   :  { %v6208_v58 = vpop.f32.mrf.mxu0 }
 0x1d0   :  { %7337 = vst [vmem:[#allocation20_spill] sm:$0xff] %v6208_v58  ;;  %v6210_v11 = vpop.f32.mrf.mxu1 }
 0x1d1   :  { %v6212_v17 = vpop.f32.mrf.mxu0 }
 0x1d2   :  { %7338 = vst [vmem:[#allocation21_spill] sm:$0xff] %v6212_v17  ;;  %v6214_v0 = vpop.f32.mrf.mxu1 }
 0x1d3   :  { %v6216_v51 = vpop.f32.mrf.mxu0 }
 0x1d4   :  { %7339 = vst [vmem:[#allocation22_spill] sm:$0xff] %v6216_v51  ;;  %v6218_v49 = vpop.f32.mrf.mxu1  ;;  %v1652_v51 = vld [vmem:[%s7306_s3] sm:$0x3] }
 0x1d5   :  { %v6220_v12 = vpop.f32.mrf.mxu0  ;;  %v6242_v40 = vrot.slane %v1652_v51, %v7316_v47  ;;  %v6248_v46 = vrot.slane %v1652_v51, %v7343_v60  ;;  %v1226_v51 = vadd.f32 %v1225_v53, %v6112_v6  ;;  %v1230_v6 = vadd.f32 %v1229_v57, %v6117_v18 }
 0x1d6   :  { %7340 = vst [vmem:[#allocation23_spill] sm:$0xff] %v6220_v12  ;;  %v6224_v45 = vpop.f32.mrf.mxu1 }
 0x1d7   :  { %v6226_v56 = vpop.f32.mrf.mxu0 }
 0x1d8   :  { %7342 = vst [vmem:[#allocation25_spill] sm:$0xff] %v6226_v56  ;;  %v6228_v58 = vpop.f32.mrf.mxu1  ;;  %v1218_v56 = vadd.f32 %v1217_v48, %v6102_v61 }
 0x1d9   :  { %v1457_v17 = vpop.f32.mrf.mxu0 }
 0x1da   :  { %v6236_v12 = vpop.f32.mrf.mxu1  ;;  %v1596_v44 = vadd.f32 %v1457_v17, %v1214_v22 }
 0x1db   :  { %v1459_v41 = vpop.f32.mrf.mxu0 }
 0x1dc   :  { %v1597_v42 = vadd.f32 %v1459_v41, %v1216_v43  ;;  %v6244_v39 = vpop.f32.mrf.mxu1  ;;  %v1664_v17 = vadd.f32 %v6248_v46, %v1596_v44 }
 0x1dd   :  { %v1461_v14 = vpop.f32.mrf.mxu0 }
 0x1de   :  { %v1598_v15 = vadd.f32 %v1461_v14, %v1218_v56  ;;  %v6251_v59 = vpop.f32.mrf.mxu1  ;;  %v1665_v61 = vadd.f32 %v6242_v40, %v1597_v42  ;;  %v1228_v42 = vadd.f32 %v1227_v55, %v6114_v8  ;;  %v1720_v54 = vmax.f32 %v1664_v17, 0.0 }
 0x1df   :  { %v1463_v13 = vpop.f32.mrf.mxu0 }
 0x1e0   :  { %v1666_v41 = vadd.f32 %v6248_v46, %v1598_v15  ;;  %v1599_v43 = vadd.f32 %v1463_v13, %v1220_v38  ;;  %v6255_v48 = vpop.f32.mrf.mxu1  ;;  %v1721_v56 = vmax.f32 %v1665_v61, 0.0 }
 0x1e1   :  { %v1467_v22 = vpop.f32.mrf.mxu0 }
 0x1e2   :  { %v1667_v60 = vadd.f32 %v6242_v40, %v1599_v43  ;;  %v6260_v47 = vpop.f32.mrf.mxu1  ;;  %v1722_v14 = vmax.f32 %v1666_v41, 0.0  ;;  %v1600_v44 = vadd.f32 %v1467_v22, %v1224_v62  ;;  %v1234_v22 = vadd.f32 %v6210_v11, %v6119_v19 }
 0x1e3   :  { %v1469_v50 = vpop.f32.mrf.mxu0  ;;  %v1238_v62 = vadd.f32 %v6218_v49, %v6125_v21 }
 0x1e4   :  { %v1723_v15 = vmax.f32 %v1667_v60, 0.0  ;;  %v1601_v38 = vadd.f32 %v1469_v50, %v1226_v51  ;;  %v6264_v13 = vpop.f32.mrf.mxu1  ;;  %v1776_v63 = vpack.c.bf16 %v1722_v14, %v1720_v54  ;;  %v1668_v17 = vadd.f32 %v6248_v46, %v1600_v44 }
 0x1e5   :  { %v1471_v37 = vpop.f32.mrf.mxu0 }
 0x1e6   :  { %v1777_v53 = vpack.c.bf16 %v1723_v15, %v1721_v56  ;;  %v1602_v43 = vadd.f32 %v1471_v37, %v1228_v42  ;;  %v6267_v10 = vpop.f32.mrf.mxu1  ;;  %v1669_v41 = vadd.f32 %v6242_v40, %v1601_v38  ;;  %v1236_v37 = vadd.f32 %v6214_v0, %v6123_v20 }
 0x1e7   :  { %v1473_v52 = vpop.f32.mrf.mxu0  ;;  %v1724_v15 = vmax.f32 %v1668_v17, 0.0  ;;  %v1240_v20 = vadd.f32 %v6224_v45, %v6127_v23  ;;  %v1246_v45 = vadd.f32 %v6236_v12, %v6132_v25  ;;  %v1250_v12 = vadd.f32 %v6251_v59, %v6136_v27 }
 0x1e8   :  { %v1670_v8 = vadd.f32 %v6248_v46, %v1602_v43  ;;  %v1603_v55 = vadd.f32 %v1473_v52, %v1230_v6  ;;  %v6271_v61 = vpop.f32.mrf.mxu1  ;;  %4655 = vmatprep.mubr.msk.bf16.mxu1 %vm1888_vm4, %v1777_v53  ;;  %4701 = vmatprep.mubr.msk.bf16.mxu0 %vm1888_vm4, %v1777_v53  ;;  %v1725_v14 = vmax.f32 %v1669_v41, 0.0  ;;  %v1256_v59 = vadd.f32 %v6260_v47, %v6140_v29 }
 0x1e9   :  { %v1477_v18 = vpop.f32.mrf.mxu0  ;;  %1968 = vmatmul.mubr.bf16.vlgmr.msra.gmra.mxu1 %v1776_v63  ;;  %2201 = vmatmul.mubr.bf16.vlgmr.msra.gmra.mxu0 %v1776_v63  ;;  %v1260_v47 = vadd.f32 %v6267_v10, %v6144_v31 }
 0x1ea   :  { %v1671_v54 = vadd.f32 %v6242_v40, %v1603_v55  ;;  %v6279_v57 = vpop.f32.mrf.mxu1  ;;  %v1726_v51 = vmax.f32 %v1670_v8, 0.0  ;;  %v1604_v38 = vadd.f32 %v1477_v18, %v1234_v22  ;;  %v1244_v55 = vadd.f32 %v6228_v58, %v6129_v24 }
 0x1eb   :  { %v1479_v60 = vpop.f32.mrf.mxu0  ;;  %v1266_v10 = vadd.f32 %v6279_v57, %v6148_v33 }
 0x1ec   :  { %v1727_v50 = vmax.f32 %v1671_v54, 0.0  ;;  %v1605_v42 = vadd.f32 %v1479_v60, %v1236_v37  ;;  %v6285_v56 = vpop.f32.mrf.mxu1  ;;  %v1778_v19 = vpack.c.bf16 %v1726_v51, %v1724_v15  ;;  %v1672_v52 = vadd.f32 %v6248_v46, %v1604_v38 }
 0x1ed   :  { %v1481_v0 = vpop.f32.mrf.mxu0  ;;  %v1248_v37 = vadd.f32 %v6244_v39, %v6134_v26 }
 0x1ee   :  { %v1779_v44 = vpack.c.bf16 %v1727_v50, %v1725_v14  ;;  %v1606_v6 = vadd.f32 %v1481_v0, %v1238_v62  ;;  %v6289_v53 = vpop.f32.mrf.mxu1  ;;  %v1673_v43 = vadd.f32 %v6242_v40, %v1605_v42  ;;  %v1728_v62 = vmax.f32 %v1672_v52, 0.0 }
 0x1ef   :  { %v1483_v11 = vpop.f32.mrf.mxu0  ;;  %v1270_v57 = vadd.f32 %v6289_v53, %v6152_v35 }
 0x1f0   :  { %v1674_v21 = vadd.f32 %v6248_v46, %v1606_v6  ;;  %v1607_v49 = vadd.f32 %v1483_v11, %v1240_v20  ;;  %v6293_v63 = vpop.f32.mrf.mxu1  ;;  %4656 = vmatprep.mubr.msk.bf16.mxu1 %vm1888_vm4, %v1779_v44  ;;  %4702 = vmatprep.mubr.msk.bf16.mxu0 %vm1888_vm4, %v1779_v44  ;;  %v1729_v54 = vmax.f32 %v1673_v43, 0.0 }
 0x1f1   :  { %v1487_v23 = vpop.f32.mrf.mxu0  ;;  %1976 = vmatmul.mubr.bf16.gmra.mxu1 %v1778_v19  ;;  %2209 = vmatmul.mubr.bf16.gmra.mxu0 %v1778_v19  ;;  %v1254_v19 = vadd.f32 %v6255_v48, %v6138_v28 }
 0x1f2   :  { %v1675_v41 = vadd.f32 %v6242_v40, %v1607_v49  ;;  %v6301_v8 = vpop.f32.mrf.mxu1  ;;  %v1730_v17 = vmax.f32 %v1674_v21, 0.0  ;;  %v1608_v14 = vadd.f32 %v1487_v23, %v1244_v55  ;;  %v1258_v21 = vadd.f32 %v6264_v13, %v6142_v30 }
 0x1f3   :  { %v1489_v18 = vpop.f32.mrf.mxu0  ;;  %v1276_v53 = vadd.f32 %v6301_v8, %v6156_v3 }
 0x1f4   :  { %v1731_v22 = vmax.f32 %v1675_v41, 0.0  ;;  %v1609_v51 = vadd.f32 %v1489_v18, %v1246_v45  ;;  %v6307_v60 = vpop.f32.mrf.mxu1  ;;  %v1780_v24 = vpack.c.bf16 %v1730_v17, %v1728_v62  ;;  %v1676_v20 = vadd.f32 %v6248_v46, %v1608_v14 }
 0x1f5   :  { %v1491_v25 = vpop.f32.mrf.mxu0 }
 0x1f6   :  { %v1781_v50 = vpack.c.bf16 %v1731_v22, %v1729_v54  ;;  %v1610_v42 = vadd.f32 %v1491_v25, %v1248_v37  ;;  %v6311_v15 = vpop.f32.mrf.mxu1  ;;  %v1677_v38 = vadd.f32 %v6242_v40, %v1609_v51  ;;  %v1732_v41 = vmax.f32 %v1676_v20, 0.0 }
 0x1f7   :  { %v1493_v58 = vpop.f32.mrf.mxu0  ;;  %v1264_v25 = vadd.f32 %v6271_v61, %v6146_v32  ;;  %v1280_v8 = vadd.f32 %v6311_v15, %v6160_v1 }
 0x1f8   :  { %v1678_v26 = vadd.f32 %v6248_v46, %v1610_v42  ;;  %v1611_v39 = vadd.f32 %v1493_v58, %v1250_v12  ;;  %v6315_v0 = vpop.f32.mrf.mxu1  ;;  %4657 = vmatprep.mubr.msk.bf16.mxu1 %vm1888_vm4, %v1781_v50  ;;  %4703 = vmatprep.mubr.msk.bf16.mxu0 %vm1888_vm4, %v1781_v50  ;;  %v1733_v49 = vmax.f32 %v1677_v38, 0.0  ;;  %v1268_v42 = vadd.f32 %v6285_v56, %v6150_v34 }
 0x1f9   :  { %v1497_v27 = vpop.f32.mrf.mxu0  ;;  %1984 = vmatmul.mubr.bf16.gmra.mxu1 %v1780_v24  ;;  %2217 = vmatmul.mubr.bf16.gmra.mxu0 %v1780_v24 }
 0x1fa   :  { %v1679_v44 = vadd.f32 %v6242_v40, %v1611_v39  ;;  %v6323_v6 = vpop.f32.mrf.mxu1  ;;  %v1734_v11 = vmax.f32 %v1678_v26, 0.0  ;;  %v1612_v55 = vadd.f32 %v1497_v27, %v1254_v19 }
 0x1fb   :  { %v1499_v43 = vpop.f32.mrf.mxu0  ;;  %v1286_v15 = vadd.f32 %v6323_v6, %v6164_v5 }
 0x1fc   :  { %v1735_v52 = vmax.f32 %v1679_v44, 0.0  ;;  %v1613_v23 = vadd.f32 %v1499_v43, %v1256_v59  ;;  %v6329_v45 = vpop.f32.mrf.mxu1  ;;  %v1782_v28 = vpack.c.bf16 %v1734_v11, %v1732_v41  ;;  %v1680_v51 = vadd.f32 %v6248_v46, %v1612_v55 }
 0x1fd   :  { %v1501_v29 = vpop.f32.mrf.mxu0  ;;  %v1278_v55 = vadd.f32 %v6307_v60, %v6158_v2 }
 0x1fe   :  { %v1783_v17 = vpack.c.bf16 %v1735_v52, %v1733_v49  ;;  %v1614_v18 = vadd.f32 %v1501_v29, %v1258_v21  ;;  %v6333_v37 = vpop.f32.mrf.mxu1  ;;  %v1681_v54 = vadd.f32 %v6242_v40, %v1613_v23  ;;  %v1736_v39 = vmax.f32 %v1680_v51, 0.0 }
 0x1ff   :  { %v1503_v48 = vpop.f32.mrf.mxu0  ;;  %v1274_v52 = vadd.f32 %v6293_v63, %v6154_v36  ;;  %v1290_v6 = vadd.f32 %v6333_v37, %v6168_v9 }
 0x200   :  { %v1682_v30 = vadd.f32 %v6248_v46, %v1614_v18  ;;  %v1615_v13 = vadd.f32 %v1503_v48, %v1260_v47  ;;  %v6337_v22 = vpop.f32.mrf.mxu1  ;;  %4658 = vmatprep.mubr.msk.bf16.mxu1 %vm1888_vm4, %v1783_v17  ;;  %4704 = vmatprep.mubr.msk.bf16.mxu0 %vm1888_vm4, %v1783_v17  ;;  %v1737_v24 = vmax.f32 %v1681_v54, 0.0 }
 0x201   :  { %v1507_v31 = vpop.f32.mrf.mxu0  ;;  %1992 = vmatmul.mubr.bf16.gmra.mxu1 %v1782_v28  ;;  %2225 = vmatmul.mubr.bf16.gmra.mxu0 %v1782_v28 }
 0x202   :  { %v1683_v62 = vadd.f32 %v6242_v40, %v1615_v13  ;;  %v6345_v14 = vpop.f32.mrf.mxu1  ;;  %v1738_v12 = vmax.f32 %v1682_v30, 0.0  ;;  %v1616_v20 = vadd.f32 %v1507_v31, %v1264_v25 }
 0x203   :  { %v1509_v50 = vpop.f32.mrf.mxu0  ;;  %v1296_v37 = vadd.f32 %v6345_v14, %v6172_v16 }
 0x204   :  { %v1739_v58 = vmax.f32 %v1683_v62, 0.0  ;;  %v1617_v38 = vadd.f32 %v1509_v50, %v1266_v10  ;;  %v6351_v26 = vpop.f32.mrf.mxu1  ;;  %v1784_v32 = vpack.c.bf16 %v1738_v12, %v1736_v39  ;;  %v1684_v43 = vadd.f32 %v6248_v46, %v1616_v20 }
 0x205   :  { %v1511_v33 = vpop.f32.mrf.mxu0  ;;  %v1284_v12 = vadd.f32 %v6315_v0, %v6162_v4 }
 0x206   :  { %v1785_v27 = vpack.c.bf16 %v1739_v58, %v1737_v24  ;;  %v1618_v59 = vadd.f32 %v1511_v33, %v1268_v42  ;;  %v6355_v44 = vpop.f32.mrf.mxu1  ;;  %v1685_v19 = vadd.f32 %v6242_v40, %v1617_v38  ;;  %v1740_v28 = vmax.f32 %v1684_v43, 0.0  ;;  %v7344_v43 = vld [vmem:[#allocation2_spill] sm:$0xff] }
 0x207   :  { %v1513_v61 = vpop.f32.mrf.mxu0  ;;  %v1288_v24 = vadd.f32 %v6329_v45, %v6166_v7 }
 0x208   :  { %v1686_v34 = vadd.f32 %v6248_v46, %v1618_v59  ;;  %v1619_v56 = vadd.f32 %v1513_v61, %v1270_v57  ;;  %v6359_v11 = vpop.f32.mrf.mxu1  ;;  %4659 = vmatprep.mubr.msk.bf16.mxu1 %vm1888_vm4, %v1785_v27  ;;  %4705 = vmatprep.mubr.msk.bf16.mxu0 %vm1888_vm4, %v1785_v27  ;;  %v1741_v29 = vmax.f32 %v1685_v19, 0.0 }
 0x209   :  { %v1517_v35 = vpop.f32.mrf.mxu0  ;;  %2000 = vmatmul.mubr.bf16.gmra.mxu1 %v1784_v32  ;;  %2233 = vmatmul.mubr.bf16.gmra.mxu0 %v1784_v32 }
 0x20a   :  { %v1687_v21 = vadd.f32 %v6242_v40, %v1619_v56  ;;  %v6367_v49 = vpop.f32.mrf.mxu1  ;;  %v1742_v23 = vmax.f32 %v1686_v34, 0.0  ;;  %v1620_v48 = vadd.f32 %v1517_v35, %v1274_v52  ;;  %v1294_v35 = vadd.f32 %v6337_v22, %v7344_v43 }
 0x20b   :  { %v1519_v41 = vpop.f32.mrf.mxu0 }
 0x20c   :  { %v1743_v47 = vmax.f32 %v1687_v21, 0.0  ;;  %v1621_v17 = vadd.f32 %v1519_v41, %v1276_v53  ;;  %v6373_v18 = vpop.f32.mrf.mxu1  ;;  %v1786_v36 = vpack.c.bf16 %v1742_v23, %v1740_v28  ;;  %v1688_v10 = vadd.f32 %v6248_v46, %v1620_v48  ;;  %v7345_v23 = vld [vmem:[#allocation3_spill] sm:$0xff] }
 0x20d   :  { %v1521_v3 = vpop.f32.mrf.mxu0  ;;  %v1298_v41 = vadd.f32 %v6351_v26, %v7345_v23  ;;  %v7353_v23 = vld [vmem:[#allocation11_spill] sm:$0xff] }
 0x20e   :  { %v1787_v54 = vpack.c.bf16 %v1743_v47, %v1741_v29  ;;  %v1622_v30 = vadd.f32 %v1521_v3, %v1278_v55  ;;  %v6377_v13 = vpop.f32.mrf.mxu1  ;;  %v1689_v51 = vadd.f32 %v6242_v40, %v1621_v17  ;;  %v1744_v33 = vmax.f32 %v1688_v10, 0.0  ;;  %v7346_v3 = vld [vmem:[#allocation4_spill] sm:$0xff] }
 0x20f   :  { %v1523_v63 = vpop.f32.mrf.mxu0  ;;  %v1300_v16 = vadd.f32 %v6355_v44, %v7346_v3  ;;  %v7347_v44 = vld [vmem:[#allocation6_spill] sm:$0xff]  ;;  %v7354_v3 = vld [vmem:[#allocation12_spill] sm:$0xff] }
 0x210   :  { %v1690_v2 = vadd.f32 %v6248_v46, %v1622_v30  ;;  %v1623_v60 = vadd.f32 %v1523_v63, %v1280_v8  ;;  %v6381_v31 = vpop.f32.mrf.mxu1  ;;  %4660 = vmatprep.mubr.msk.bf16.mxu1 %vm1888_vm4, %v1787_v54  ;;  %4706 = vmatprep.mubr.msk.bf16.mxu0 %vm1888_vm4, %v1787_v54  ;;  %v1745_v58 = vmax.f32 %v1689_v51, 0.0 }
 0x211   :  { %v1527_v1 = vpop.f32.mrf.mxu0  ;;  %2008 = vmatmul.mubr.bf16.gmra.mxu1 %v1786_v36  ;;  %2241 = vmatmul.mubr.bf16.gmra.mxu0 %v1786_v36 }
 0x212   :  { %v1691_v62 = vadd.f32 %v6242_v40, %v1623_v60  ;;  %v6389_v25 = vpop.f32.mrf.mxu1  ;;  %v1746_v50 = vmax.f32 %v1690_v2, 0.0  ;;  %v1624_v57 = vadd.f32 %v1527_v1, %v1284_v12  ;;  %v1306_v60 = vadd.f32 %v6367_v49, %v7347_v44  ;;  %v7348_v1 = vld [vmem:[#allocation5_spill] sm:$0xff] }
 0x213   :  { %v1529_v42 = vpop.f32.mrf.mxu0  ;;  %v7356_v44 = vld [vmem:[#allocation13_spill] sm:$0xff] }
 0x214   :  { %v1747_v38 = vmax.f32 %v1691_v62, 0.0  ;;  %v1625_v39 = vadd.f32 %v1529_v42, %v1286_v15  ;;  %v6395_v20 = vpop.f32.mrf.mxu1  ;;  %v1788_v4 = vpack.c.bf16 %v1746_v50, %v1744_v33  ;;  %v1692_v34 = vadd.f32 %v6248_v46, %v1624_v57  ;;  %v7349_v42 = vld [vmem:[#allocation7_spill] sm:$0xff] }
 0x215   :  { %v1531_v5 = vpop.f32.mrf.mxu0  ;;  %v1304_v15 = vadd.f32 %v6359_v11, %v7348_v1 }
 0x216   :  { %v1789_v27 = vpack.c.bf16 %v1747_v38, %v1745_v58  ;;  %v1626_v59 = vadd.f32 %v1531_v5, %v1288_v24  ;;  %v6399_v32 = vpop.f32.mrf.mxu1  ;;  %v1693_v61 = vadd.f32 %v6242_v40, %v1625_v39  ;;  %v1748_v17 = vmax.f32 %v1692_v34, 0.0 }
 0x217   :  { %v1533_v0 = vpop.f32.mrf.mxu0  ;;  %v1308_v24 = vadd.f32 %v6373_v18, %v7349_v42 }
 0x218   :  { %v1694_v7 = vadd.f32 %v6248_v46, %v1626_v59  ;;  %v1627_v45 = vadd.f32 %v1533_v0, %v1290_v6  ;;  %v6403_v19 = vpop.f32.mrf.mxu1  ;;  %4661 = vmatprep.mubr.msk.bf16.mxu1 %vm1888_vm4, %v1789_v27  ;;  %4707 = vmatprep.mubr.msk.bf16.mxu0 %vm1888_vm4, %v1789_v27  ;;  %v1749_v55 = vmax.f32 %v1693_v61, 0.0  ;;  %v7350_v6 = vld [vmem:[#allocation8_spill] sm:$0xff] }
 0x219   :  { %v1537_v9 = vpop.f32.mrf.mxu0  ;;  %2016 = vmatmul.mubr.bf16.gmra.mxu1 %v1788_v4  ;;  %2249 = vmatmul.mubr.bf16.gmra.mxu0 %v1788_v4  ;;  %v1310_v49 = vadd.f32 %v6377_v13, %v7350_v6  ;;  %v7351_v13 = vld [vmem:[#allocation10_spill] sm:$0xff] }
 0x21a   :  { %v1695_v56 = vadd.f32 %v6242_v40, %v1627_v45  ;;  %v1750_v53 = vmax.f32 %v1694_v7, 0.0  ;;  %v6413_v21 = vpop.f32.mrf.mxu1  ;;  %v1628_v28 = vadd.f32 %v1537_v9, %v1294_v35  ;;  %v1316_v9 = vadd.f32 %v6389_v25, %v7351_v13 }
 0x21b   :  { %v1539_v52 = vpop.f32.mrf.mxu0  ;;  %v1320_v25 = vadd.f32 %v6399_v32, %v7354_v3  ;;  %v7355_v32 = vld [vmem:[#allocation14_spill] sm:$0xff] }
 0x21c   :  { %v1751_v29 = vmax.f32 %v1695_v56, 0.0  ;;  %v1629_v47 = vadd.f32 %v1539_v52, %v1296_v37  ;;  %v1790_v54 = vpack.c.bf16 %v1750_v53, %v1748_v17  ;;  %v6419_v22 = vpop.f32.mrf.mxu1  ;;  %v1696_v51 = vadd.f32 %v6248_v46, %v1628_v28  ;;  %v7352_v56 = vld [vmem:[#allocation9_spill] sm:$0xff] }
 0x21d   :  { %v1541_v48 = vpop.f32.mrf.mxu0  ;;  %v1314_v43 = vadd.f32 %v6381_v31, %v7352_v56  ;;  %v7361_v56 = vld [vmem:[#allocation19_spill] sm:$0xff] }
 0x21e   :  { %v1791_v14 = vpack.c.bf16 %v1751_v29, %v1749_v55  ;;  %v1630_v8 = vadd.f32 %v1541_v48, %v1298_v41  ;;  %v1697_v36 = vadd.f32 %v6242_v40, %v1629_v47  ;;  %v6431_v12 = vpop.f32.mrf.mxu1  ;;  %v1752_v33 = vmax.f32 %v1696_v51, 0.0 }
 0x21f   :  { %v1543_v30 = vpop.f32.mrf.mxu0  ;;  %v1318_v41 = vadd.f32 %v6395_v20, %v7353_v23  ;;  %v1326_v51 = vadd.f32 %v6413_v21, %v7355_v32 }
 0x220   :  { %v1698_v63 = vadd.f32 %v6248_v46, %v1630_v8  ;;  %v1631_v26 = vadd.f32 %v1543_v30, %v1300_v16  ;;  %4662 = vmatprep.mubr.msk.bf16.mxu1 %vm1888_vm4, %v1791_v14  ;;  %4708 = vmatprep.mubr.msk.bf16.mxu0 %vm1888_vm4, %v1791_v14  ;;  %v1753_v58 = vmax.f32 %v1697_v36, 0.0  ;;  %v6437_v11 = vpop.f32.mrf.mxu1 }
 0x221   :  { %v1547_v2 = vpop.f32.mrf.mxu0  ;;  %2024 = vmatmul.mubr.bf16.gmra.mxu1 %v1790_v54  ;;  %2257 = vmatmul.mubr.bf16.gmra.mxu0 %v1790_v54 }
 0x222   :  { %v1699_v10 = vadd.f32 %v6242_v40, %v1631_v26  ;;  %v1754_v62 = vmax.f32 %v1698_v63, 0.0  ;;  %v1632_v57 = vadd.f32 %v1547_v2, %v1304_v15  ;;  %v1335_v35 = vpop.f32.mrf.mxu1 }
 0x223   :  { %v1549_v50 = vpop.f32.mrf.mxu0 }
 0x224   :  { %v1755_v38 = vmax.f32 %v1699_v10, 0.0  ;;  %v1633_v39 = vadd.f32 %v1549_v50, %v1306_v60  ;;  %v1792_v4 = vpack.c.bf16 %v1754_v62, %v1752_v33  ;;  %v1700_v45 = vadd.f32 %v6248_v46, %v1632_v57  ;;  %v1337_v8 = vpop.f32.mrf.mxu1  ;;  %v7357_v62 = vld [vmem:[#allocation15_spill] sm:$0xff]  ;;  %v7358_v57 = vld [vmem:[#allocation16_spill] sm:$0xff] }
 0x225   :  { %v1551_v5 = vpop.f32.mrf.mxu0  ;;  %v1324_v60 = vadd.f32 %v6403_v19, %v7356_v44  ;;  %v1328_v50 = vadd.f32 %v6419_v22, %v7357_v62  ;;  %v1330_v21 = vadd.f32 %v6431_v12, %v7358_v57  ;;  %v7359_v12 = vld [vmem:[#allocation18_spill] sm:$0xff] }
 0x226   :  { %v1793_v27 = vpack.c.bf16 %v1755_v38, %v1753_v58  ;;  %v1634_v59 = vadd.f32 %v1551_v5, %v1308_v24  ;;  %v1701_v61 = vadd.f32 %v6242_v40, %v1633_v39  ;;  %v1756_v17 = vmax.f32 %v1700_v45, 0.0  ;;  %v1339_v10 = vpop.f32.mrf.mxu1  ;;  %v7360_v45 = vld [vmem:[#allocation17_spill] sm:$0xff] }
 0x227   :  { %v1553_v0 = vpop.f32.mrf.mxu0 }
 0x228   :  { %v1702_v7 = vadd.f32 %v6248_v46, %v1634_v59  ;;  %v1635_v18 = vadd.f32 %v1553_v0, %v1310_v49  ;;  %4663 = vmatprep.mubr.msk.bf16.mxu1 %vm1888_vm4, %v1793_v27  ;;  %4709 = vmatprep.mubr.msk.bf16.mxu0 %vm1888_vm4, %v1793_v27  ;;  %v1757_v55 = vmax.f32 %v1701_v61, 0.0  ;;  %v1343_v49 = vpop.f32.mrf.mxu1 }
 0x229   :  { %v1557_v34 = vpop.f32.mrf.mxu0  ;;  %2032 = vmatmul.mubr.bf16.gmra.mxu1 %v1792_v4  ;;  %2265 = vmatmul.mubr.bf16.gmra.mxu0 %v1792_v4 }
 0x22a   :  { %v1703_v37 = vadd.f32 %v6242_v40, %v1635_v18  ;;  %v1758_v53 = vmax.f32 %v1702_v7, 0.0  ;;  %v1636_v28 = vadd.f32 %v1557_v34, %v1314_v43  ;;  %v1336_v7 = vadd.f32 %v1335_v35, %v7359_v12  ;;  %v1345_v13 = vpop.f32.mrf.mxu1 }
 0x22b   :  { %v1559_v52 = vpop.f32.mrf.mxu0  ;;  %v1334_v34 = vadd.f32 %v6437_v11, %v7360_v45  ;;  %v1338_v43 = vadd.f32 %v1337_v8, %v7361_v56 }
 0x22c   :  { %v1759_v29 = vmax.f32 %v1703_v37, 0.0  ;;  %v1637_v47 = vadd.f32 %v1559_v52, %v1316_v9  ;;  %v1794_v54 = vpack.c.bf16 %v1758_v53, %v1756_v17  ;;  %v1704_v20 = vadd.f32 %v6248_v46, %v1636_v28 }
 0x22d   :  { %v1561_v48 = vpop.f32.mrf.mxu0 }
 0x22e   :  { %v1795_v16 = vpack.c.bf16 %v1759_v29, %v1757_v55  ;;  %v1638_v14 = vadd.f32 %v1561_v48, %v1318_v41  ;;  %v1705_v30 = vadd.f32 %v6242_v40, %v1637_v47  ;;  %v1760_v38 = vmax.f32 %v1704_v20, 0.0  ;;  %v7362_v47 = vld [vmem:[#allocation20_spill] sm:$0xff]  ;;  %v1347_v48 = vpop.f32.mrf.mxu1 }
 0x22f   :  { %v1563_v31 = vpop.f32.mrf.mxu0  ;;  %v1340_v17 = vadd.f32 %v1339_v10, %v7362_v47 }
 0x230   :  { %v1706_v36 = vadd.f32 %v6248_v46, %v1638_v14  ;;  %v1639_v63 = vadd.f32 %v1563_v31, %v1320_v25  ;;  %4664 = vmatprep.mubr.msk.bf16.mxu1 %vm1888_vm4, %v1795_v16  ;;  %4710 = vmatprep.mubr.msk.bf16.mxu0 %vm1888_vm4, %v1795_v16  ;;  %v1761_v42 = vmax.f32 %v1705_v30, 0.0  ;;  %v7363_v31 = vld [vmem:[#allocation22_spill] sm:$0xff] }
 0x231   :  { %v1567_v26 = vpop.f32.mrf.mxu0  ;;  %2040 = vmatmul.mubr.bf16.gmra.mxu1 %v1794_v54  ;;  %2273 = vmatmul.mubr.bf16.gmra.mxu0 %v1794_v54  ;;  %v1346_v30 = vadd.f32 %v1345_v13, %v7363_v31 }
 0x232   :  { %v1707_v2 = vadd.f32 %v6242_v40, %v1639_v63  ;;  %v1762_v1 = vmax.f32 %v1706_v36, 0.0  ;;  %v1640_v39 = vadd.f32 %v1567_v26, %v1324_v60  ;;  %v7364_v63 = vld [vmem:[#allocation21_spill] sm:$0xff]  ;;  %v1349_v26 = vpop.f32.mrf.mxu1 }
 0x233   :  { %v1569_v15 = vpop.f32.mrf.mxu0  ;;  %v1344_v20 = vadd.f32 %v1343_v49, %v7364_v63 }
 0x234   :  { %v1763_v24 = vmax.f32 %v1707_v2, 0.0  ;;  %v1641_v58 = vadd.f32 %v1569_v15, %v1326_v51  ;;  %v1796_v27 = vpack.c.bf16 %v1762_v1, %v1760_v38  ;;  %v1708_v22 = vadd.f32 %v6248_v46, %v1640_v39  ;;  %v7365_v2 = vld [vmem:[#allocation23_spill] sm:$0xff] }
 0x235   :  { %v1571_v33 = vpop.f32.mrf.mxu0  ;;  %v1348_v44 = vadd.f32 %v1347_v48, %v7365_v2 }
 0x236   :  { %v1797_v5 = vpack.c.bf16 %v1763_v24, %v1761_v42  ;;  %v1642_v6 = vadd.f32 %v1571_v33, %v1328_v50  ;;  %v1709_v59 = vadd.f32 %v6242_v40, %v1641_v58  ;;  %v1764_v41 = vmax.f32 %v1708_v22, 0.0  ;;  %v7366_v42 = vld [vmem:[#allocation25_spill] sm:$0xff] }
 0x237   :  { %v1573_v19 = vpop.f32.mrf.mxu0  ;;  %v1350_v24 = vadd.f32 %v1349_v26, %v7366_v42 }
 0x238   :  { %v1710_v4 = vadd.f32 %v6248_v46, %v1642_v6  ;;  %v1643_v0 = vadd.f32 %v1573_v19, %v1330_v21  ;;  %4665 = vmatprep.mubr.msk.bf16.mxu1 %vm1888_vm4, %v1797_v5  ;;  %4711 = vmatprep.mubr.msk.bf16.mxu0 %vm1888_vm4, %v1797_v5  ;;  %v1765_v53 = vmax.f32 %v1709_v59, 0.0 }
 0x239   :  { %v1577_v61 = vpop.f32.mrf.mxu0  ;;  %2048 = vmatmul.mubr.bf16.gmra.mxu1 %v1796_v27  ;;  %2281 = vmatmul.mubr.bf16.gmra.mxu0 %v1796_v27 }
 0x23a   :  { %v1711_v18 = vadd.f32 %v6242_v40, %v1643_v0  ;;  %v1766_v9 = vmax.f32 %v1710_v4, 0.0  ;;  %v1644_v55 = vadd.f32 %v1577_v61, %v1334_v34 }
 0x23b   :  { %v1579_v37 = vpop.f32.mrf.mxu0 }
 0x23c   :  { %v1767_v52 = vmax.f32 %v1711_v18, 0.0  ;;  %v1645_v23 = vadd.f32 %v1579_v37, %v1336_v7  ;;  %v1798_v3 = vpack.c.bf16 %v1766_v9, %v1764_v41  ;;  %v1712_v8 = vadd.f32 %v6248_v46, %v1644_v55  ;;  %v5309_v37 = vld [vmem:[%s7307_s5 + $0x4] ss:$8 sps:$4 sm:$0xff]  }
 0x23d   :  { %v1581_v29 = vpop.f32.mrf.mxu0 }
 0x23e   :  { %v1799_v28 = vpack.c.bf16 %v1767_v52, %v1765_v53  ;;  %v1646_v35 = vadd.f32 %v1581_v29, %v1338_v43  ;;  %v1713_v11 = vadd.f32 %v6242_v40, %v1645_v23  ;;  %v1768_v15 = vmax.f32 %v1712_v8, 0.0 }
 0x23f   :  { %v1583_v25 = vpop.f32.mrf.mxu0 }
 0x240   :  { %v1714_v16 = vadd.f32 %v6248_v46, %v1646_v35  ;;  %v1647_v14 = vadd.f32 %v1583_v25, %v1340_v17  ;;  %4666 = vmatprep.mubr.msk.bf16.mxu1 %vm1888_vm4, %v1799_v28  ;;  %4712 = vmatprep.mubr.msk.bf16.mxu0 %vm1888_vm4, %v1799_v28  ;;  %v1769_v60 = vmax.f32 %v1713_v11, 0.0 }
 0x241   :  { %v1587_v54 = vpop.f32.mrf.mxu0  ;;  %2056 = vmatmul.mubr.bf16.gmra.mxu1 %v1798_v3  ;;  %2289 = vmatmul.mubr.bf16.gmra.mxu0 %v1798_v3 }
 0x242   :  { %v1715_v36 = vadd.f32 %v6242_v40, %v1647_v14  ;;  %v1770_v32 = vmax.f32 %v1714_v16, 0.0  ;;  %v1648_v62 = vadd.f32 %v1587_v54, %v1344_v20 }
 0x243   :  { %v1589_v51 = vpop.f32.mrf.mxu0 }
 0x244   :  { %v1771_v10 = vmax.f32 %v1715_v36, 0.0  ;;  %v1649_v1 = vadd.f32 %v1589_v51, %v1346_v30  ;;  %v1800_v39 = vpack.c.bf16 %v1770_v32, %v1768_v15  ;;  %v1716_v6 = vadd.f32 %v6248_v46, %v1648_v62 }
 0x245   :  { %v1591_v50 = vpop.f32.mrf.mxu0 }
 0x246   :  { %v1801_v58 = vpack.c.bf16 %v1771_v10, %v1769_v60  ;;  %v1650_v38 = vadd.f32 %v1591_v50, %v1348_v44  ;;  %v1717_v57 = vadd.f32 %v6242_v40, %v1649_v1  ;;  %v1772_v4 = vmax.f32 %v1716_v6, 0.0 }
 0x247   :  { %v1593_v33 = vpop.f32.mrf.mxu0 }
 0x248   :  { %v1718_v21 = vadd.f32 %v6248_v46, %v1650_v38  ;;  %v1651_v5 = vadd.f32 %v1593_v33, %v1350_v24  ;;  %4667 = vmatprep.mubr.msk.bf16.mxu1 %vm1888_vm4, %v1801_v58  ;;  %4713 = vmatprep.mubr.msk.bf16.mxu0 %vm1888_vm4, %v1801_v58  ;;  %v1773_v19 = vmax.f32 %v1717_v57, 0.0 }
 0x249   :  { %2064 = vmatmul.mubr.bf16.gmra.mxu1 %v1800_v39  ;;  %2297 = vmatmul.mubr.bf16.gmra.mxu0 %v1800_v39 }
 0x24a   :  { %v1719_v49 = vadd.f32 %v6242_v40, %v1651_v5  ;;  %v1774_v27 = vmax.f32 %v1718_v21, 0.0 }
 0x24c   :  { %v1775_v59 = vmax.f32 %v1719_v49, 0.0  ;;  %v1802_v22 = vpack.c.bf16 %v1774_v27, %v1772_v4 }
 0x24e   :  { %v1803_v0 = vpack.c.bf16 %v1775_v59, %v1773_v19 }
 0x250   :  { %4668 = vmatprep.mubr.msk.bf16.mxu1 %vm1888_vm4, %v1803_v0  ;;  %4714 = vmatprep.mubr.msk.bf16.mxu0 %vm1888_vm4, %v1803_v0 }
 0x251   :  { %2072 = vmatmul.mubr.bf16.gmra.mxu1 %v1802_v22  ;;  %2305 = vmatmul.mubr.bf16.gmra.mxu0 %v1802_v22 }
 0x252   :  { %4729 = vmatprep.mubr.msk.bf16.mxu1 %vm305_vm0, %v5309_v37 }
 0x2a9   :  { %v1969_v61 = vpop.f32.mrf.mxu1  ;;  %v2202_v12 = vpop.f32.mrf.mxu0 }
 0x2aa   :  { %v2313_v7 = vmax.f32 %v1969_v61, %v2202_v12 }
 0x2ab   :  { %v1971_v46 = vpop.f32.mrf.mxu1  ;;  %v2204_v18 = vpop.f32.mrf.mxu0 }
 0x2ad   :  { %v1972_v45 = vpop.f32.mrf.mxu1  ;;  %v2205_v34 = vpop.f32.mrf.mxu0 }
 0x2ae   :  { %v2314_v40 = vmax.f32 %v1972_v45, %v2205_v34 }
 0x2af   :  { %v1974_v13 = vpop.f32.mrf.mxu1  ;;  %v2207_v9 = vpop.f32.mrf.mxu0 }
 0x2b0   :  { %v6499_v56 = vpack.c.bf16 %v2314_v40, %v2313_v7 }
 0x2b1   :  { %v1977_v43 = vpop.f32.mrf.mxu1  ;;  %v2210_v53 = vpop.f32.mrf.mxu0 }
 0x2b2   :  { %v2315_v52 = vmax.f32 %v1977_v43, %v2210_v53 }
 0x2b3   :  { %v1979_v23 = vpop.f32.mrf.mxu1  ;;  %v2212_v41 = vpop.f32.mrf.mxu0 }
 0x2b5   :  { %v1980_v55 = vpop.f32.mrf.mxu1  ;;  %v2213_v29 = vpop.f32.mrf.mxu0 }
 0x2b6   :  { %v2316_v47 = vmax.f32 %v1980_v55, %v2213_v29 }
 0x2b7   :  { %v1982_v17 = vpop.f32.mrf.mxu1  ;;  %v2215_v28 = vpop.f32.mrf.mxu0 }
 0x2b8   :  { %v6502_v35 = vpack.c.bf16 %v2316_v47, %v2315_v52  ;;  %v7367_v47 = vmov 0  }
 0x2b9   :  { %v6504_v48 = vpop.f32.mrf.mxu1  ;;  %v6506_v3 = vpop.f32.mrf.mxu0 }
 0x2ba   :  { %v2317_v25 = vmax.f32 %v6504_v48, %v6506_v3 }
 0x2bb   :  { %v1987_v11 = vpop.f32.mrf.mxu1  ;;  %v2220_v16 = vpop.f32.mrf.mxu0 }
 0x2bd   :  { %v6510_v14 = vpop.f32.mrf.mxu1  ;;  %v6512_v8 = vpop.f32.mrf.mxu0 }
 0x2bf   :  { %v1990_v54 = vpop.f32.mrf.mxu1  ;;  %v2223_v31 = vpop.f32.mrf.mxu0 }
 0x2c1   :  { %v6514_v30 = vpop.f32.mrf.mxu1  ;;  %v6516_v36 = vpop.f32.mrf.mxu0 }
 0x2c3   :  { %v1995_v63 = vpop.f32.mrf.mxu1  ;;  %v2228_v20 = vpop.f32.mrf.mxu0 }
 0x2c5   :  { %v6518_v26 = vpop.f32.mrf.mxu1  ;;  %v6520_v32 = vpop.f32.mrf.mxu0 }
 0x2c7   :  { %v1998_v51 = vpop.f32.mrf.mxu1  ;;  %v2231_v2 = vpop.f32.mrf.mxu0 }
 0x2c9   :  { %v6522_v44 = vpop.f32.mrf.mxu1  ;;  %v6524_v60 = vpop.f32.mrf.mxu0 }
 0x2cb   :  { %v2003_v10 = vpop.f32.mrf.mxu1  ;;  %v2236_v1 = vpop.f32.mrf.mxu0 }
 0x2cc   :  { %v2321_v1 = vmax.f32 %v6522_v44, %v6524_v60 }
 0x2cd   :  { %v2004_v15 = vpop.f32.mrf.mxu1  ;;  %v2237_v62 = vpop.f32.mrf.mxu0 }
 0x2ce   :  { %v2322_v20 = vmax.f32 %v2004_v15, %v2237_v62 }
 0x2cf   :  { %v2006_v50 = vpop.f32.mrf.mxu1  ;;  %v2239_v42 = vpop.f32.mrf.mxu0 }
 0x2d1   :  { %v2009_v24 = vpop.f32.mrf.mxu1  ;;  %v2242_v58 = vpop.f32.mrf.mxu0 }
 0x2d2   :  { %v2323_v54 = vmax.f32 %v2009_v24, %v2242_v58  ;;  %v2320_v24 = vmax.f32 %v6518_v26, %v6520_v32  ;;  %v6556_v58 = vpack.c.bf16 %v2322_v20, %v2321_v1 }
 0x2d3   :  { %v2011_v38 = vpop.f32.mrf.mxu1  ;;  %v2244_v39 = vpop.f32.mrf.mxu0 }
 0x2d4   :  { %v2319_v38 = vmax.f32 %v6514_v30, %v6516_v36  ;;  %v2318_v39 = vmax.f32 %v6510_v14, %v6512_v8 }
 0x2d5   :  { %v2012_v33 = vpop.f32.mrf.mxu1  ;;  %v2245_v57 = vpop.f32.mrf.mxu0 }
 0x2d6   :  { %v2324_v17 = vmax.f32 %v2012_v33, %v2245_v57  ;;  %v6568_v33 = vpack.c.bf16 %v2320_v24, %v2319_v38  ;;  %v6575_v30 = vpack.c.bf16 %v2318_v39, %v2317_v25 }
 0x2d7   :  { %v2014_v21 = vpop.f32.mrf.mxu1  ;;  %v2247_v5 = vpop.f32.mrf.mxu0 }
 0x2d8   :  { %v6544_v51 = vpack.c.bf16 %v2324_v17, %v2323_v54 }
 0x2d9   :  { %v2017_v6 = vpop.f32.mrf.mxu1  ;;  %v2250_v49 = vpop.f32.mrf.mxu0 }
 0x2da   :  { %v2325_v23 = vmax.f32 %v2017_v6, %v2250_v49 }
 0x2db   :  { %v2019_v27 = vpop.f32.mrf.mxu1  ;;  %v2252_v19 = vpop.f32.mrf.mxu0 }
 0x2dd   :  { %v2020_v59 = vpop.f32.mrf.mxu1  ;;  %v2253_v4 = vpop.f32.mrf.mxu0 }
 0x2de   :  { %v2326_v37 = vmax.f32 %v2020_v59, %v2253_v4 }
 0x2df   :  { %v2022_v0 = vpop.f32.mrf.mxu1  ;;  %v2255_v22 = vpop.f32.mrf.mxu0 }
 0x2e0   :  { %v6536_v28 = vpack.c.bf16 %v2326_v37, %v2325_v23 }
 0x2e1   :  { %v2025_v61 = vpop.f32.mrf.mxu1  ;;  %v2258_v12 = vpop.f32.mrf.mxu0 }
 0x2e2   :  { %v2327_v34 = vmax.f32 %v2025_v61, %v2258_v12 }
 0x2e3   :  { %v2027_v7 = vpop.f32.mrf.mxu1  ;;  %v2260_v46 = vpop.f32.mrf.mxu0 }
 0x2e5   :  { %v2028_v18 = vpop.f32.mrf.mxu1  ;;  %v2261_v45 = vpop.f32.mrf.mxu0 }
 0x2e6   :  { %v2328_v40 = vmax.f32 %v2028_v18, %v2261_v45 }
 0x2e7   :  { %v2030_v13 = vpop.f32.mrf.mxu1  ;;  %v2263_v9 = vpop.f32.mrf.mxu0 }
 0x2e8   :  { %v6526_v43 = vpack.c.bf16 %v2328_v40, %v2327_v34 }
 0x2e9   :  { %v6528_v53 = vpop.f32.mrf.mxu1  ;;  %v6530_v52 = vpop.f32.mrf.mxu0 }
 0x2ea   :  { %v2329_v41 = vmax.f32 %v6528_v53, %v6530_v52  ;;  %2454 = vmatpush1.bf16.msra.mxu1 %v6526_v43  ;;  %v5312_v53 = vld [vmem:[%s7307_s5 + $0x10] ss:$8 sps:$4 sm:$0xff]   ;;  %v5313_v52 = vld [vmem:[%s7307_s5 + $0x24] ss:$8 sps:$4 sm:$0xff]  }
 0x2eb   :  { %v2035_v55 = vpop.f32.mrf.mxu1  ;;  %v2268_v29 = vpop.f32.mrf.mxu0  ;;  %2455 = vmatprep.subr.bf16.mxu1 %v7367_v47 }
 0x2ed   :  { %v6538_v11 = vpop.f32.mrf.mxu1  ;;  %v6540_v16 = vpop.f32.mrf.mxu0 }
 0x2ee   :  { %2456 = vmatpush1.bf16.msra.mxu1 %v6536_v28 }
 0x2ef   :  { %v2038_v31 = vpop.f32.mrf.mxu1  ;;  %v2271_v63 = vpop.f32.mrf.mxu0  ;;  %2457 = vmatprep.subr.bf16.mxu1 %v7367_v47 }
 0x2f1   :  { %v6546_v2 = vpop.f32.mrf.mxu1  ;;  %v6548_v10 = vpop.f32.mrf.mxu0 }
 0x2f2   :  { %2458 = vmatpush1.bf16.msra.mxu1 %v6544_v51  ;;  %v2331_v39 = vmax.f32 %v6546_v2, %v6548_v10  ;;  %v5310_v2 = vld [vmem:[%s7307_s5 + $0x14] ss:$8 sps:$4 sm:$0xff]   ;;  %v5327_v10 = vld [vmem:[%s7307_s5 + $0x60] ss:$8 sps:$4 sm:$0xff]  }
 0x2f3   :  { %v2043_v50 = vpop.f32.mrf.mxu1  ;;  %v2276_v42 = vpop.f32.mrf.mxu0  ;;  %2459 = vmatprep.subr.bf16.mxu1 %v7367_v47 }
 0x2f5   :  { %v6558_v15 = vpop.f32.mrf.mxu1  ;;  %v6560_v62 = vpop.f32.mrf.mxu0 }
 0x2f6   :  { %2460 = vmatpush1.bf16.msra.mxu1 %v6556_v58 }
 0x2f7   :  { %v2046_v44 = vpop.f32.mrf.mxu1  ;;  %v2279_v60 = vpop.f32.mrf.mxu0  ;;  %2461 = vmatprep.subr.bf16.mxu1 %v7367_v47 }
 0x2f8   :  { %v2332_v44 = vmax.f32 %v6558_v15, %v6560_v62  ;;  %v5307_v15 = vld [vmem:[%s7307_s5] ss:$8 sps:$4 sm:$0xff]   ;;  %v5328_v62 = vld [vmem:[%s7307_s5 + $0x70] ss:$8 sps:$4 sm:$0xff]  }
 0x2f9   :  { %v2049_v26 = vpop.f32.mrf.mxu1  ;;  %v2282_v32 = vpop.f32.mrf.mxu0 }
 0x2fa   :  { %2462 = vmatpush1.bf16.msra.mxu1 %v6568_v33  ;;  %v2333_v38 = vmax.f32 %v2049_v26, %v2282_v32  ;;  %v5333_v32 = vld [vmem:[%s7307_s5 + $0x80] ss:$8 sps:$4 sm:$0xff]  }
 0x2fb   :  { %v2051_v57 = vpop.f32.mrf.mxu1  ;;  %v2284_v21 = vpop.f32.mrf.mxu0  ;;  %2463 = vmatprep.subr.bf16.mxu1 %v7367_v47 }
 0x2fc   :  { %v2330_v57 = vmax.f32 %v6538_v11, %v6540_v16  ;;  %v2350_v21 = vpack.c.bf16 %v2332_v44, %v2331_v39  ;;  %v5319_v11 = vld [vmem:[%s7307_s5 + $0x44] ss:$8 sps:$4 sm:$0xff]   ;;  %v5321_v16 = vld [vmem:[%s7307_s5 + $0x40] ss:$8 sps:$4 sm:$0xff]  }
 0x2fd   :  { %v2052_v36 = vpop.f32.mrf.mxu1  ;;  %v2285_v5 = vpop.f32.mrf.mxu0 }
 0x2fe   :  { %2464 = vmatpush1.bf16.msra.mxu1 %v6575_v30  ;;  %v2334_v42 = vmax.f32 %v2052_v36, %v2285_v5  ;;  %v2349_v26 = vpack.c.bf16 %v2330_v57, %v2329_v41  ;;  %v5316_v41 = vld [vmem:[%s7307_s5 + $0x34] ss:$8 sps:$4 sm:$0xff]   ;;  %v5336_v36 = vld [vmem:[%s7307_s5 + $0x90] ss:$8 sps:$4 sm:$0xff]   ;;  %v5337_v5 = vld [vmem:[%s7307_s5 + $0xa4] ss:$8 sps:$4 sm:$0xff]  }
 0x2ff   :  { %v2054_v14 = vpop.f32.mrf.mxu1  ;;  %v2287_v8 = vpop.f32.mrf.mxu0  ;;  %2465 = vmatprep.subr.bf16.mxu1 %v7367_v47 }
 0x300   :  { %v2351_v60 = vpack.c.bf16 %v2334_v42, %v2333_v38  ;;  %v5339_v14 = vld [vmem:[%s7307_s5 + $0xa0] ss:$8 sps:$4 sm:$0xff]   ;;  %v5340_v8 = vld [vmem:[%s7307_s5 + $0xb4] ss:$8 sps:$4 sm:$0xff]  }
 0x301   :  { %v2057_v6 = vpop.f32.mrf.mxu1  ;;  %v2290_v49 = vpop.f32.mrf.mxu0 }
 0x302   :  { %2466 = vmatpush1.bf16.msra.mxu1 %v6502_v35  ;;  %v2335_v50 = vmax.f32 %v2057_v6, %v2290_v49  ;;  %v5342_v6 = vld [vmem:[%s7307_s5 + $0xb0] ss:$8 sps:$4 sm:$0xff]   ;;  %v5343_v49 = vld [vmem:[%s7307_s5 + $0xc4] ss:$8 sps:$4 sm:$0xff]  }
 0x303   :  { %v2059_v27 = vpop.f32.mrf.mxu1  ;;  %v2292_v19 = vpop.f32.mrf.mxu0  ;;  %2467 = vmatprep.subr.bf16.mxu1 %v7367_v47 }
 0x304   :  { %v5345_v27 = vld [vmem:[%s7307_s5 + $0xc0] ss:$8 sps:$4 sm:$0xff]   ;;  %v5346_v19 = vld [vmem:[%s7307_s5 + $0xd4] ss:$8 sps:$4 sm:$0xff]  }
 0x305   :  { %v2060_v59 = vpop.f32.mrf.mxu1  ;;  %v2293_v48 = vpop.f32.mrf.mxu0 }
 0x306   :  { %2468 = vmatpush1.bf16.msra.mxu1 %v6499_v56  ;;  %v2336_v20 = vmax.f32 %v2060_v59, %v2293_v48  ;;  %v5348_v59 = vld [vmem:[%s7307_s5 + $0xd0] ss:$8 sps:$4 sm:$0xff]   ;;  %v5451_v48 = vmov 0.0  }
 0x307   :  { %v2062_v3 = vpop.f32.mrf.mxu1  ;;  %v2295_v25 = vpop.f32.mrf.mxu0  ;;  %2473 = vmatprep.subr.bf16.mxu1 %v7367_v47  ;;  %5038 = vmatprep.subr.bf16.mxu0 %v5451_v48 }
 0x308   :  { %v2352_v24 = vpack.c.bf16 %v2336_v20, %v2335_v50  ;;  %5052 = vmatprep.mubr.msk.bf16.mxu0 %vm5452_vm5, %v5451_v48 }
 0x309   :  { %v2065_v4 = vpop.f32.mrf.mxu1  ;;  %v2298_v0 = vpop.f32.mrf.mxu0 }
 0x30a   :  { %v2337_v63 = vmax.f32 %v2065_v4, %v2298_v0 }
 0x30b   :  { %v2067_v22 = vpop.f32.mrf.mxu1  ;;  %v2300_v61 = vpop.f32.mrf.mxu0 }
 0x30d   :  { %v2068_v12 = vpop.f32.mrf.mxu1  ;;  %v2301_v7 = vpop.f32.mrf.mxu0 }
 0x30e   :  { %v2338_v54 = vmax.f32 %v2068_v12, %v2301_v7 }
 0x30f   :  { %v2070_v46 = vpop.f32.mrf.mxu1  ;;  %v2303_v18 = vpop.f32.mrf.mxu0 }
 0x310   :  { %v2353_v1 = vpack.c.bf16 %v2338_v54, %v2337_v63 }
 0x311   :  { %v2073_v45 = vpop.f32.mrf.mxu1  ;;  %v2306_v34 = vpop.f32.mrf.mxu0 }
 0x312   :  { %v2339_v23 = vmax.f32 %v2073_v45, %v2306_v34 }
 0x313   :  { %v2075_v40 = vpop.f32.mrf.mxu1  ;;  %v2308_v13 = vpop.f32.mrf.mxu0 }
 0x315   :  { %v2076_v9 = vpop.f32.mrf.mxu1  ;;  %v2309_v37 = vpop.f32.mrf.mxu0 }
 0x316   :  { %v2340_v55 = vmax.f32 %v2076_v9, %v2309_v37 }
 0x317   :  { %v2078_v29 = vpop.f32.mrf.mxu1  ;;  %v2311_v17 = vpop.f32.mrf.mxu0 }
 0x318   :  { %v2354_v31 = vpack.c.bf16 %v2340_v55, %v2339_v23 }
 0x31a   :  { %2474 = vmatpush2.bf16.msra.mxu1 %v2354_v31 }
 0x31b   :  { %2475 = vmatprep.subr.bf16.mxu1 %v7367_v47 }
 0x31e   :  { %2476 = vmatpush2.bf16.msra.mxu1 %v2353_v1 }
 0x31f   :  { %2477 = vmatprep.subr.bf16.mxu1 %v7367_v47 }
 0x322   :  { %2478 = vmatpush2.bf16.msra.mxu1 %v2352_v24 }
 0x323   :  { %2479 = vmatprep.subr.bf16.mxu1 %v7367_v47 }
 0x326   :  { %2480 = vmatpush2.bf16.msra.mxu1 %v2351_v60 }
 0x327   :  { %2481 = vmatprep.subr.bf16.mxu1 %v7367_v47 }
 0x32a   :  { %2482 = vmatpush2.bf16.msra.mxu1 %v2350_v21 }
 0x32b   :  { %2483 = vmatprep.subr.bf16.mxu1 %v7367_v47 }
 0x32e   :  { %2484 = vmatpush2.bf16.msra.mxu1 %v2349_v26 }
 0x32f   :  { %2641 = vmatprep.subr.bf16.mxu1 %v7367_v47 }
 0x331   :  { %2486 = vmatmul.mubr.bf16.vlgmr.msra.gmra.mxu1 %v5307_v15 }
 0x332   :  { %2642 = vmatpush1.bf16.msra.mxu1 %v6526_v43  ;;  %4730 = vmatprep.mubr.msk.bf16.mxu1 %vm305_vm0, %v5310_v2  ;;  %v5315_v43 = vld [vmem:[%s7307_s5 + $0x20] ss:$8 sps:$4 sm:$0xff]  }
 0x333   :  { %2643 = vmatprep.subr.bf16.mxu1 %v7367_v47 }
 0x336   :  { %2644 = vmatpush1.bf16.msra.mxu1 %v6536_v28  ;;  %v5318_v28 = vld [vmem:[%s7307_s5 + $0x30] ss:$8 sps:$4 sm:$0xff]  }
 0x337   :  { %2645 = vmatprep.subr.bf16.mxu1 %v7367_v47 }
 0x339   :  { %2494 = vmatmul.mubr.bf16.gmra.mxu1 %v5312_v53 }
 0x33a   :  { %2646 = vmatpush1.bf16.msra.mxu1 %v6544_v51  ;;  %4731 = vmatprep.mubr.msk.bf16.mxu1 %vm305_vm0, %v5313_v52  ;;  %v5322_v51 = vld [vmem:[%s7307_s5 + $0x54] ss:$8 sps:$4 sm:$0xff]  }
 0x33b   :  { %2647 = vmatprep.subr.bf16.mxu1 %v7367_v47 }
 0x33e   :  { %2648 = vmatpush1.bf16.msra.mxu1 %v6556_v58  ;;  %v5330_v58 = vld [vmem:[%s7307_s5 + $0x74] ss:$8 sps:$4 sm:$0xff]  }
 0x33f   :  { %2649 = vmatprep.subr.bf16.mxu1 %v7367_v47 }
 0x341   :  { %2502 = vmatmul.mubr.bf16.gmra.mxu1 %v5315_v43 }
 0x342   :  { %2650 = vmatpush1.bf16.msra.mxu1 %v6568_v33  ;;  %4732 = vmatprep.mubr.msk.bf16.mxu1 %vm305_vm0, %v5316_v41  ;;  %v5331_v33 = vld [vmem:[%s7307_s5 + $0x84] ss:$8 sps:$4 sm:$0xff]  }
 0x343   :  { %2651 = vmatprep.subr.bf16.mxu1 %v7367_v47 }
 0x346   :  { %2652 = vmatpush1.bf16.msra.mxu1 %v6575_v30  ;;  %v5334_v30 = vld [vmem:[%s7307_s5 + $0x94] ss:$8 sps:$4 sm:$0xff]  }
 0x347   :  { %2653 = vmatprep.subr.bf16.mxu1 %v7367_v47 }
 0x349   :  { %2510 = vmatmul.mubr.bf16.gmra.mxu1 %v5318_v28 }
 0x34a   :  { %2654 = vmatpush1.bf16.msra.mxu1 %v6502_v35  ;;  %4733 = vmatprep.mubr.msk.bf16.mxu1 %vm305_vm0, %v5319_v11  ;;  %v5324_v35 = vld [vmem:[%s7307_s5 + $0x50] ss:$8 sps:$4 sm:$0xff]  }
 0x34b   :  { %2655 = vmatprep.subr.bf16.mxu1 %v7367_v47 }
 0x34e   :  { %2656 = vmatpush1.bf16.msra.mxu1 %v6499_v56  ;;  %v5325_v56 = vld [vmem:[%s7307_s5 + $0x64] ss:$8 sps:$4 sm:$0xff]  }
 0x34f   :  { %2661 = vmatprep.subr.bf16.mxu1 %v7367_v47 }
 0x351   :  { %2518 = vmatmul.mubr.bf16.gmra.mxu1 %v5321_v16 }
 0x352   :  { %2662 = vmatpush2.bf16.msra.mxu1 %v2354_v31  ;;  %4734 = vmatprep.mubr.msk.bf16.mxu1 %vm305_vm0, %v5322_v51 }
 0x353   :  { %2663 = vmatprep.subr.bf16.mxu1 %v7367_v47 }
 0x356   :  { %2664 = vmatpush2.bf16.msra.mxu1 %v2353_v1 }
 0x357   :  { %2665 = vmatprep.subr.bf16.mxu1 %v7367_v47 }
 0x359   :  { %2526 = vmatmul.mubr.bf16.gmra.mxu1 %v5324_v35 }
 0x35a   :  { %2666 = vmatpush2.bf16.msra.mxu1 %v2352_v24  ;;  %4735 = vmatprep.mubr.msk.bf16.mxu1 %vm305_vm0, %v5325_v56 }
 0x35b   :  { %2667 = vmatprep.subr.bf16.mxu1 %v7367_v47 }
 0x35e   :  { %2668 = vmatpush2.bf16.msra.mxu1 %v2351_v60 }
 0x35f   :  { %2669 = vmatprep.subr.bf16.mxu1 %v7367_v47 }
 0x361   :  { %2534 = vmatmul.mubr.bf16.gmra.mxu1 %v5327_v10 }
 0x362   :  { %2670 = vmatpush2.bf16.msra.mxu1 %v2350_v21  ;;  %4764 = vmatprep.mubr.msk.bf16.mxu1 %vm305_vm0, %v5330_v58 }
 0x363   :  { %2671 = vmatprep.subr.bf16.mxu1 %v7367_v47 }
 0x366   :  { %2672 = vmatpush2.bf16.msra.mxu1 %v2349_v26 }
 0x367   :  { %5080 = vmatprep.subr.bf16.mxu1 %v5451_v48 }
 0x369   :  { %2674 = vmatmul.mubr.bf16.vlgmr.msra.gmra.mxu1 %v5328_v62 }
 0x36a   :  { %4765 = vmatprep.mubr.msk.bf16.mxu1 %vm305_vm0, %v5331_v33 }
 0x371   :  { %2682 = vmatmul.mubr.bf16.gmra.mxu1 %v5333_v32 }
 0x372   :  { %4766 = vmatprep.mubr.msk.bf16.mxu1 %vm305_vm0, %v5334_v30 }
 0x379   :  { %2690 = vmatmul.mubr.bf16.gmra.mxu1 %v5336_v36 }
 0x37a   :  { %4767 = vmatprep.mubr.msk.bf16.mxu1 %vm305_vm0, %v5337_v5 }
 0x381   :  { %2698 = vmatmul.mubr.bf16.gmra.mxu1 %v5339_v14 }
 0x382   :  { %4768 = vmatprep.mubr.msk.bf16.mxu1 %vm305_vm0, %v5340_v8 }
 0x389   :  { %2706 = vmatmul.mubr.bf16.gmra.mxu1 %v5342_v6 }
 0x38a   :  { %4769 = vmatprep.mubr.msk.bf16.mxu1 %vm305_vm0, %v5343_v49 }
 0x391   :  { %2714 = vmatmul.mubr.bf16.gmra.mxu1 %v5345_v27 }
 0x392   :  { %4770 = vmatprep.mubr.msk.bf16.mxu1 %vm305_vm0, %v5346_v19 }
 0x399   :  { %2722 = vmatmul.mubr.bf16.gmra.mxu1 %v5348_v59 }
 0x39a   :  { %5094 = vmatprep.mubr.msk.bf16.mxu1 %vm5452_vm5, %v5451_v48 }
 0x3f1   :  { %v2487_v3 = vpop.f32.mrf.mxu1 }
 0x3f3   :  { %v2489_v25 = vpop.f32.mrf.mxu1 }
 0x3f5   :  { %v2490_v4 = vpop.f32.mrf.mxu1 }
 0x3f7   :  { %v2492_v0 = vpop.f32.mrf.mxu1 }
 0x3f9   :  { %v2495_v22 = vpop.f32.mrf.mxu1 }
 0x3fb   :  { %v2497_v61 = vpop.f32.mrf.mxu1 }
 0x3fd   :  { %v2498_v12 = vpop.f32.mrf.mxu1 }
 0x3ff   :  { %v2500_v7 = vpop.f32.mrf.mxu1 }
 0x401   :  { %v2503_v46 = vpop.f32.mrf.mxu1 }
 0x403   :  { %v2505_v18 = vpop.f32.mrf.mxu1 }
 0x405   :  { %v2506_v45 = vpop.f32.mrf.mxu1 }
 0x407   :  { %v2508_v34 = vpop.f32.mrf.mxu1 }
 0x409   :  { %v2511_v40 = vpop.f32.mrf.mxu1 }
 0x40b   :  { %v2513_v13 = vpop.f32.mrf.mxu1 }
 0x40d   :  { %v2514_v9 = vpop.f32.mrf.mxu1 }
 0x40f   :  { %v2516_v37 = vpop.f32.mrf.mxu1 }
 0x410   :  { %v4823_v37 = vld [vmem:[%s7309_s6 + $0xa8] sm:$0x33] }
 0x411   :  { %v2519_v23 = vpop.f32.mrf.mxu1 }
 0x413   :  { %v2521_v55 = vpop.f32.mrf.mxu1 }
 0x414   :  { %v4835_v55 = vcombine.high %v4823_v37, %v4823_v37 }
 0x415   :  { %v2522_v29 = vpop.f32.mrf.mxu1 }
 0x417   :  { %v2524_v17 = vpop.f32.mrf.mxu1 }
 0x418   :  { %v4834_v17 = vcombine.low %v4823_v37, %v4823_v37  ;;  %v5415_v37 = vld [vmem:[%s7310_s9 + $0xa8] sm:$0xff]  }
 0x419   :  { %v2527_v54 = vpop.f32.mrf.mxu1 }
 0x41b   :  { %v2529_v31 = vpop.f32.mrf.mxu1 }
 0x41c   :  { %v5349_v31 = vld [vmem:[%s7308_s7] sm:$0xff]  }
 0x41d   :  { %v2530_v63 = vpop.f32.mrf.mxu1 }
 0x41f   :  { %v2532_v20 = vpop.f32.mrf.mxu1 }
 0x420   :  { %v3187_v20 = vsel %vm3185_vm6, %v4834_v17, 0 }
 0x421   :  { %v2535_v1 = vpop.f32.mrf.mxu1 }
 0x423   :  { %v2537_v50 = vpop.f32.mrf.mxu1 }
 0x425   :  { %v2538_v42 = vpop.f32.mrf.mxu1 }
 0x427   :  { %v2540_v24 = vpop.f32.mrf.mxu1 }
 0x428   :  { %v5361_v24 = vld [vmem:[%s7309_s6 + $0x98] ss:$8 sps:$4 sm:$0xff]  }
 0x429   :  { %v2675_v38 = vpop.f32.mrf.mxu1 }
 0x42a   :  { %v2730_v44 = vmax.f32 %v2487_v3, %v2675_v38  ;;  %v5384_v38 = vld [vmem:[%s7309_s6 + $0x40] ss:$8 sps:$4 sm:$0xff]  }
 0x42b   :  { %v2677_v60 = vpop.f32.mrf.mxu1 }
 0x42c   :  { %v5392_v60 = vld [vmem:[%s7309_s6 + $0x34] ss:$8 sps:$4 sm:$0xff]  }
 0x42d   :  { %v2678_v39 = vpop.f32.mrf.mxu1 }
 0x42e   :  { %v2731_v57 = vmax.f32 %v2490_v4, %v2678_v39  ;;  %v5351_v39 = vld [vmem:[%s7308_s7 + $0x8] sm:$0xff]  }
 0x42f   :  { %v2680_v21 = vpop.f32.mrf.mxu1 }
 0x430   :  { %v6719_v26 = vpack.c.bf16 %v2731_v57, %v2730_v44  ;;  %v5367_v44 = vld [vmem:[%s7309_s6 + $0x8c] ss:$8 sps:$4 sm:$0xff]   ;;  %v5352_v57 = vld [vmem:[%s7308_s7 + $0x40] sm:$0xff]   ;;  %v5365_v21 = vld [vmem:[%s7309_s6 + $0x88] ss:$8 sps:$4 sm:$0xff]  }
 0x431   :  { %v2683_v15 = vpop.f32.mrf.mxu1 }
 0x432   :  { %v2732_v2 = vmax.f32 %v2495_v22, %v2683_v15  ;;  %v5390_v15 = vld [vmem:[%s7309_s6 + $0x30] ss:$8 sps:$4 sm:$0xff]  }
 0x433   :  { %v2685_v53 = vpop.f32.mrf.mxu1 }
 0x434   :  { %v5398_v53 = vld [vmem:[%s7309_s6 + $0x24] ss:$8 sps:$4 sm:$0xff]  }
 0x435   :  { %v2686_v52 = vpop.f32.mrf.mxu1 }
 0x436   :  { %v2733_v43 = vmax.f32 %v2498_v12, %v2686_v52  ;;  %v5369_v52 = vld [vmem:[%s7309_s6 + $0x78] ss:$8 sps:$4 sm:$0xff]  }
 0x437   :  { %v2688_v41 = vpop.f32.mrf.mxu1 }
 0x438   :  { %v6721_v28 = vpack.c.bf16 %v2733_v43, %v2732_v2  ;;  %v5371_v2 = vld [vmem:[%s7309_s6 + $0x7c] ss:$8 sps:$4 sm:$0xff]   ;;  %v5396_v43 = vld [vmem:[%s7309_s6 + $0x20] ss:$8 sps:$4 sm:$0xff]   ;;  %v5375_v41 = vld [vmem:[%s7309_s6 + $0x6c] ss:$8 sps:$4 sm:$0xff]  }
 0x439   :  { %v2691_v11 = vpop.f32.mrf.mxu1 }
 0x43a   :  { %v2734_v35 = vmax.f32 %v2503_v46, %v2691_v11  ;;  %v5404_v11 = vld [vmem:[%s7309_s6 + $0x14] ss:$8 sps:$4 sm:$0xff]  }
 0x43b   :  { %v2693_v16 = vpop.f32.mrf.mxu1 }
 0x43c   :  { %v5353_v16 = vld [vmem:[%s7308_s7 + $0x10] sm:$0xff]  }
 0x43d   :  { %v2694_v51 = vpop.f32.mrf.mxu1 }
 0x43e   :  { %v2735_v56 = vmax.f32 %v2506_v45, %v2694_v51  ;;  %v5354_v51 = vld [vmem:[%s7308_s7 + $0x48] sm:$0xff]  }
 0x43f   :  { %v2696_v10 = vpop.f32.mrf.mxu1 }
 0x440   :  { %v6723_v58 = vpack.c.bf16 %v2735_v56, %v2734_v35  ;;  %v5373_v35 = vld [vmem:[%s7309_s6 + $0x68] ss:$8 sps:$4 sm:$0xff]   ;;  %v5379_v10 = vld [vmem:[%s7309_s6 + $0x5c] ss:$8 sps:$4 sm:$0xff]  }
 0x441   :  { %v2699_v62 = vpop.f32.mrf.mxu1  ;;  %v5402_v56 = vld [vmem:[%s7309_s6 + $0x10] ss:$8 sps:$4 sm:$0xff]  }
 0x442   :  { %v2736_v30 = vmax.f32 %v2511_v40, %v2699_v62  ;;  %v4874_v62 = vld [vmem:[%s7309_s6 + $0x100] sm:$0x33] }
 0x443   :  { %v2701_v33 = vpop.f32.mrf.mxu1 }
 0x444   :  { %v5377_v33 = vld [vmem:[%s7309_s6 + $0x58] ss:$8 sps:$4 sm:$0xff]  }
 0x445   :  { %v2702_v32 = vpop.f32.mrf.mxu1 }
 0x446   :  { %v2737_v36 = vmax.f32 %v2514_v9, %v2702_v32  ;;  %v4886_v32 = vcombine.high %v4874_v62, %v4874_v62 }
 0x447   :  { %v2704_v5 = vpop.f32.mrf.mxu1 }
 0x448   :  { %v6725_v14 = vpack.c.bf16 %v2737_v36, %v2736_v30  ;;  %v5355_v30 = vld [vmem:[%s7308_s7 + $0x18] sm:$0xff]   ;;  %v5356_v36 = vld [vmem:[%s7308_s7 + $0x50] sm:$0xff]   ;;  %v5357_v5 = vld [vmem:[%s7308_s7 + $0x20] sm:$0xff]  }
 0x449   :  { %v2707_v8 = vpop.f32.mrf.mxu1 }
 0x44a   :  { %v2738_v27 = vmax.f32 %v2519_v23, %v2707_v8  ;;  %v3095_v23 = vld [vmem:[%s7309_s6 + $0x50] sm:$0x33]  ;;  %v5360_v8 = vld [vmem:[%s7308_s7 + $0x58] sm:$0xff]  }
 0x44b   :  { %v2709_v6 = vpop.f32.mrf.mxu1 }
 0x44c   :  { %v5364_v6 = vld [vmem:[%s7308_s7 + $0x28] sm:$0xff]  }
 0x44d   :  { %v2710_v49 = vpop.f32.mrf.mxu1 }
 0x44e   :  { %v2739_v19 = vmax.f32 %v2522_v29, %v2710_v49  ;;  %v4855_v29 = vcombine.high %v3095_v23, %v3095_v23  ;;  %v5368_v49 = vld [vmem:[%s7308_s7 + $0x60] sm:$0xff]  }
 0x44f   :  { %v2712_v59 = vpop.f32.mrf.mxu1 }
 0x450   :  { %v6727_v3 = vpack.c.bf16 %v2739_v19, %v2738_v27  ;;  %v5372_v27 = vld [vmem:[%s7308_s7 + $0x30] sm:$0xff]   ;;  %v5376_v19 = vld [vmem:[%s7308_s7 + $0x68] sm:$0xff]   ;;  %v4885_v59 = vcombine.low %v4874_v62, %v4874_v62 }
 0x451   :  { %v2715_v25 = vpop.f32.mrf.mxu1 }
 0x452   :  { %v2740_v22 = vmax.f32 %v2527_v54, %v2715_v25  ;;  %v4854_v54 = vcombine.low %v3095_v23, %v3095_v23  ;;  %v5389_v25 = vld [vmem:[%s7309_s6 + $0xf4] ss:$8 sps:$4 sm:$0xff]  }
 0x453   :  { %v2717_v4 = vpop.f32.mrf.mxu1 }
 0x454   :  { %v3372_v50 = vsel %vm3185_vm6, %v4854_v54, 0  ;;  %v5387_v4 = vld [vmem:[%s7309_s6 + $0xf0] ss:$8 sps:$4 sm:$0xff]  }
 0x455   :  { %v2718_v0 = vpop.f32.mrf.mxu1 }
 0x456   :  { %v2741_v61 = vmax.f32 %v2530_v63, %v2718_v0  ;;  %v5350_v63 = vld [vmem:[%s7308_s7 + $0x38] sm:$0xff]   ;;  %v5395_v0 = vld [vmem:[%s7309_s6 + $0xe4] ss:$8 sps:$4 sm:$0xff]  }
 0x457   :  { %v2720_v12 = vpop.f32.mrf.mxu1 }
 0x458   :  { %v6729_v7 = vpack.c.bf16 %v2741_v61, %v2740_v22  ;;  %v5393_v22 = vld [vmem:[%s7309_s6 + $0xe0] ss:$8 sps:$4 sm:$0xff]   ;;  %v5399_v61 = vld [vmem:[%s7309_s6 + $0xd0] ss:$8 sps:$4 sm:$0xff]   ;;  %v5410_v12 = vld [vmem:[%s7309_s6 + $0x4] ss:$8 sps:$4 sm:$0xff]  }
 0x459   :  { %v2723_v46 = vpop.f32.mrf.mxu1 }
 0x45a   :  { %v2742_v34 = vmax.f32 %v2535_v1, %v2723_v46  ;;  %v5363_v1 = vld [vmem:[%s7309_s6 + $0x9c] ss:$8 sps:$4 sm:$0xff]  }
 0x45b   :  { %v2725_v18 = vpop.f32.mrf.mxu1  ;;  %v5407_v46 = vld [vmem:[%s7309_s6 + $0xc4] ss:$8 sps:$4 sm:$0xff]  }
 0x45c   :  { %v5405_v18 = vld [vmem:[%s7309_s6 + $0xc0] ss:$8 sps:$4 sm:$0xff]  }
 0x45d   :  { %v2726_v45 = vpop.f32.mrf.mxu1 }
 0x45e   :  { %v2743_v40 = vmax.f32 %v2538_v42, %v2726_v45  ;;  %v5386_v42 = vld [vmem:[%s7309_s6 + $0x44] ss:$8 sps:$4 sm:$0xff]   ;;  %v5413_v45 = vld [vmem:[%s7309_s6 + $0xb4] ss:$8 sps:$4 sm:$0xff]  }
 0x45f   :  { %v2728_v13 = vpop.f32.mrf.mxu1 }
 0x460   :  { %v6731_v9 = vpack.c.bf16 %v2743_v40, %v2742_v34  ;;  %v5411_v34 = vld [vmem:[%s7309_s6 + $0xb0] ss:$8 sps:$4 sm:$0xff]  }
 0x462   :  { %5039 = vmatpush3.bf16.msra.mxu0 %v6731_v9  ;;  %5081 = vmatpush3.bf16.msra.mxu1 %v6731_v9 }
 0x463   :  { %5040 = vmatprep.subr.bf16.mxu0 %v5451_v48  ;;  %5082 = vmatprep.subr.bf16.mxu1 %v5451_v48 }
 0x466   :  { %5041 = vmatpush3.bf16.msra.mxu0 %v6729_v7  ;;  %5083 = vmatpush3.bf16.msra.mxu1 %v6729_v7 }
 0x467   :  { %5042 = vmatprep.subr.bf16.mxu0 %v5451_v48  ;;  %5084 = vmatprep.subr.bf16.mxu1 %v5451_v48 }
 0x46a   :  { %5043 = vmatpush3.bf16.msra.mxu0 %v6727_v3  ;;  %5085 = vmatpush3.bf16.msra.mxu1 %v6727_v3 }
 0x46b   :  { %5044 = vmatprep.subr.bf16.mxu0 %v5451_v48  ;;  %5086 = vmatprep.subr.bf16.mxu1 %v5451_v48 }
 0x46e   :  { %5045 = vmatpush3.bf16.msra.mxu0 %v6725_v14  ;;  %5087 = vmatpush3.bf16.msra.mxu1 %v6725_v14 }
 0x46f   :  { %5046 = vmatprep.subr.bf16.mxu0 %v5451_v48  ;;  %5088 = vmatprep.subr.bf16.mxu1 %v5451_v48 }
 0x472   :  { %5047 = vmatpush3.bf16.msra.mxu0 %v6723_v58  ;;  %5089 = vmatpush3.bf16.msra.mxu1 %v6723_v58 }
 0x473   :  { %5048 = vmatprep.subr.bf16.mxu0 %v5451_v48  ;;  %5090 = vmatprep.subr.bf16.mxu1 %v5451_v48 }
 0x476   :  { %5049 = vmatpush3.bf16.msra.mxu0 %v6721_v28  ;;  %5091 = vmatpush3.bf16.msra.mxu1 %v6721_v28 }
 0x477   :  { %5050 = vmatprep.subr.bf16.mxu0 %v5451_v48  ;;  %5092 = vmatprep.subr.bf16.mxu1 %v5451_v48 }
 0x47a   :  { %5051 = vmatpush3.bf16.msra.mxu0 %v6719_v26  ;;  %5093 = vmatpush3.bf16.msra.mxu1 %v6719_v26 }
 0x47b   :  { %4836 = vmatprep.subr.msk.bf16.mxu0 %vm3185_vm6, %v4835_v55  ;;  %4856 = vmatprep.subr.msk.bf16.mxu1 %vm3185_vm6, %v4855_v29 }
 0x47d   :  { %5053 = vmatmul.mubr.msk.bf16.vlgmr.msra.gmra.mxu0 %vm2800_vm7, %v5349_v31  ;;  %5095 = vmatmul.mubr.msk.bf16.vlgmr.msra.gmra.mxu1 %vm2800_vm7, %v5350_v63  ;;  %v5416_v63 = vld [vmem:[%s7310_s9 + $0x30] sm:$0xff]  }
 0x47e   :  { %5056 = vmatprep.mubr.msk.bf16.mxu0 %vm5452_vm5, %v5451_v48  ;;  %5098 = vmatprep.mubr.msk.bf16.mxu1 %vm5452_vm5, %v5451_v48 }
 0x47f   :  { %3197 = vmatpush1.bf16.msra.mxu0 %v3187_v20  ;;  %3382 = vmatpush1.bf16.msra.mxu1 %v3372_v50  ;;  %v5417_v20 = vld [vmem:[%s7310_s9 + $0xa0] sm:$0xff]  }
 0x480   :  { %3198 = vmatprep.subr.bf16.mxu0 %v5363_v1  ;;  %3383 = vmatprep.subr.bf16.mxu1 %v5386_v42 }
 0x483   :  { %3199 = vmatpush1.bf16.msra.mxu0 %v5361_v24  ;;  %3384 = vmatpush1.bf16.msra.mxu1 %v5384_v38 }
 0x484   :  { %3200 = vmatprep.subr.bf16.mxu0 %v5367_v44  ;;  %3385 = vmatprep.subr.bf16.mxu1 %v5392_v60  ;;  %v5418_v60 = vld [vmem:[%s7310_s9 + $0x28] sm:$0xff]  }
 0x485   :  { %5057 = vmatmul.mubr.msk.bf16.gmra.mxu0 %vm2800_vm7, %v5351_v39  ;;  %5099 = vmatmul.mubr.msk.bf16.gmra.mxu1 %vm2800_vm7, %v5352_v57  ;;  %v5419_v39 = vld [vmem:[%s7310_s9 + $0x98] sm:$0xff]  }
 0x486   :  { %5060 = vmatprep.mubr.msk.bf16.mxu0 %vm5452_vm5, %v5451_v48  ;;  %5102 = vmatprep.mubr.msk.bf16.mxu1 %vm5452_vm5, %v5451_v48 }
 0x487   :  { %3201 = vmatpush1.bf16.msra.mxu0 %v5365_v21  ;;  %3386 = vmatpush1.bf16.msra.mxu1 %v5390_v15 }
 0x488   :  { %3202 = vmatprep.subr.bf16.mxu0 %v5371_v2  ;;  %3387 = vmatprep.subr.bf16.mxu1 %v5398_v53  ;;  %v5420_v53 = vld [vmem:[%s7310_s9 + $0x20] sm:$0xff]  }
 0x48b   :  { %3203 = vmatpush1.bf16.msra.mxu0 %v5369_v52  ;;  %3388 = vmatpush1.bf16.msra.mxu1 %v5396_v43  ;;  %v5421_v52 = vld [vmem:[%s7310_s9 + $0x90] sm:$0xff]  }
 0x48c   :  { %3204 = vmatprep.subr.bf16.mxu0 %v5375_v41  ;;  %3389 = vmatprep.subr.bf16.mxu1 %v5404_v11 }
 0x48d   :  { %5061 = vmatmul.mubr.msk.bf16.gmra.mxu0 %vm2800_vm7, %v5353_v16  ;;  %5103 = vmatmul.mubr.msk.bf16.gmra.mxu1 %vm2800_vm7, %v5354_v51 }
 0x48e   :  { %5064 = vmatprep.mubr.msk.bf16.mxu0 %vm5452_vm5, %v5451_v48  ;;  %5106 = vmatprep.mubr.msk.bf16.mxu1 %vm5452_vm5, %v5451_v48 }
 0x48f   :  { %3205 = vmatpush1.bf16.msra.mxu0 %v5373_v35  ;;  %3390 = vmatpush1.bf16.msra.mxu1 %v5402_v56  ;;  %v5422_v56 = vld [vmem:[%s7310_s9 + $0x18] sm:$0xff]  }
 0x490   :  { %3206 = vmatprep.subr.bf16.mxu0 %v5379_v10  ;;  %3391 = vmatprep.subr.bf16.mxu1 %v5410_v12  ;;  %v5423_v10 = vld [vmem:[%s7310_s9 + $0x88] sm:$0xff]   ;;  %v5429_v12 = vld [vmem:[%s7310_s9 + $0x70] sm:$0xff]  }
 0x493   :  { %3207 = vmatpush1.bf16.msra.mxu0 %v5377_v33 }
 0x494   :  { %4887 = vmatprep.subr.msk.bf16.mxu0 %vm3185_vm6, %v4886_v32 }
 0x495   :  { %5065 = vmatmul.mubr.msk.bf16.gmra.mxu0 %vm2800_vm7, %v5355_v30  ;;  %5107 = vmatmul.mubr.msk.bf16.gmra.mxu1 %vm2800_vm7, %v5356_v36  ;;  %v5424_v36 = vld [vmem:[%s7310_s9 + $0x10] sm:$0xff]  }
 0x496   :  { %5068 = vmatprep.mubr.msk.bf16.mxu0 %vm5452_vm5, %v5451_v48  ;;  %5110 = vmatprep.mubr.msk.bf16.mxu1 %vm5452_vm5, %v5451_v48 }
 0x49d   :  { %5069 = vmatmul.mubr.msk.bf16.gmra.mxu0 %vm2800_vm7, %v5357_v5  ;;  %5111 = vmatmul.mubr.msk.bf16.gmra.mxu1 %vm2800_vm7, %v5360_v8  ;;  %v5425_v5 = vld [vmem:[%s7310_s9 + $0x80] sm:$0xff]  }
 0x49e   :  { %5072 = vmatprep.mubr.msk.bf16.mxu0 %vm5452_vm5, %v5451_v48  ;;  %5114 = vmatprep.mubr.msk.bf16.mxu1 %vm5452_vm5, %v5451_v48 }
 0x4a5   :  { %5073 = vmatmul.mubr.msk.bf16.gmra.mxu0 %vm2800_vm7, %v5364_v6  ;;  %5115 = vmatmul.mubr.msk.bf16.gmra.mxu1 %vm2800_vm7, %v5368_v49 }
 0x4a6   :  { %5076 = vmatprep.mubr.msk.bf16.mxu0 %vm5452_vm5, %v5451_v48  ;;  %5118 = vmatprep.mubr.msk.bf16.mxu1 %vm5452_vm5, %v5451_v48  ;;  %v3569_v48 = vsel %vm3185_vm6, %v4885_v59, 0 }
 0x4ad   :  { %5077 = vmatmul.mubr.msk.bf16.gmra.mxu0 %vm2800_vm7, %v5372_v27  ;;  %5119 = vmatmul.mubr.msk.bf16.gmra.mxu1 %vm2800_vm7, %v5376_v19 }
 0x4ae   :  { %3224 = vmatprep.mubr.bf16.mxu0 %v7367_v47  ;;  %3409 = vmatprep.mubr.bf16.mxu1 %v7367_v47 }
 0x4b5   :  { %4837 = vmatmul.mubr.msk.bf16.vlgmr.msra.gmra.mxu0 %vm3163_vm8, %v6719_v26  ;;  %v5401_v26 = vld [vmem:[%s7309_s6 + $0xd4] ss:$8 sps:$4 sm:$0xff]  }
 0x4b6   :  { %3234 = vmatprep.mubr.bf16.mxu0 %v7367_v47  ;;  %3579 = vmatpush1.bf16.msra.mxu0 %v3569_v48  ;;  %v5426_v48 = vld [vmem:[%s7310_s9 + $0x8] sm:$0xff]  }
 0x4b7   :  { %3580 = vmatprep.subr.bf16.mxu0 %v5389_v25  ;;  %v5427_v25 = vld [vmem:[%s7310_s9 + $0x78] sm:$0xff]  }
 0x4ba   :  { %3581 = vmatpush1.bf16.msra.mxu0 %v5387_v4 }
 0x4bb   :  { %3582 = vmatprep.subr.bf16.mxu0 %v5395_v0 }
 0x4bd   :  { %4838 = vmatmul.mubr.msk.bf16.gmra.mxu0 %vm3163_vm8, %v6721_v28  ;;  %v5408_v28 = vld [vmem:[%s7309_s6] ss:$8 sps:$4 sm:$0xff]  }
 0x4be   :  { %3244 = vmatprep.mubr.bf16.mxu0 %v7367_v47  ;;  %3583 = vmatpush1.bf16.msra.mxu0 %v5393_v22 }
 0x4bf   :  { %3584 = vmatprep.subr.bf16.mxu0 %v5401_v26  ;;  %3392 = vmatpush1.bf16.msra.mxu1 %v5408_v28 }
 0x4c0   :  { %3920 = vmatprep.subr.bf16.mxu1 %v7367_v47 }
 0x4c2   :  { %3585 = vmatpush1.bf16.msra.mxu0 %v5399_v61  ;;  %v5428_v61 = vld [vmem:[%s7310_s9] sm:$0xff]  }
 0x4c3   :  { %3586 = vmatprep.subr.bf16.mxu0 %v5407_v46 }
 0x4c5   :  { %4839 = vmatmul.mubr.msk.bf16.gmra.mxu0 %vm3163_vm8, %v6723_v58 }
 0x4c6   :  { %3254 = vmatprep.mubr.bf16.mxu0 %v7367_v47  ;;  %3587 = vmatpush1.bf16.msra.mxu0 %v5405_v18 }
 0x4c7   :  { %3588 = vmatprep.subr.bf16.mxu0 %v5413_v45 }
 0x4ca   :  { %3589 = vmatpush1.bf16.msra.mxu0 %v5411_v34 }
 0x4cb   :  { %4122 = vmatprep.subr.bf16.mxu0 %v7367_v47 }
 0x4cd   :  { %4840 = vmatmul.mubr.msk.bf16.gmra.mxu0 %vm3163_vm8, %v6725_v14 }
 0x4ce   :  { %3264 = vmatprep.mubr.bf16.mxu0 %v7367_v47 }
 0x4d5   :  { %4841 = vmatmul.mubr.msk.bf16.gmra.mxu0 %vm3163_vm8, %v6727_v3  ;;  %v5414_v3 = vld [vmem:[%s7310_s9 + $0x38] sm:$0xff]  }
 0x4d6   :  { %3274 = vmatprep.mubr.bf16.mxu0 %v7367_v47 }
 0x4dd   :  { %4842 = vmatmul.mubr.msk.bf16.gmra.mxu0 %vm3163_vm8, %v6729_v7 }
 0x4de   :  { %3284 = vmatprep.mubr.bf16.mxu0 %v7367_v47 }
 0x4e5   :  { %4843 = vmatmul.mubr.msk.bf16.gmra.mxu0 %vm3163_vm8, %v6731_v9 }
 0x4e6   :  { %3606 = vmatprep.mubr.bf16.mxu0 %v7367_v47 }
 0x53d   :  { %v2856_v58 = vpop.f32.mrf.mxu0  ;;  %v3023_v40 = vpop.f32.mrf.mxu1 }
 0x53f   :  { %v5054_v14 = vpop.f32.mrf.mxu0  ;;  %v5096_v13 = vpop.f32.mrf.mxu1 }
 0x540   :  { %v5431_v14 = vld [vmem:[%s7310_s9 + $0xd8] sm:$0xff]  }
 0x541   :  { %v2859_v7 = vpop.f32.mrf.mxu0  ;;  %v3026_v23 = vpop.f32.mrf.mxu1 }
 0x542   :  { %v2911_v55 = vpack.c.bf16 %v2859_v7, %v2856_v58  ;;  %v3078_v29 = vpack.c.bf16 %v3026_v23, %v3023_v40  ;;  %v5430_v40 = vld [vmem:[%s7310_s9 + $0x68] sm:$0xff]   ;;  %v5432_v23 = vld [vmem:[%s7310_s9 + $0x60] sm:$0xff]  }
 0x543   :  { %v5055_v17 = vpop.f32.mrf.mxu0  ;;  %v5097_v9 = vpop.f32.mrf.mxu1 }
 0x544   :  { %4857 = vmatmul.mubr.msk.bf16.vlgmr.msra.gmra.mxu1 %vm3163_vm8, %v2911_v55  ;;  %4888 = vmatmul.mubr.msk.bf16.vlgmr.msra.gmra.mxu0 %vm3163_vm8, %v3078_v29  ;;  %v5433_v55 = vld [vmem:[%s7310_s9 + $0xd0] sm:$0xff]  }
 0x545   :  { %v2864_v54 = vpop.f32.mrf.mxu0  ;;  %v3031_v31 = vpop.f32.mrf.mxu1  ;;  %3419 = vmatprep.mubr.bf16.mxu1 %v7367_v47  ;;  %3616 = vmatprep.mubr.bf16.mxu0 %v7367_v47 }
 0x546   :  { %3921 = vmatpush1.bf16.msra.mxu1 %v5414_v3  ;;  %4123 = vmatpush1.bf16.msra.mxu0 %v5415_v37 }
 0x547   :  { %v5058_v1 = vpop.f32.mrf.mxu0  ;;  %v5100_v50 = vpop.f32.mrf.mxu1  ;;  %3922 = vmatprep.subr.bf16.mxu1 %v7367_v47  ;;  %4124 = vmatprep.subr.bf16.mxu0 %v7367_v47 }
 0x549   :  { %v2867_v42 = vpop.f32.mrf.mxu0  ;;  %v3034_v24 = vpop.f32.mrf.mxu1 }
 0x54a   :  { %v2912_v38 = vpack.c.bf16 %v2867_v42, %v2864_v54  ;;  %v3079_v44 = vpack.c.bf16 %v3034_v24, %v3031_v31  ;;  %3923 = vmatpush1.bf16.msra.mxu1 %v5416_v63  ;;  %4125 = vmatpush1.bf16.msra.mxu0 %v5417_v20 }
 0x54b   :  { %v5059_v57 = vpop.f32.mrf.mxu0  ;;  %v5101_v21 = vpop.f32.mrf.mxu1  ;;  %3924 = vmatprep.subr.bf16.mxu1 %v7367_v47  ;;  %4126 = vmatprep.subr.bf16.mxu0 %v7367_v47 }
 0x54c   :  { %4858 = vmatmul.mubr.msk.bf16.gmra.mxu1 %vm3163_vm8, %v2912_v38  ;;  %4889 = vmatmul.mubr.msk.bf16.gmra.mxu0 %vm3163_vm8, %v3079_v44 }
 0x54d   :  { %v2872_v15 = vpop.f32.mrf.mxu0  ;;  %v3039_v2 = vpop.f32.mrf.mxu1  ;;  %3429 = vmatprep.mubr.bf16.mxu1 %v7367_v47  ;;  %3626 = vmatprep.mubr.bf16.mxu0 %v7367_v47 }
 0x54e   :  { %3925 = vmatpush1.bf16.msra.mxu1 %v5418_v60  ;;  %4127 = vmatpush1.bf16.msra.mxu0 %v5419_v39 }
 0x54f   :  { %v5062_v43 = vpop.f32.mrf.mxu0  ;;  %v5104_v41 = vpop.f32.mrf.mxu1  ;;  %3926 = vmatprep.subr.bf16.mxu1 %v7367_v47  ;;  %4128 = vmatprep.subr.bf16.mxu0 %v7367_v47 }
 0x550   :  { %v5437_v43 = vld [vmem:[%s7310_s9 + $0xc0] sm:$0xff]   ;;  %v5438_v41 = vld [vmem:[%s7310_s9 + $0x48] sm:$0xff]  }
 0x551   :  { %v2875_v11 = vpop.f32.mrf.mxu0  ;;  %v3042_v16 = vpop.f32.mrf.mxu1 }
 0x552   :  { %v2913_v51 = vpack.c.bf16 %v2875_v11, %v2872_v15  ;;  %v3080_v35 = vpack.c.bf16 %v3042_v16, %v3039_v2  ;;  %3927 = vmatpush1.bf16.msra.mxu1 %v5420_v53  ;;  %4129 = vmatpush1.bf16.msra.mxu0 %v5421_v52  ;;  %v5434_v2 = vld [vmem:[%s7310_s9 + $0x58] sm:$0xff]   ;;  %v5435_v53 = vld [vmem:[%s7310_s9 + $0xc8] sm:$0xff]   ;;  %v5436_v52 = vld [vmem:[%s7310_s9 + $0x50] sm:$0xff]  }
 0x553   :  { %v5063_v62 = vpop.f32.mrf.mxu0  ;;  %v5105_v33 = vpop.f32.mrf.mxu1  ;;  %3928 = vmatprep.subr.bf16.mxu1 %v7367_v47  ;;  %4130 = vmatprep.subr.bf16.mxu0 %v7367_v47  ;;  %v5439_v11 = vld [vmem:[%s7310_s9 + $0xb8] sm:$0xff]   ;;  %v5440_v16 = vld [vmem:[%s7310_s9 + $0x40] sm:$0xff]  }
 0x554   :  { %4859 = vmatmul.mubr.msk.bf16.gmra.mxu1 %vm3163_vm8, %v2913_v51  ;;  %4890 = vmatmul.mubr.msk.bf16.gmra.mxu0 %vm3163_vm8, %v3080_v35  ;;  %v5441_v51 = vld [vmem:[%s7310_s9 + $0xb0] sm:$0xff]  }
 0x555   :  { %v2880_v32 = vpop.f32.mrf.mxu0  ;;  %v3047_v30 = vpop.f32.mrf.mxu1  ;;  %3439 = vmatprep.mubr.bf16.mxu1 %v7367_v47  ;;  %3636 = vmatprep.mubr.bf16.mxu0 %v7367_v47 }
 0x556   :  { %3929 = vmatpush1.bf16.msra.mxu1 %v5422_v56  ;;  %4131 = vmatpush1.bf16.msra.mxu0 %v5423_v10 }
 0x557   :  { %v5066_v8 = vpop.f32.mrf.mxu0  ;;  %v5108_v6 = vpop.f32.mrf.mxu1  ;;  %3930 = vmatprep.subr.bf16.mxu1 %v7367_v47  ;;  %4132 = vmatprep.subr.bf16.mxu0 %v7367_v47 }
 0x559   :  { %v2883_v49 = vpop.f32.mrf.mxu0  ;;  %v3050_v27 = vpop.f32.mrf.mxu1 }
 0x55a   :  { %v2914_v19 = vpack.c.bf16 %v2883_v49, %v2880_v32  ;;  %v3081_v59 = vpack.c.bf16 %v3050_v27, %v3047_v30  ;;  %3931 = vmatpush1.bf16.msra.mxu1 %v5424_v36  ;;  %4133 = vmatpush1.bf16.msra.mxu0 %v5425_v5 }
 0x55b   :  { %v5067_v4 = vpop.f32.mrf.mxu0  ;;  %v5109_v0 = vpop.f32.mrf.mxu1  ;;  %3932 = vmatprep.subr.bf16.mxu1 %v7367_v47  ;;  %4134 = vmatprep.subr.bf16.mxu0 %v7367_v47 }
 0x55c   :  { %4860 = vmatmul.mubr.msk.bf16.gmra.mxu1 %vm3163_vm8, %v2914_v19  ;;  %4891 = vmatmul.mubr.msk.bf16.gmra.mxu0 %vm3163_vm8, %v3081_v59 }
 0x55d   :  { %v2888_v22 = vpop.f32.mrf.mxu0  ;;  %v3055_v26 = vpop.f32.mrf.mxu1  ;;  %3449 = vmatprep.mubr.bf16.mxu1 %v7367_v47  ;;  %3646 = vmatprep.mubr.bf16.mxu0 %v7367_v47 }
 0x55e   :  { %3933 = vmatpush1.bf16.msra.mxu1 %v5426_v48  ;;  %4135 = vmatpush1.bf16.msra.mxu0 %v5427_v25 }
 0x55f   :  { %v5070_v46 = vpop.f32.mrf.mxu0  ;;  %v5112_v28 = vpop.f32.mrf.mxu1  ;;  %3934 = vmatprep.subr.bf16.mxu1 %v7367_v47  ;;  %4136 = vmatprep.subr.bf16.mxu0 %v7367_v47 }
 0x561   :  { %v2891_v18 = vpop.f32.mrf.mxu0  ;;  %v3058_v45 = vpop.f32.mrf.mxu1 }
 0x562   :  { %v2915_v34 = vpack.c.bf16 %v2891_v18, %v2888_v22  ;;  %v3082_v58 = vpack.c.bf16 %v3058_v45, %v3055_v26  ;;  %3935 = vmatpush1.bf16.msra.mxu1 %v5428_v61  ;;  %4137 = vmatpush1.bf16.msra.mxu0 %v5429_v12 }
 0x563   :  { %v5071_v13 = vpop.f32.mrf.mxu0  ;;  %v5113_v3 = vpop.f32.mrf.mxu1  ;;  %3940 = vmatprep.subr.bf16.mxu1 %v7367_v47  ;;  %4142 = vmatprep.subr.bf16.mxu0 %v7367_v47 }
 0x564   :  { %4861 = vmatmul.mubr.msk.bf16.gmra.mxu1 %vm3163_vm8, %v2915_v34  ;;  %4892 = vmatmul.mubr.msk.bf16.gmra.mxu0 %vm3163_vm8, %v3082_v58 }
 0x565   :  { %v2896_v37 = vpop.f32.mrf.mxu0  ;;  %v3063_v7 = vpop.f32.mrf.mxu1  ;;  %3459 = vmatprep.mubr.bf16.mxu1 %v7367_v47  ;;  %3656 = vmatprep.mubr.bf16.mxu0 %v7367_v47 }
 0x566   :  { %3941 = vmatpush2.bf16.msra.mxu1 %v5430_v40  ;;  %4143 = vmatpush2.bf16.msra.mxu0 %v5431_v14 }
 0x567   :  { %v5074_v29 = vpop.f32.mrf.mxu0  ;;  %v5116_v17 = vpop.f32.mrf.mxu1  ;;  %3942 = vmatprep.subr.bf16.mxu1 %v7367_v47  ;;  %4144 = vmatprep.subr.bf16.mxu0 %v7367_v47 }
 0x568   :  { %v7368_v17 = vld [vmem:[#allocation24_spill] sm:$0xff] }
 0x569   :  { %v2899_v9 = vpop.f32.mrf.mxu0  ;;  %v3066_v54 = vpop.f32.mrf.mxu1 }
 0x56a   :  { %v2916_v31 = vpack.c.bf16 %v2899_v9, %v2896_v37  ;;  %v3083_v63 = vpack.c.bf16 %v3066_v54, %v3063_v7  ;;  %3943 = vmatpush2.bf16.msra.mxu1 %v5432_v23  ;;  %4145 = vmatpush2.bf16.msra.mxu0 %v5433_v55  ;;  %v3705_v37 = vld [vmem:[%s7311_s8] sm:$0x3]  ;;  %v7369_v9 = vsub.s32 1, %v7368_v17 }
 0x56b   :  { %v5075_v20 = vpop.f32.mrf.mxu0  ;;  %v5117_v1 = vpop.f32.mrf.mxu1  ;;  %3944 = vmatprep.subr.bf16.mxu1 %v7367_v47  ;;  %4146 = vmatprep.subr.bf16.mxu0 %v7367_v47 }
 0x56c   :  { %4862 = vmatmul.mubr.msk.bf16.gmra.mxu1 %vm3163_vm8, %v2916_v31  ;;  %4893 = vmatmul.mubr.msk.bf16.gmra.mxu0 %vm3163_vm8, %v3083_v63  ;;  %v7152_v54 = vrot.slane %v3705_v37, %v7369_v9  ;;  %v7370_v63 = vsub.s32 0, %v7368_v17 }
 0x56d   :  { %v2904_v50 = vpop.f32.mrf.mxu0  ;;  %v3071_v42 = vpop.f32.mrf.mxu1  ;;  %3469 = vmatprep.mubr.bf16.mxu1 %v7367_v47  ;;  %3666 = vmatprep.mubr.bf16.mxu0 %v7367_v47 }
 0x56e   :  { %3945 = vmatpush2.bf16.msra.mxu1 %v5434_v2  ;;  %4147 = vmatpush2.bf16.msra.mxu0 %v5435_v53  ;;  %v7156_v20 = vrot.slane %v3705_v37, %v7370_v63 }
 0x56f   :  { %v5078_v24 = vpop.f32.mrf.mxu0  ;;  %v5120_v38 = vpop.f32.mrf.mxu1  ;;  %3946 = vmatprep.subr.bf16.mxu1 %v7367_v47  ;;  %4148 = vmatprep.subr.bf16.mxu0 %v7367_v47 }
 0x571   :  { %v2907_v44 = vpop.f32.mrf.mxu0  ;;  %v3074_v60 = vpop.f32.mrf.mxu1 }
 0x572   :  { %v2917_v39 = vpack.c.bf16 %v2907_v44, %v2904_v50  ;;  %v3084_v57 = vpack.c.bf16 %v3074_v60, %v3071_v42  ;;  %3947 = vmatpush2.bf16.msra.mxu1 %v5436_v52  ;;  %4149 = vmatpush2.bf16.msra.mxu0 %v5437_v43 }
 0x573   :  { %v5079_v21 = vpop.f32.mrf.mxu0  ;;  %v5121_v15 = vpop.f32.mrf.mxu1  ;;  %3948 = vmatprep.subr.bf16.mxu1 %v7367_v47  ;;  %4150 = vmatprep.subr.bf16.mxu0 %v7367_v47 }
 0x574   :  { %4863 = vmatmul.mubr.msk.bf16.gmra.mxu1 %vm3163_vm8, %v2917_v39  ;;  %4894 = vmatmul.mubr.msk.bf16.gmra.mxu0 %vm3163_vm8, %v3084_v57 }
 0x575   :  { %v3226_v35 = vpop.f32.mrf.mxu0 }
 0x576   :  { %3949 = vmatpush2.bf16.msra.mxu1 %v5438_v41  ;;  %4151 = vmatpush2.bf16.msra.mxu0 %v5439_v11 }
 0x577   :  { %3950 = vmatprep.subr.bf16.mxu1 %v7367_v47  ;;  %4152 = vmatprep.subr.bf16.mxu0 %v7367_v47  ;;  %v3228_v56 = vpop.f32.mrf.mxu0 }
 0x579   :  { %v3230_v10 = vpop.f32.mrf.mxu0 }
 0x57a   :  { %3951 = vmatpush2.bf16.msra.mxu1 %v5440_v16  ;;  %4153 = vmatpush2.bf16.msra.mxu0 %v5441_v51 }
 0x57b   :  { %v3232_v62 = vpop.f32.mrf.mxu0 }
 0x57d   :  { %v3236_v33 = vpop.f32.mrf.mxu0 }
 0x57f   :  { %v3238_v32 = vpop.f32.mrf.mxu0 }
 0x581   :  { %v3240_v30 = vpop.f32.mrf.mxu0 }
 0x583   :  { %v7105_v36 = vpop.f32.mrf.mxu0 }
 0x585   :  { %v7107_v47 = vpop.f32.mrf.mxu0 }
 0x587   :  { %v7109_v5 = vpop.f32.mrf.mxu0 }
 0x589   :  { %v7111_v8 = vpop.f32.mrf.mxu0 }
 0x58b   :  { %v7113_v6 = vpop.f32.mrf.mxu0 }
 0x58d   :  { %v7115_v49 = vpop.f32.mrf.mxu0 }
 0x58f   :  { %v7117_v27 = vpop.f32.mrf.mxu0 }
 0x591   :  { %v7119_v19 = vpop.f32.mrf.mxu0 }
 0x593   :  { %v7121_v59 = vpop.f32.mrf.mxu0 }
 0x595   :  { %v7123_v48 = vpop.f32.mrf.mxu0 }
 0x597   :  { %v7125_v25 = vpop.f32.mrf.mxu0 }
 0x599   :  { %v7127_v4 = vpop.f32.mrf.mxu0 }
 0x59b   :  { %v7129_v0 = vpop.f32.mrf.mxu0 }
 0x59d   :  { %v7131_v22 = vpop.f32.mrf.mxu0 }
 0x59f   :  { %v7133_v26 = vpop.f32.mrf.mxu0 }
 0x5a1   :  { %v7135_v61 = vpop.f32.mrf.mxu0 }
 0x5a3   :  { %v7137_v12 = vpop.f32.mrf.mxu0 }
 0x5a5   :  { %v7139_v46 = vpop.f32.mrf.mxu0 }
 0x5a7   :  { %v7141_v28 = vpop.f32.mrf.mxu0 }
 0x5a9   :  { %v7143_v18 = vpop.f32.mrf.mxu0 }
 0x5ab   :  { %v7145_v45 = vpop.f32.mrf.mxu0 }
 0x604   :  { %v3411_v34 = vpop.f32.mrf.mxu1  ;;  %v3608_v58 = vpop.f32.mrf.mxu0 }
 0x605   :  { %v3412_v40 = vadd.f32 %v3411_v34, %v3226_v35 }
 0x606   :  { %v3413_v14 = vpop.f32.mrf.mxu1  ;;  %v3610_v13 = vpop.f32.mrf.mxu0 }
 0x607   :  { %v3414_v3 = vadd.f32 %v3413_v14, %v3228_v56  ;;  %v3677_v31 = vadd.f32 %v3608_v58, %v3412_v40 }
 0x608   :  { %v3415_v7 = vpop.f32.mrf.mxu1  ;;  %v3612_v23 = vpop.f32.mrf.mxu0 }
 0x609   :  { %v3416_v55 = vadd.f32 %v3415_v7, %v3230_v10  ;;  %v3678_v29 = vadd.f32 %v3610_v13, %v3414_v3  ;;  %v3717_v21 = vadd.f32 %v7156_v20, %v3677_v31 }
 0x60a   :  { %v3417_v1 = vpop.f32.mrf.mxu1  ;;  %v3614_v50 = vpop.f32.mrf.mxu0 }
 0x60b   :  { %v3418_v42 = vadd.f32 %v3417_v1, %v3232_v62  ;;  %v3679_v24 = vadd.f32 %v3612_v23, %v3416_v55  ;;  %v3718_v60 = vadd.f32 %v7152_v54, %v3678_v29  ;;  %v3745_v10 = vmax.f32 %v3717_v21, 0.0 }
 0x60c   :  { %v3421_v38 = vpop.f32.mrf.mxu1  ;;  %v3618_v44 = vpop.f32.mrf.mxu0 }
 0x60d   :  { %v3719_v39 = vadd.f32 %v7156_v20, %v3679_v24  ;;  %v3680_v57 = vadd.f32 %v3614_v50, %v3418_v42  ;;  %v3422_v15 = vadd.f32 %v3421_v38, %v3236_v33  ;;  %v3746_v51 = vmax.f32 %v3718_v60, 0.0 }
 0x60e   :  { %v3423_v2 = vpop.f32.mrf.mxu1  ;;  %v3620_v53 = vpop.f32.mrf.mxu0 }
 0x60f   :  { %v3720_v52 = vadd.f32 %v7152_v54, %v3680_v57  ;;  %v3424_v43 = vadd.f32 %v3423_v2, %v3238_v32  ;;  %v3747_v41 = vmax.f32 %v3719_v39, 0.0  ;;  %v3681_v62 = vadd.f32 %v3618_v44, %v3422_v15 }
 0x610   :  { %v3425_v11 = vpop.f32.mrf.mxu1  ;;  %v3622_v16 = vpop.f32.mrf.mxu0 }
 0x611   :  { %v3748_v35 = vmax.f32 %v3720_v52, 0.0  ;;  %v3426_v56 = vadd.f32 %v3425_v11, %v3240_v30  ;;  %v3682_v34 = vadd.f32 %v3620_v53, %v3424_v43  ;;  %v3773_v3 = vpack.c.bf16 %v3747_v41, %v3745_v10 }
 0x612   :  { %v3427_v58 = vpop.f32.mrf.mxu1  ;;  %v3624_v40 = vpop.f32.mrf.mxu0  ;;  %v3721_v30 = vadd.f32 %v7156_v20, %v3681_v62 }
 0x613   :  { %v3774_v14 = vpack.c.bf16 %v3748_v35, %v3746_v51  ;;  %v3428_v13 = vadd.f32 %v3427_v58, %v7105_v36  ;;  %v3683_v33 = vadd.f32 %v3622_v16, %v3426_v56  ;;  %v3722_v32 = vadd.f32 %v7152_v54, %v3682_v34 }
 0x614   :  { %v3431_v37 = vpop.f32.mrf.mxu1  ;;  %v3628_v7 = vpop.f32.mrf.mxu0  ;;  %v3749_v44 = vmax.f32 %v3721_v30, 0.0 }
 0x615   :  { %v3723_v23 = vadd.f32 %v7156_v20, %v3683_v33  ;;  %v3684_v55 = vadd.f32 %v3624_v40, %v3428_v13  ;;  %4909 = vmatprep.mubr.msk.bf16.mxu1 %vm305_vm0, %v3774_v14  ;;  %4958 = vmatprep.mubr.msk.bf16.mxu0 %vm305_vm0, %v3774_v14  ;;  %v3432_v29 = vadd.f32 %v3431_v37, %v7107_v47  ;;  %v3750_v42 = vmax.f32 %v3722_v32, 0.0 }
 0x616   :  { %v3433_v17 = vpop.f32.mrf.mxu1  ;;  %3953 = vmatmul.mubr.bf16.vlgmr.msra.gmra.mxu1 %v3773_v3  ;;  %4155 = vmatmul.mubr.bf16.vlgmr.msra.gmra.mxu0 %v3773_v3  ;;  %v3630_v36 = vpop.f32.mrf.mxu0 }
 0x617   :  { %v3724_v9 = vadd.f32 %v7152_v54, %v3684_v55  ;;  %v3434_v31 = vadd.f32 %v3433_v17, %v7109_v5  ;;  %v3751_v63 = vmax.f32 %v3723_v23, 0.0  ;;  %v3685_v60 = vadd.f32 %v3628_v7, %v3432_v29 }
 0x618   :  { %v3435_v1 = vpop.f32.mrf.mxu1  ;;  %v3632_v50 = vpop.f32.mrf.mxu0 }
 0x619   :  { %v3752_v24 = vmax.f32 %v3724_v9, 0.0  ;;  %v3436_v38 = vadd.f32 %v3435_v1, %v7111_v8  ;;  %v3686_v39 = vadd.f32 %v3630_v36, %v3434_v31  ;;  %v3775_v53 = vpack.c.bf16 %v3751_v63, %v3749_v44 }
 0x61a   :  { %v3437_v57 = vpop.f32.mrf.mxu1  ;;  %v3634_v47 = vpop.f32.mrf.mxu0  ;;  %v3725_v8 = vadd.f32 %v7156_v20, %v3685_v60 }
 0x61b   :  { %v3776_v21 = vpack.c.bf16 %v3752_v24, %v3750_v42  ;;  %v3438_v15 = vadd.f32 %v3437_v57, %v7113_v6  ;;  %v3687_v2 = vadd.f32 %v3632_v50, %v3436_v38  ;;  %v3726_v5 = vadd.f32 %v7152_v54, %v3686_v39 }
 0x61c   :  { %v3441_v52 = vpop.f32.mrf.mxu1  ;;  %v3638_v43 = vpop.f32.mrf.mxu0  ;;  %v3753_v13 = vmax.f32 %v3725_v8, 0.0 }
 0x61d   :  { %v3727_v41 = vadd.f32 %v7156_v20, %v3687_v2  ;;  %v3688_v11 = vadd.f32 %v3634_v47, %v3438_v15  ;;  %4910 = vmatprep.mubr.msk.bf16.mxu1 %vm305_vm0, %v3776_v21  ;;  %4959 = vmatprep.mubr.msk.bf16.mxu0 %vm305_vm0, %v3776_v21  ;;  %v3442_v16 = vadd.f32 %v3441_v52, %v7115_v49  ;;  %v3754_v58 = vmax.f32 %v3726_v5, 0.0 }
 0x61e   :  { %v3443_v51 = vpop.f32.mrf.mxu1  ;;  %3961 = vmatmul.mubr.bf16.gmra.mxu1 %v3775_v53  ;;  %4163 = vmatmul.mubr.bf16.gmra.mxu0 %v3775_v53  ;;  %v3640_v6 = vpop.f32.mrf.mxu0 }
 0x61f   :  { %v3728_v35 = vadd.f32 %v7152_v54, %v3688_v11  ;;  %v3444_v56 = vadd.f32 %v3443_v51, %v7117_v27  ;;  %v3755_v10 = vmax.f32 %v3727_v41, 0.0  ;;  %v3689_v33 = vadd.f32 %v3638_v43, %v3442_v16 }
 0x620   :  { %v3445_v62 = vpop.f32.mrf.mxu1  ;;  %v3642_v34 = vpop.f32.mrf.mxu0 }
 0x621   :  { %v3756_v40 = vmax.f32 %v3728_v35, 0.0  ;;  %v3446_v14 = vadd.f32 %v3445_v62, %v7119_v19  ;;  %v3690_v3 = vadd.f32 %v3640_v6, %v3444_v56  ;;  %v3777_v55 = vpack.c.bf16 %v3755_v10, %v3753_v13 }
 0x622   :  { %v3447_v37 = vpop.f32.mrf.mxu1  ;;  %v3644_v49 = vpop.f32.mrf.mxu0  ;;  %v3729_v19 = vadd.f32 %v7156_v20, %v3689_v33 }
 0x623   :  { %v3778_v7 = vpack.c.bf16 %v3756_v40, %v3754_v58  ;;  %v3448_v32 = vadd.f32 %v3447_v37, %v7121_v59  ;;  %v3691_v23 = vadd.f32 %v3642_v34, %v3446_v14  ;;  %v3730_v27 = vadd.f32 %v7152_v54, %v3690_v3 }
 0x624   :  { %v3451_v30 = vpop.f32.mrf.mxu1  ;;  %v3648_v29 = vpop.f32.mrf.mxu0  ;;  %v3757_v39 = vmax.f32 %v3729_v19, 0.0 }
 0x625   :  { %v3731_v17 = vadd.f32 %v7156_v20, %v3691_v23  ;;  %v3692_v36 = vadd.f32 %v3644_v49, %v3448_v32  ;;  %4911 = vmatprep.mubr.msk.bf16.mxu1 %vm305_vm0, %v3778_v7  ;;  %4960 = vmatprep.mubr.msk.bf16.mxu0 %vm305_vm0, %v3778_v7  ;;  %v3452_v9 = vadd.f32 %v3451_v30, %v7123_v48  ;;  %v3758_v38 = vmax.f32 %v3730_v27, 0.0 }
 0x626   :  { %v3453_v31 = vpop.f32.mrf.mxu1  ;;  %3969 = vmatmul.mubr.bf16.gmra.mxu1 %v3777_v55  ;;  %4171 = vmatmul.mubr.bf16.gmra.mxu0 %v3777_v55  ;;  %v3650_v59 = vpop.f32.mrf.mxu0 }
 0x627   :  { %v3732_v63 = vadd.f32 %v7152_v54, %v3692_v36  ;;  %v3454_v1 = vadd.f32 %v3453_v31, %v7125_v25  ;;  %v3759_v50 = vmax.f32 %v3731_v17, 0.0  ;;  %v3693_v57 = vadd.f32 %v3648_v29, %v3452_v9 }
 0x628   :  { %v3455_v42 = vpop.f32.mrf.mxu1  ;;  %v3652_v24 = vpop.f32.mrf.mxu0 }
 0x629   :  { %v3760_v44 = vmax.f32 %v3732_v63, 0.0  ;;  %v3456_v60 = vadd.f32 %v3455_v42, %v7127_v4  ;;  %v3694_v47 = vadd.f32 %v3650_v59, %v3454_v1  ;;  %v3779_v52 = vpack.c.bf16 %v3759_v50, %v3757_v39 }
 0x62a   :  { %v3457_v21 = vpop.f32.mrf.mxu1  ;;  %v3654_v48 = vpop.f32.mrf.mxu0  ;;  %v3733_v4 = vadd.f32 %v7156_v20, %v3693_v57 }
 0x62b   :  { %v3780_v15 = vpack.c.bf16 %v3760_v44, %v3758_v38  ;;  %v3458_v2 = vadd.f32 %v3457_v21, %v7129_v0  ;;  %v3695_v53 = vadd.f32 %v3652_v24, %v3456_v60  ;;  %v3734_v25 = vadd.f32 %v7152_v54, %v3694_v47 }
 0x62c   :  { %v3461_v43 = vpop.f32.mrf.mxu1  ;;  %v3658_v5 = vpop.f32.mrf.mxu0  ;;  %v3761_v40 = vmax.f32 %v3733_v4, 0.0 }
 0x62d   :  { %v3735_v41 = vadd.f32 %v7156_v20, %v3695_v53  ;;  %v3696_v11 = vadd.f32 %v3654_v48, %v3458_v2  ;;  %4912 = vmatprep.mubr.msk.bf16.mxu1 %vm305_vm0, %v3780_v15  ;;  %4961 = vmatprep.mubr.msk.bf16.mxu0 %vm305_vm0, %v3780_v15  ;;  %v3462_v8 = vadd.f32 %v3461_v43, %v7131_v22  ;;  %v3762_v62 = vmax.f32 %v3734_v25, 0.0 }
 0x62e   :  { %v3463_v16 = vpop.f32.mrf.mxu1  ;;  %3977 = vmatmul.mubr.bf16.gmra.mxu1 %v3779_v52  ;;  %4179 = vmatmul.mubr.bf16.gmra.mxu0 %v3779_v52  ;;  %v3660_v0 = vpop.f32.mrf.mxu0 }
 0x62f   :  { %v3736_v51 = vadd.f32 %v7152_v54, %v3696_v11  ;;  %v3464_v6 = vadd.f32 %v3463_v16, %v7133_v26  ;;  %v3763_v35 = vmax.f32 %v3735_v41, 0.0  ;;  %v3697_v14 = vadd.f32 %v3658_v5, %v3462_v8 }
 0x630   :  { %v3465_v56 = vpop.f32.mrf.mxu1  ;;  %v3662_v10 = vpop.f32.mrf.mxu0 }
 0x631   :  { %v3764_v34 = vmax.f32 %v3736_v51, 0.0  ;;  %v3466_v58 = vadd.f32 %v3465_v56, %v7135_v61  ;;  %v3698_v13 = vadd.f32 %v3660_v0, %v3464_v6  ;;  %v3781_v7 = vpack.c.bf16 %v3763_v35, %v3761_v40 }
 0x632   :  { %v3467_v33 = vpop.f32.mrf.mxu1  ;;  %v3664_v22 = vpop.f32.mrf.mxu0  ;;  %v3737_v61 = vadd.f32 %v7156_v20, %v3697_v14 }
 0x633   :  { %v3782_v3 = vpack.c.bf16 %v3764_v34, %v3762_v62  ;;  %v3468_v37 = vadd.f32 %v3467_v33, %v7137_v12  ;;  %v3699_v49 = vadd.f32 %v3662_v10, %v3466_v58  ;;  %v3738_v26 = vadd.f32 %v7152_v54, %v3698_v13 }
 0x634   :  { %v3471_v32 = vpop.f32.mrf.mxu1  ;;  %v3668_v23 = vpop.f32.mrf.mxu0  ;;  %v3765_v50 = vmax.f32 %v3737_v61, 0.0 }
 0x635   :  { %v3739_v55 = vadd.f32 %v7156_v20, %v3699_v49  ;;  %v3700_v30 = vadd.f32 %v3664_v22, %v3468_v37  ;;  %4913 = vmatprep.mubr.msk.bf16.mxu1 %vm305_vm0, %v3782_v3  ;;  %4962 = vmatprep.mubr.msk.bf16.mxu0 %vm305_vm0, %v3782_v3  ;;  %v3472_v29 = vadd.f32 %v3471_v32, %v7139_v46  ;;  %v3766_v59 = vmax.f32 %v3738_v26, 0.0 }
 0x636   :  { %v3473_v27 = vpop.f32.mrf.mxu1  ;;  %3985 = vmatmul.mubr.bf16.gmra.mxu1 %v3781_v7  ;;  %4187 = vmatmul.mubr.bf16.gmra.mxu0 %v3781_v7  ;;  %v3670_v12 = vpop.f32.mrf.mxu0 }
 0x637   :  { %v3740_v17 = vadd.f32 %v7152_v54, %v3700_v30  ;;  %v3474_v36 = vadd.f32 %v3473_v27, %v7141_v28  ;;  %v3767_v19 = vmax.f32 %v3739_v55, 0.0  ;;  %v3701_v42 = vadd.f32 %v3668_v23, %v3472_v29 }
 0x638   :  { %v3475_v9 = vpop.f32.mrf.mxu1  ;;  %v3672_v31 = vpop.f32.mrf.mxu0 }
 0x639   :  { %v3768_v63 = vmax.f32 %v3740_v17, 0.0  ;;  %v3476_v1 = vadd.f32 %v3475_v9, %v7143_v18  ;;  %v3702_v24 = vadd.f32 %v3670_v12, %v3474_v36  ;;  %v3783_v39 = vpack.c.bf16 %v3767_v19, %v3765_v50 }
 0x63a   :  { %v3477_v38 = vpop.f32.mrf.mxu1  ;;  %v3674_v57 = vpop.f32.mrf.mxu0  ;;  %v3741_v18 = vadd.f32 %v7156_v20, %v3701_v42 }
 0x63b   :  { %v3784_v46 = vpack.c.bf16 %v3768_v63, %v3766_v59  ;;  %v3478_v44 = vadd.f32 %v3477_v38, %v7145_v45  ;;  %v3703_v60 = vadd.f32 %v3672_v31, %v3476_v1  ;;  %v3742_v47 = vadd.f32 %v7152_v54, %v3702_v24 }
 0x63c   :  { %v3769_v53 = vmax.f32 %v3741_v18, 0.0 }
 0x63d   :  { %v3743_v28 = vadd.f32 %v7156_v20, %v3703_v60  ;;  %v3704_v21 = vadd.f32 %v3674_v57, %v3478_v44  ;;  %4914 = vmatprep.mubr.msk.bf16.mxu1 %vm305_vm0, %v3784_v46  ;;  %4963 = vmatprep.mubr.msk.bf16.mxu0 %vm305_vm0, %v3784_v46  ;;  %v3770_v45 = vmax.f32 %v3742_v47, 0.0  ;;  %v5442_v20 = vld [vmem:[%s7312_s10] sm:$0xff]  }
 0x63e   :  { %3993 = vmatmul.mubr.bf16.gmra.mxu1 %v3783_v39  ;;  %4195 = vmatmul.mubr.bf16.gmra.mxu0 %v3783_v39 }
 0x63f   :  { %v3744_v48 = vadd.f32 %v7152_v54, %v3704_v21  ;;  %v3771_v15 = vmax.f32 %v3743_v28, 0.0 }
 0x641   :  { %v3772_v2 = vmax.f32 %v3744_v48, 0.0  ;;  %v3785_v43 = vpack.c.bf16 %v3771_v15, %v3769_v53 }
 0x643   :  { %v3786_v52 = vpack.c.bf16 %v3772_v2, %v3770_v45 }
 0x645   :  { %4915 = vmatprep.mubr.msk.bf16.mxu1 %vm305_vm0, %v3786_v52  ;;  %4964 = vmatprep.mubr.msk.bf16.mxu0 %vm305_vm0, %v3786_v52 }
 0x646   :  { %4001 = vmatmul.mubr.bf16.gmra.mxu1 %v3785_v43  ;;  %4203 = vmatmul.mubr.bf16.gmra.mxu0 %v3785_v43 }
 0x647   :  { %5136 = vmatprep.mubr.msk.bf16.mxu1 %vm2800_vm7, %v5442_v20 }
 0x6d6   :  { %v3954_v5 = vpop.f32.mrf.mxu1  ;;  %v4156_v54 = vpop.f32.mrf.mxu0 }
 0x6d7   :  { %v4211_v25 = vmax.f32 %v3954_v5, %v4156_v54 }
 0x6d8   :  { %v3956_v41 = vpop.f32.mrf.mxu1  ;;  %v4158_v11 = vpop.f32.mrf.mxu0 }
 0x6da   :  { %v3957_v4 = vpop.f32.mrf.mxu1  ;;  %v4159_v8 = vpop.f32.mrf.mxu0 }
 0x6db   :  { %v4212_v16 = vmax.f32 %v3957_v4, %v4159_v8 }
 0x6dc   :  { %v3959_v0 = vpop.f32.mrf.mxu1  ;;  %v4161_v51 = vpop.f32.mrf.mxu0 }
 0x6dd   :  { %v7225_v6 = vpack.c.bf16 %v4212_v16, %v4211_v25 }
 0x6de   :  { %v7227_v35 = vpop.f32.mrf.mxu1  ;;  %v7229_v56 = vpop.f32.mrf.mxu0 }
 0x6e0   :  { %v3964_v10 = vpop.f32.mrf.mxu1  ;;  %v4166_v62 = vpop.f32.mrf.mxu0 }
 0x6e1   :  { %v4213_v62 = vmax.f32 %v7227_v35, %v7229_v56  ;;  %v5445_v35 = vld [vmem:[%s7312_s10 + $0x18] ss:$0 sps:$4 sm:$0xff]   ;;  %v5446_v56 = vld [vmem:[%s7312_s10 + $0x1c] sm:$0xff]  }
 0x6e2   :  { %v7231_v34 = vpop.f32.mrf.mxu1  ;;  %v7233_v58 = vpop.f32.mrf.mxu0 }
 0x6e3   :  { %v4214_v51 = vmax.f32 %v7231_v34, %v7233_v58  ;;  %v5444_v34 = vld [vmem:[%s7312_s10 + $0x10] sm:$0xff]   ;;  %v5447_v58 = vld [vmem:[%s7312_s10 + $0x24] sm:$0xff]  }
 0x6e4   :  { %v3967_v40 = vpop.f32.mrf.mxu1  ;;  %v4169_v14 = vpop.f32.mrf.mxu0 }
 0x6e5   :  { %v4226_v40 = vpack.c.bf16 %v4214_v51, %v4213_v62  ;;  %v5443_v14 = vld [vmem:[%s7312_s10 + $0x8] sm:$0xff]  }
 0x6e6   :  { %v7235_v13 = vpop.f32.mrf.mxu1  ;;  %v4172_v33 = vpop.f32.mrf.mxu0 }
 0x6e7   :  { %v4215_v0 = vmax.f32 %v7235_v13, %v4172_v33  ;;  %v5448_v13 = vld [vmem:[%s7312_s10 + $0x2c] sm:$0xff]   ;;  %v5449_v33 = vld [vmem:[%s7312_s10 + $0x34] ss:$0 sps:$4 sm:$0xff]  }
 0x6e8   :  { %v3972_v22 = vpop.f32.mrf.mxu1  ;;  %v4174_v3 = vpop.f32.mrf.mxu0 }
 0x6ea   :  { %v3973_v37 = vpop.f32.mrf.mxu1  ;;  %v4175_v49 = vpop.f32.mrf.mxu0 }
 0x6eb   :  { %v4216_v8 = vmax.f32 %v3973_v37, %v4175_v49 }
 0x6ec   :  { %v3975_v7 = vpop.f32.mrf.mxu1  ;;  %v4177_v32 = vpop.f32.mrf.mxu0 }
 0x6ed   :  { %v4227_v10 = vpack.c.bf16 %v4216_v8, %v4215_v0 }
 0x6ee   :  { %v3978_v23 = vpop.f32.mrf.mxu1  ;;  %v4180_v26 = vpop.f32.mrf.mxu0 }
 0x6ef   :  { %v4217_v4 = vmax.f32 %v3978_v23, %v4180_v26 }
 0x6f0   :  { %v3980_v55 = vpop.f32.mrf.mxu1  ;;  %v4182_v30 = vpop.f32.mrf.mxu0 }
 0x6f2   :  { %v3981_v61 = vpop.f32.mrf.mxu1  ;;  %v4183_v29 = vpop.f32.mrf.mxu0 }
 0x6f3   :  { %v4218_v41 = vmax.f32 %v3981_v61, %v4183_v29 }
 0x6f4   :  { %v3983_v27 = vpop.f32.mrf.mxu1  ;;  %v4185_v12 = vpop.f32.mrf.mxu0 }
 0x6f5   :  { %v4228_v16 = vpack.c.bf16 %v4218_v41, %v4217_v4 }
 0x6f6   :  { %v3986_v17 = vpop.f32.mrf.mxu1  ;;  %v4188_v36 = vpop.f32.mrf.mxu0 }
 0x6f7   :  { %v4219_v25 = vmax.f32 %v3986_v17, %v4188_v36 }
 0x6f8   :  { %v3988_v19 = vpop.f32.mrf.mxu1  ;;  %v4190_v9 = vpop.f32.mrf.mxu0 }
 0x6fa   :  { %v3989_v31 = vpop.f32.mrf.mxu1  ;;  %v4191_v59 = vpop.f32.mrf.mxu0 }
 0x6fb   :  { %v4220_v5 = vmax.f32 %v3989_v31, %v4191_v59 }
 0x6fc   :  { %v3991_v63 = vpop.f32.mrf.mxu1  ;;  %v4193_v1 = vpop.f32.mrf.mxu0 }
 0x6fd   :  { %v4229_v11 = vpack.c.bf16 %v4220_v5, %v4219_v25 }
 0x6fe   :  { %v3994_v50 = vpop.f32.mrf.mxu1  ;;  %v4196_v42 = vpop.f32.mrf.mxu0 }
 0x6ff   :  { %v4221_v43 = vmax.f32 %v3994_v50, %v4196_v42 }
 0x700   :  { %v3996_v24 = vpop.f32.mrf.mxu1  ;;  %v4198_v38 = vpop.f32.mrf.mxu0 }
 0x702   :  { %v3997_v46 = vpop.f32.mrf.mxu1  ;;  %v4199_v44 = vpop.f32.mrf.mxu0 }
 0x703   :  { %v4222_v15 = vmax.f32 %v3997_v46, %v4199_v44 }
 0x704   :  { %v3999_v60 = vpop.f32.mrf.mxu1  ;;  %v4201_v39 = vpop.f32.mrf.mxu0 }
 0x705   :  { %v4230_v54 = vpack.c.bf16 %v4222_v15, %v4221_v43 }
 0x706   :  { %v4002_v57 = vpop.f32.mrf.mxu1  ;;  %v4204_v47 = vpop.f32.mrf.mxu0 }
 0x707   :  { %v4223_v45 = vmax.f32 %v4002_v57, %v4204_v47 }
 0x708   :  { %v4004_v28 = vpop.f32.mrf.mxu1  ;;  %v4206_v21 = vpop.f32.mrf.mxu0 }
 0x70a   :  { %v4005_v18 = vpop.f32.mrf.mxu1  ;;  %v4207_v48 = vpop.f32.mrf.mxu0 }
 0x70b   :  { %v4224_v2 = vmax.f32 %v4005_v18, %v4207_v48 }
 0x70c   :  { %v4007_v53 = vpop.f32.mrf.mxu1  ;;  %v4209_v52 = vpop.f32.mrf.mxu0 }
 0x70d   :  { %v4231_v20 = vpack.c.bf16 %v4224_v2, %v4223_v45 }
 0x70f   :  { %5122 = vmatprep.subr.bf16.mxu1 %v4231_v20 }
 0x710   :  { %5123 = vmatpush3.bf16.msra.mxu1 %v4231_v20 }
 0x711   :  { %5124 = vmatprep.subr.bf16.mxu1 %v4230_v54 }
 0x714   :  { %5125 = vmatpush3.bf16.msra.mxu1 %v4230_v54 }
 0x715   :  { %5126 = vmatprep.subr.bf16.mxu1 %v4229_v11 }
 0x718   :  { %5127 = vmatpush3.bf16.msra.mxu1 %v4229_v11 }
 0x719   :  { %5128 = vmatprep.subr.bf16.mxu1 %v4228_v16 }
 0x71c   :  { %5129 = vmatpush3.bf16.msra.mxu1 %v4228_v16 }
 0x71d   :  { %5130 = vmatprep.subr.bf16.mxu1 %v4227_v10 }
 0x720   :  { %5131 = vmatpush3.bf16.msra.mxu1 %v4227_v10 }
 0x721   :  { %5132 = vmatprep.subr.bf16.mxu1 %v4226_v40 }
 0x724   :  { %5133 = vmatpush3.bf16.msra.mxu1 %v4226_v40 }
 0x725   :  { %5134 = vmatprep.subr.bf16.mxu1 %v7225_v6 }
 0x728   :  { %5135 = vmatpush3.bf16.msra.mxu1 %v7225_v6 }
 0x729   :  { %5144 = vmatprep.subr.bf16.mxu1 %v4231_v20 }
 0x72b   :  { %5137 = vmatmul.mubr.msk.bf16.vlgmr.msra.gmra.mxu1 %vm2800_vm7, %v5443_v14 }
 0x72c   :  { %5145 = vmatpush3.bf16.msra.mxu1 %v4231_v20  ;;  %5140 = vmatprep.mubr.msk.bf16.mxu1 %vm2800_vm7, %v5444_v34 }
 0x72d   :  { %5146 = vmatprep.subr.bf16.mxu1 %v4230_v54 }
 0x730   :  { %5147 = vmatpush3.bf16.msra.mxu1 %v4230_v54 }
 0x731   :  { %5148 = vmatprep.subr.bf16.mxu1 %v4229_v11 }
 0x733   :  { %5141 = vmatmul.mubr.msk.bf16.gmra.mxu1 %vm2800_vm7, %v5445_v35 }
 0x734   :  { %5149 = vmatpush3.bf16.msra.mxu1 %v4229_v11  ;;  %5158 = vmatprep.mubr.msk.bf16.mxu1 %vm2800_vm7, %v5446_v56 }
 0x735   :  { %5150 = vmatprep.subr.bf16.mxu1 %v4228_v16 }
 0x738   :  { %5151 = vmatpush3.bf16.msra.mxu1 %v4228_v16 }
 0x739   :  { %5152 = vmatprep.subr.bf16.mxu1 %v4227_v10 }
 0x73c   :  { %5153 = vmatpush3.bf16.msra.mxu1 %v4227_v10 }
 0x73d   :  { %5154 = vmatprep.subr.bf16.mxu1 %v4226_v40 }
 0x740   :  { %5155 = vmatpush3.bf16.msra.mxu1 %v4226_v40 }
 0x741   :  { %5156 = vmatprep.subr.bf16.mxu1 %v7225_v6 }
 0x744   :  { %5157 = vmatpush3.bf16.msra.mxu1 %v7225_v6 }
 0x747   :  { %5159 = vmatmul.mubr.msk.bf16.vlgmr.msra.gmra.mxu1 %vm2800_vm7, %v5447_v58 }
 0x748   :  { %5162 = vmatprep.mubr.msk.bf16.mxu1 %vm2800_vm7, %v5448_v13 }
 0x74f   :  { %5163 = vmatmul.mubr.msk.bf16.gmra.mxu1 %vm2800_vm7, %v5449_v33 }
 0x7eb   :  { %v5138_v22 = vpop.f32.mrf.mxu1 }
 0x7ed   :  { %v4303_v3 = vpop.f32.mrf.mxu1 }
 0x7ef   :  { %v5139_v37 = vpop.f32.mrf.mxu1 }
 0x7f1   :  { %v4306_v49 = vpop.f32.mrf.mxu1 }
 0x7f3   :  { %v5142_v7 = vpop.f32.mrf.mxu1 }
 0x7f5   :  { %v4319_v6 = vpop.f32.mrf.mxu1 }
 0x7f7   :  { %v5143_v32 = vpop.f32.mrf.mxu1 }
 0x7f9   :  { %v4322_v23 = vpop.f32.mrf.mxu1 }
 0x807   :  { %v5160_v26 = vpop.f32.mrf.mxu1 }
 0x808   :  { %v4437_v55 = vmax.f32 %v5138_v22, %v5160_v26 }
 0x809   :  { %v4405_v30 = vpop.f32.mrf.mxu1 }
 0x80a   :  { %4444 = vst.msk [vmem:[%s7313_s11 + $0x10] sm:$0xff] %vm2800_vm7, %v4437_v55  ;;  %v4435_v61 = vmax.f32 %v4303_v3, %v4405_v30 }
 0x80b   :  { %v5161_v29 = vpop.f32.mrf.mxu1 }
 0x80c   :  { %4442 = vst.msk [vmem:[%s7313_s11] sm:$0xff] %vm2800_vm7, %v4435_v61  ;;  %v4438_v27 = vmax.f32 %v5139_v37, %v5161_v29 }
 0x80d   :  { %v4408_v12 = vpop.f32.mrf.mxu1 }
 0x80e   :  { %4445 = vst.msk [vmem:[%s7313_s11 + $0x18] sm:$0xff] %vm2800_vm7, %v4438_v27  ;;  %v4436_v17 = vmax.f32 %v4306_v49, %v4408_v12 }
 0x80f   :  { %v5164_v36 = vpop.f32.mrf.mxu1 }
 0x810   :  { %4443 = vst.msk [vmem:[%s7313_s11 + $0x8] sm:$0xff] %vm2800_vm7, %v4436_v17  ;;  %v4441_v19 = vmax.f32 %v5142_v7, %v5164_v36 }
 0x811   :  { %v4421_v9 = vpop.f32.mrf.mxu1 }
 0x812   :  { %4448 = vst.msk [vmem:[%s7313_s11 + $0x30] sm:$0xff] %vm2800_vm7, %v4441_v19  ;;  %v4439_v31 = vmax.f32 %v4319_v6, %v4421_v9 }
 0x813   :  { %v5165_v59 = vpop.f32.mrf.mxu1 }
 0x814   :  { %4446 = vst.msk [vmem:[%s7313_s11 + $0x20] sm:$0xff] %vm2800_vm7, %v4439_v31 }
 0x815   :  { %v4424_v63 = vpop.f32.mrf.mxu1 }
 0x816   :  { %v4440_v1 = vmax.f32 %v4322_v23, %v4424_v63 }
 0x818   :  { %4447 = vst.msk [vmem:[%s7313_s11 + $0x28] sm:$0xff] %vm2800_vm7, %v4440_v1 }

</bundles_post_ra>
